<compile_context>
chip_gen: v7x
topology: tpu7x:2x2x1
jax: 0.10.0
libtpu: 0.0.40
codegen_flags: <defaults>
</compile_context>

<pallas_src>
import functools

import jax
import jax.numpy as jnp
from jax.experimental import pallas as pl
from jax.experimental.pallas import tpu as pltpu

BN_EPS = 1e-5
LANE = 128


def _round_up(x, m):
    return (x + m - 1) // m * m


@functools.lru_cache(maxsize=1)
def _vmem_limit_bytes():
    """Derive a VMEM limit from the hardware (25% headroom); None -> compiler default."""
    try:
        info = pltpu.get_tpu_info()
        cap = getattr(info, "vmem_capacity_bytes", None)
        if cap:
            return int(cap) * 3 // 4
    except Exception:
        pass
    return None


def _compiler_params(semantics):
    kwargs = dict(dimension_semantics=semantics)
    lim = _vmem_limit_bytes()
    if lim is not None:
        kwargs["vmem_limit_bytes"] = lim
    return pltpu.CompilerParams(**kwargs)


# ----------------------------- Pallas kernels ------------------------------

def _conv1_kernel(taps, Ho, Wo, Lh, m_total, has_sc, *refs):
    """conv1 (3x3, any stride via phase views) + BN1 batch-stat accumulation,
    with the shortcut 1x1 conv (+ BN_sc stats) fused in (reads the centre tap).

    Fused-tap formulation: the nine taps are concatenated along K into an
    (Ho*Wo, 9*Cin_p) strip and contracted with the (9*Cin_p, C1_p) weight in a
    single MXU matmul.
    """
    if has_sc:
        (src_ref, w1_ref, g1_ref, b1_ref, wsc_ref, gsc_ref, bsc_ref,
         y1_ref, s1_ref, t1_ref, ysc_ref, ssc_ref, tsc_ref,
         sum1_ref, ssq1_ref, sums_ref, ssqs_ref) = refs
    else:
        (src_ref, w1_ref, g1_ref, b1_ref,
         y1_ref, s1_ref, t1_ref,
         sum1_ref, ssq1_ref) = refs

    n = pl.program_id(0)
    cin_p = src_ref.shape[3]
    c1 = w1_ref.shape[1]

    @pl.when(n == 0)
    def _():
        sum1_ref[...] = jnp.zeros(sum1_ref.shape, sum1_ref.dtype)
        ssq1_ref[...] = jnp.zeros(ssq1_ref.shape, ssq1_ref.dtype)
        if has_sc:
            sums_ref[...] = jnp.zeros(sums_ref.shape, sums_ref.dtype)
            ssqs_ref[...] = jnp.zeros(ssqs_ref.shape, ssqs_ref.dtype)

    # Build the im2col strip: concat the 9 taps along the lane/K axis (128-aligned offsets).
    tap_vals = []
    for (p, oy, ox) in taps:
        r0 = p * Lh + oy
        tap_vals.append(src_ref[0, r0:r0 + Ho, ox:ox + Wo, :])        # (Ho, Wo, Cin_p) bf16
    strip = jnp.concatenate(tap_vals, axis=-1)                        # (Ho, Wo, 9*Cin_p)
    strip2 = strip.reshape(Ho * Wo, 9 * cin_p)

    acc = jnp.dot(strip2, w1_ref[...], preferred_element_type=jnp.float32)   # (M, C1_p) f32
    y1_ref[...] = acc.reshape(1, Ho, Wo, c1).astype(y1_ref.dtype)
    sum1_ref[...] += jnp.sum(acc, axis=0, keepdims=True)
    ssq1_ref[...] += jnp.sum(acc * acc, axis=0, keepdims=True)

    if has_sc:
        c2 = wsc_ref.shape[1]
        # Centre tap (dy=1, dx=1) == x subsampled by the conv stride -> shortcut conv input.
        xs = strip2[:, 4 * cin_p:(4 + 1) * cin_p]                     # lane-aligned slice
        accs = jnp.dot(xs, wsc_ref[...], preferred_element_type=jnp.float32)
        ysc_ref[...] = accs.reshape(1, Ho, Wo, c2).astype(ysc_ref.dtype)
        sums_ref[...] += jnp.sum(accs, axis=0, keepdims=True)
        ssqs_ref[...] += jnp.sum(accs * accs, axis=0, keepdims=True)

    @pl.when(n == pl.num_programs(0) - 1)
    def _():
        mean1 = sum1_ref[...] / m_total
        var1 = ssq1_ref[...] / m_total - mean1 * mean1
        sc1 = jax.lax.rsqrt(var1 + BN_EPS) * g1_ref[...]
        s1_ref[...] = sc1
        t1_ref[...] = b1_ref[...] - mean1 * sc1
        if has_sc:
            means = sums_ref[...] / m_total
            vars_ = ssqs_ref[...] / m_total - means * means
            scs = jax.lax.rsqrt(vars_ + BN_EPS) * gsc_ref[...]
            ssc_ref[...] = scs
            tsc_ref[...] = bsc_ref[...] - means * scs


def _mid_kernel(Ho, Wo, m_total,
                y1_ref, s1_ref, t1_ref, w2_ref, g2_ref, b2_ref,
                y2_ref, s2_ref, t2_ref,
                hpad_ref, sum2_ref, ssq2_ref):
    """bn1 (folded affine) + ReLU -> conv2 (3x3, stride 1, fused-tap matmul) + BN2 stats."""
    n = pl.program_id(0)
    c1 = y1_ref.shape[3]
    c2 = w2_ref.shape[1]

    @pl.when(n == 0)
    def _():
        # Zero borders once.  NOTE: valid only because the grid axis is sequential
        # ("arbitrary"); per-core zeroing is needed if this is ever core-sharded.
        hpad_ref[...] = jnp.zeros(hpad_ref.shape, hpad_ref.dtype)
        sum2_ref[...] = jnp.zeros(sum2_ref.shape, sum2_ref.dtype)
        ssq2_ref[...] = jnp.zeros(ssq2_ref.shape, ssq2_ref.dtype)

    y1 = y1_ref[0].astype(jnp.float32)                                # (Ho, Wo, C1)
    h1 = jnp.maximum(y1 * s1_ref[...].reshape(1, 1, c1)
                     + t1_ref[...].reshape(1, 1, c1), 0.0)
    hpad_ref[1:Ho + 1, 1:Wo + 1, :] = h1.astype(hpad_ref.dtype)

    tap_vals = []
    for dy in range(3):
        for dx in range(3):
            tap_vals.append(hpad_ref[dy:dy + Ho, dx:dx + Wo, :])      # (Ho, Wo, C1) bf16
    strip2 = jnp.concatenate(tap_vals, axis=-1).reshape(Ho * Wo, 9 * c1)

    acc = jnp.dot(strip2, w2_ref[...], preferred_element_type=jnp.float32)   # (M, C2_p)
    y2_ref[...] = acc.reshape(1, Ho, Wo, c2).astype(y2_ref.dtype)
    sum2_ref[...] += jnp.sum(acc, axis=0, keepdims=True)
    ssq2_ref[...] += jnp.sum(acc * acc, axis=0, keepdims=True)

    @pl.when(n == pl.num_programs(0) - 1)
    def _():
        mean2 = sum2_ref[...] / m_total
        var2 = ssq2_ref[...] / m_total - mean2 * mean2
        sc2 = jax.lax.rsqrt(var2 + BN_EPS) * g2_ref[...]
        s2_ref[...] = sc2
        t2_ref[...] = b2_ref[...] - mean2 * sc2


def _combine_kernel(res_has_affine, y2_ref, s2_ref, t2_ref, r_ref, *rest):
    """out = relu( bn2(y2) + (bn_sc(res) | identity res) ), lane-dense (TM, 128) tiles."""
    if res_has_affine:
        sr_ref, tr_ref, out_ref = rest
    else:
        (out_ref,) = rest
    o = y2_ref[...].astype(jnp.float32) * s2_ref[...] + t2_ref[...]
    r = r_ref[...].astype(jnp.float32)
    if res_has_affine:
        o = o + (r * sr_ref[...] + tr_ref[...])
    else:
        o = o + r
    out_ref[...] = jnp.maximum(o, 0.0).astype(out_ref.dtype)


# ----------------------------- pallas_call wrappers -----------------------------

def _conv1_call(src, w1, g1, b1, sc, N, Ho, Wo, Lh, taps):
    _, sP, lwp, cin_p = src.shape
    k9, c1p = w1.shape
    has_sc = sc is not None
    m_total = float(N * Ho * Wo)
    kernel = functools.partial(_conv1_kernel, taps, Ho, Wo, Lh, m_total, has_sc)

    inputs = [src, w1, g1, b1]
    in_specs = [pl.BlockSpec((1, sP, lwp, cin_p), lambda n: (n, 0, 0, 0)),
                pl.BlockSpec((k9, c1p), lambda n: (0, 0)),
                pl.BlockSpec((1, c1p), lambda n: (0, 0)),
                pl.BlockSpec((1, c1p), lambda n: (0, 0))]
    out_shapes = [jax.ShapeDtypeStruct((N, Ho, Wo, c1p), jnp.bfloat16),
                  jax.ShapeDtypeStruct((1, c1p), jnp.float32),
                  jax.ShapeDtypeStruct((1, c1p), jnp.float32)]
    out_specs = [pl.BlockSpec((1, Ho, Wo, c1p), lambda n: (n, 0, 0, 0)),
                 pl.BlockSpec((1, c1p), lambda n: (0, 0)),
                 pl.BlockSpec((1, c1p), lambda n: (0, 0))]
    scratch = [pltpu.VMEM((1, c1p), jnp.float32),
               pltpu.VMEM((1, c1p), jnp.float32)]

    if has_sc:
        wsc, gsc, bsc = sc
        c2p = wsc.shape[1]
        inputs += [wsc, gsc, bsc]
        in_specs += [pl.BlockSpec((cin_p, c2p), lambda n: (0, 0)),
                     pl.BlockSpec((1, c2p), lambda n: (0, 0)),
                     pl.BlockSpec((1, c2p), lambda n: (0, 0))]
        out_shapes += [jax.ShapeDtypeStruct((N, Ho, Wo, c2p), jnp.bfloat16),
                       jax.ShapeDtypeStruct((1, c2p), jnp.float32),
                       jax.ShapeDtypeStruct((1, c2p), jnp.float32)]
        out_specs += [pl.BlockSpec((1, Ho, Wo, c2p), lambda n: (n, 0, 0, 0)),
                      pl.BlockSpec((1, c2p), lambda n: (0, 0)),
                      pl.BlockSpec((1, c2p), lambda n: (0, 0))]
        scratch += [pltpu.VMEM((1, c2p), jnp.float32),
                    pltpu.VMEM((1, c2p), jnp.float32)]

    return pl.pallas_call(
        kernel,
        out_shape=tuple(out_shapes),
        grid=(N,),
        in_specs=in_specs,
        out_specs=tuple(out_specs),
        scratch_shapes=scratch,
        compiler_params=_compiler_params(("arbitrary",)),
    )(*inputs)


def _mid_call(y1, s1, t1, w2, g2, b2, Ho, Wo):
    N, _, _, c1 = y1.shape
    c2 = w2.shape[1]
    m_total = float(N * Ho * Wo)
    wpad = _round_up(Wo + 2, 8)
    kernel = functools.partial(_mid_kernel, Ho, Wo, m_total)
    return pl.pallas_call(
        kernel,
        out_shape=(jax.ShapeDtypeStruct((N, Ho, Wo, c2), jnp.bfloat16),
                   jax.ShapeDtypeStruct((1, c2), jnp.float32),
                   jax.ShapeDtypeStruct((1, c2), jnp.float32)),
        grid=(N,),
        in_specs=[pl.BlockSpec((1, Ho, Wo, c1), lambda n: (n, 0, 0, 0)),
                  pl.BlockSpec((1, c1), lambda n: (0, 0)),
                  pl.BlockSpec((1, c1), lambda n: (0, 0)),
                  pl.BlockSpec((9 * c1, c2), lambda n: (0, 0)),
                  pl.BlockSpec((1, c2), lambda n: (0, 0)),
                  pl.BlockSpec((1, c2), lambda n: (0, 0))],
        out_specs=(pl.BlockSpec((1, Ho, Wo, c2), lambda n: (n, 0, 0, 0)),
                   pl.BlockSpec((1, c2), lambda n: (0, 0)),
                   pl.BlockSpec((1, c2), lambda n: (0, 0))),
        scratch_shapes=[pltpu.VMEM((Ho + 2, wpad, c1), jnp.bfloat16),
                        pltpu.VMEM((1, c2), jnp.float32),
                        pltpu.VMEM((1, c2), jnp.float32)],
        compiler_params=_compiler_params(("arbitrary",)),
    )(y1, s1, t1, w2, g2, b2)


def _combine_call(y2_flat, s2, t2, res_flat, res_aff):
    M, c2 = y2_flat.shape
    TM = M
    for cand in (2048, 1024, 512, 256, 128, 64, 32, 16, 8):   # big lane-dense tiles first
        if M % cand == 0:
            TM = cand
            break
    grid = (M // TM,)
    has_aff = res_aff is not None
    kernel = functools.partial(_combine_kernel, has_aff)

    inputs = [y2_flat, s2, t2, res_flat]
    in_specs = [pl.BlockSpec((TM, c2), lambda i: (i, 0)),
                pl.BlockSpec((1, c2), lambda i: (0, 0)),
                pl.BlockSpec((1, c2), lambda i: (0, 0)),
                pl.BlockSpec((TM, c2), lambda i: (i, 0))]
    if has_aff:
        sr, tr = res_aff
        inputs += [sr, tr]
        in_specs += [pl.BlockSpec((1, c2), lambda i: (0, 0)),
                     pl.BlockSpec((1, c2), lambda i: (0, 0))]

    return pl.pallas_call(
        kernel,
        out_shape=jax.ShapeDtypeStruct((M, c2), jnp.float32),
        grid=grid,
        in_specs=in_specs,
        out_specs=pl.BlockSpec((TM, c2), lambda i: (i, 0)),
        compiler_params=_compiler_params(("parallel",)),
    )(*inputs)


# ------------------------------- JAX glue -----------------------------------

def _w3x3_to_mat(w_oihw, cin_p, cout_p):
    """PyTorch (Cout, Cin, 3, 3) -> (9*Cin_p, Cout_p) bf16, rows ordered (dy, dx, cin)."""
    cout, cin, kh, kw = w_oihw.shape
    w = jnp.transpose(w_oihw, (2, 3, 1, 0))                           # (3, 3, Cin, Cout)
    w = jnp.pad(w, ((0, 0), (0, 0), (0, cin_p - cin), (0, cout_p - cout)))
    return w.reshape(kh * kw * cin_p, cout_p).astype(jnp.bfloat16)


def _pad_vec(v, cp):
    return jnp.pad(v, (0, cp - v.shape[0])).reshape(1, cp).astype(jnp.float32)


def basic_block_forward(x_nchw, params, stride):
    """Forward of BasicBlock_with_config (training-mode BN). Input/output: NCHW float32."""
    N, Cin, H, W = x_nchw.shape
    mid = params["conv1_w"].shape[0]
    out_ch = params["conv2_w"].shape[0]
    assert stride in (1, 2) and H % stride == 0 and W % stride == 0
    has_sc = (stride != 1) or (Cin != out_ch)

    cin_p = _round_up(Cin, LANE)
    mid_p = _round_up(mid, LANE)
    out_p = _round_up(out_ch, LANE)

    Ho = (H - 1) // stride + 1
    Wo = (W - 1) // stride + 1

    # NHWC, channel-padded (lane-dense), bf16 activations.
    x = jnp.transpose(x_nchw, (0, 2, 3, 1))
    x_p = jnp.pad(x, ((0, 0), (0, 0), (0, 0), (0, cin_p - Cin))).astype(jnp.bfloat16)
    xpad = jnp.pad(x_p, ((0, 0), (1, 1), (1, 1), (0, 0)))

    # Per-phase padded window sizes (explicit ceil-divide; fixes the old precedence bug).
    Lh = Ho + -(-2 // stride)
    Lw = Wo + -(-2 // stride)
    Lwp = _round_up(Lw, 8)                                            # 8-sublane aligned width

    if stride == 1:
        src = jnp.pad(xpad, ((0, 0), (0, 0), (0, Lwp - Lw), (0, 0)))
    else:
        # Phase-stack the zero-padded input so each tap is a dense in-kernel slice.
        phases = []
        for py in range(stride):
            for px in range(stride):
                ph = xpad[:, py::stride, px::stride, :][:, :Lh, :Lw, :]
                phases.append(jnp.pad(ph, ((0, 0), (0, 0), (0, Lwp - Lw), (0, 0))))
        src = jnp.concatenate(phases, axis=1)
    taps = tuple(((dy % stride) * stride + (dx % stride), dy // stride, dx // stride)
                 for dy in range(3) for dx in range(3))

    w1 = _w3x3_to_mat(params["conv1_w"], cin_p, mid_p)
    g1, b1 = _pad_vec(params["bn1_g"], mid_p), _pad_vec(params["bn1_b"], mid_p)

    sc = None
    if has_sc:
        wsc = jnp.transpose(params["sc_w"][:, :, 0, 0], (1, 0))       # (Cin, out_ch)
        wsc = jnp.pad(wsc, ((0, cin_p - Cin), (0, out_p - out_ch))).astype(jnp.bfloat16)
        sc = (wsc, _pad_vec(params["sc_g"], out_p), _pad_vec(params["sc_b"], out_p))

    conv1_out = _conv1_call(src, w1, g1, b1, sc, N, Ho, Wo, Lh, taps)
    if has_sc:
        y1, s1, t1, ysc, ssc, tsc = conv1_out
    else:
        y1, s1, t1 = conv1_out

    w2 = _w3x3_to_mat(params["conv2_w"], mid_p, out_p)
    g2, b2 = _pad_vec(params["bn2_g"], out_p), _pad_vec(params["bn2_b"], out_p)
    y2, s2, t2 = _mid_call(y1, s1, t1, w2, g2, b2, Ho, Wo)

    M = N * Ho * Wo
    if has_sc:
        res_flat = ysc.reshape(M, out_p)
        res_aff = (ssc, tsc)
    else:
        assert cin_p == out_p
        res_flat = x_p.reshape(M, cin_p)
        res_aff = None

    out_flat = _combine_call(y2.reshape(M, out_p), s2, t2, res_flat, res_aff)
    out = out_flat.reshape(N, Ho, Wo, out_p)[:, :, :, :out_ch]
    return jnp.transpose(out, (0, 3, 1, 2)).astype(jnp.float32)


# ------------------------ pure-JAX reference (for check) --------------------

def _conv_ref(x, w, stride, padding):
    return jax.lax.conv_general_dilated(
        x, w, (stride, stride), ((padding, padding), (padding, padding)),
        dimension_numbers=("NCHW", "OIHW", "NCHW"),
        precision=jax.lax.Precision.HIGHEST,
    )


def _bn_ref(y, gamma, beta):
    mean = y.mean(axis=(0, 2, 3), keepdims=True)
    var = ((y - mean) ** 2).mean(axis=(0, 2, 3), keepdims=True)
    return (y - mean) * jax.lax.rsqrt(var + BN_EPS) * gamma.reshape(1, -1, 1, 1) \
        + beta.reshape(1, -1, 1, 1)


def basic_block_ref(x, params, stride):
    out = jnp.maximum(_bn_ref(_conv_ref(x, params["conv1_w"], stride, 1),
                              params["bn1_g"], params["bn1_b"]), 0.0)
    out = _bn_ref(_conv_ref(out, params["conv2_w"], 1, 1), params["bn2_g"], params["bn2_b"])
    in_ch, out_ch = x.shape[1], params["conv2_w"].shape[0]
    if stride != 1 or in_ch != out_ch:
        sc = _bn_ref(_conv_ref(x, params["sc_w"], stride, 0), params["sc_g"], params["sc_b"])
    else:
        sc = x
    return jnp.maximum(out + sc, 0.0)


# --------------------------------- main --------------------------------------

if __name__ == "__main__":
    root = jax.random.PRNGKey(0)

    def make_params(key, in_ch, mid_ch, out_ch, with_sc):
        ks = jax.random.split(key, 10)
        p = {
            "conv1_w": 0.1 * jax.random.normal(ks[1], (mid_ch, in_ch, 3, 3), jnp.float32),
            "bn1_g": 1.0 + 0.1 * jax.random.normal(ks[2], (mid_ch,), jnp.float32),
            "bn1_b": 0.1 * jax.random.normal(ks[3], (mid_ch,), jnp.float32),
            "conv2_w": 0.1 * jax.random.normal(ks[4], (out_ch, mid_ch, 3, 3), jnp.float32),
            "bn2_g": 1.0 + 0.1 * jax.random.normal(ks[5], (out_ch,), jnp.float32),
            "bn2_b": 0.1 * jax.random.normal(ks[6], (out_ch,), jnp.float32),
        }
        if with_sc:
            p["sc_w"] = 0.1 * jax.random.normal(ks[7], (out_ch, in_ch, 1, 1), jnp.float32)
            p["sc_g"] = 1.0 + 0.1 * jax.random.normal(ks[8], (out_ch,), jnp.float32)
            p["sc_b"] = 0.1 * jax.random.normal(ks[9], (out_ch,), jnp.float32)
        return p

    configs = [
        # (name, N, in_ch, mid_ch, out_ch, H, W, stride)
        ("downsample", 2, 4, 8, 8, 16, 16, 2),   # stride 2 -> conv1x1 + BN shortcut
        ("identity",   2, 8, 8, 8, 16, 16, 1),   # identity shortcut
    ]

    fwd = jax.jit(basic_block_forward, static_argnums=2)
    for i, (name, N, in_ch, mid_ch, out_ch, H, W, stride) in enumerate(configs):
        kx, kp = jax.random.split(jax.random.fold_in(root, i))
        x = jax.random.normal(kx, (N, in_ch, H, W), dtype=jnp.float32)
        with_sc = (stride != 1) or (in_ch != out_ch)
        params = make_params(kp, in_ch, mid_ch, out_ch, with_sc)

        out = jax.block_until_ready(fwd(x, params, stride))
        ref = jax.block_until_ready(basic_block_ref(x, params, stride))

        Ho, Wo = (H - 1) // stride + 1, (W - 1) // stride + 1
        assert out.shape == (N, out_ch, Ho, Wo), (name, out.shape)
        max_err = float(jnp.max(jnp.abs(out - ref)))
        # bf16 MXU inputs (f32 accumulation) vs the f32 HIGHEST reference -> looser tol.
        assert jnp.allclose(out, ref, rtol=3e-2, atol=3e-2), (name, max_err)

    print("KERNEL_OK")
</pallas_src>

<mosaic_0001>
module attributes {stable_mosaic.version = 11 : i64} {
  func.func @_conv1_kernel(%arg0: i32, %arg1: memref<1x36x16x128xbf16, #tpu.memory_space<vmem>>, %arg2: memref<1152x128xbf16, #tpu.memory_space<vmem>>, %arg3: memref<1x128xf32, #tpu.memory_space<vmem>>, %arg4: memref<1x128xf32, #tpu.memory_space<vmem>>, %arg5: memref<128x128xbf16, #tpu.memory_space<vmem>>, %arg6: memref<1x128xf32, #tpu.memory_space<vmem>>, %arg7: memref<1x128xf32, #tpu.memory_space<vmem>>, %arg8: memref<1x8x8x128xbf16, #tpu.memory_space<vmem>>, %arg9: memref<1x128xf32, #tpu.memory_space<vmem>>, %arg10: memref<1x128xf32, #tpu.memory_space<vmem>>, %arg11: memref<1x8x8x128xbf16, #tpu.memory_space<vmem>>, %arg12: memref<1x128xf32, #tpu.memory_space<vmem>>, %arg13: memref<1x128xf32, #tpu.memory_space<vmem>>, %arg14: memref<1x128xf32, #tpu.memory_space<vmem>>, %arg15: memref<1x128xf32, #tpu.memory_space<vmem>>, %arg16: memref<1x128xf32, #tpu.memory_space<vmem>>, %arg17: memref<1x128xf32, #tpu.memory_space<vmem>>) attributes {dimension_semantics = [#tpu.dimension_semantics<arbitrary>], iteration_bounds = array<i64: 2>, scalar_prefetch = 0 : i64, scratch_operands = 4 : i64, tpu.core_type = #tpu.core_type<tc>, window_params = [{transform_indices = @transform_0, window_bounds = array<i64: 1, 36, 16, 128>}, {pipeline_mode = #tpu.pipeline_mode<synchronous>, transform_indices = @transform_1, window_bounds = array<i64: 1152, 128>}, {pipeline_mode = #tpu.pipeline_mode<synchronous>, transform_indices = @transform_2, window_bounds = array<i64: 1, 128>}, {pipeline_mode = #tpu.pipeline_mode<synchronous>, transform_indices = @transform_3, window_bounds = array<i64: 1, 128>}, {pipeline_mode = #tpu.pipeline_mode<synchronous>, transform_indices = @transform_4, window_bounds = array<i64: 128, 128>}, {pipeline_mode = #tpu.pipeline_mode<synchronous>, transform_indices = @transform_5, window_bounds = array<i64: 1, 128>}, {pipeline_mode = #tpu.pipeline_mode<synchronous>, transform_indices = @transform_6, window_bounds = array<i64: 1, 128>}, {transform_indices = @transform_7, window_bounds = array<i64: 1, 8, 8, 128>}, {pipeline_mode = #tpu.pipeline_mode<synchronous>, transform_indices = @transform_8, window_bounds = array<i64: 1, 128>}, {pipeline_mode = #tpu.pipeline_mode<synchronous>, transform_indices = @transform_9, window_bounds = array<i64: 1, 128>}, {transform_indices = @transform_10, window_bounds = array<i64: 1, 8, 8, 128>}, {pipeline_mode = #tpu.pipeline_mode<synchronous>, transform_indices = @transform_11, window_bounds = array<i64: 1, 128>}, {pipeline_mode = #tpu.pipeline_mode<synchronous>, transform_indices = @transform_12, window_bounds = array<i64: 1, 128>}]} {
    %c0_i32 = arith.constant 0 : i32
    %0 = arith.cmpi eq, %arg0, %c0_i32 : i32
    %1 = arith.extui %0 : i1 to i32
    %c0_i32_0 = arith.constant 0 : i32
    %2 = arith.cmpi ne, %1, %c0_i32_0 : i32
    scf.if %2 {
      %cst_65 = arith.constant 0.000000e+00 : f32
      %59 = vector.broadcast %cst_65 : f32 to vector<1x128xf32>
      %c0_66 = arith.constant 0 : index
      %c0_67 = arith.constant 0 : index
      %60 = vector.load %arg14[%c0_66, %c0_67] : memref<1x128xf32, #tpu.memory_space<vmem>>, vector<1x128xf32>
      tpu.vector_store %arg14[%c0_66, %c0_67], %59 {strides = array<i32>} : memref<1x128xf32, #tpu.memory_space<vmem>>, vector<1x128xf32>,
      %cst_68 = arith.constant 0.000000e+00 : f32
      %61 = vector.broadcast %cst_68 : f32 to vector<1x128xf32>
      %c0_69 = arith.constant 0 : index
      %c0_70 = arith.constant 0 : index
      %62 = vector.load %arg15[%c0_69, %c0_70] : memref<1x128xf32, #tpu.memory_space<vmem>>, vector<1x128xf32>
      tpu.vector_store %arg15[%c0_69, %c0_70], %61 {strides = array<i32>} : memref<1x128xf32, #tpu.memory_space<vmem>>, vector<1x128xf32>,
      %cst_71 = arith.constant 0.000000e+00 : f32
      %63 = vector.broadcast %cst_71 : f32 to vector<1x128xf32>
      %c0_72 = arith.constant 0 : index
      %c0_73 = arith.constant 0 : index
      %64 = vector.load %arg16[%c0_72, %c0_73] : memref<1x128xf32, #tpu.memory_space<vmem>>, vector<1x128xf32>
      tpu.vector_store %arg16[%c0_72, %c0_73], %63 {strides = array<i32>} : memref<1x128xf32, #tpu.memory_space<vmem>>, vector<1x128xf32>,
      %cst_74 = arith.constant 0.000000e+00 : f32
      %65 = vector.broadcast %cst_74 : f32 to vector<1x128xf32>
      %c0_75 = arith.constant 0 : index
      %c0_76 = arith.constant 0 : index
      %66 = vector.load %arg17[%c0_75, %c0_76] : memref<1x128xf32, #tpu.memory_space<vmem>>, vector<1x128xf32>
      tpu.vector_store %arg17[%c0_75, %c0_76], %65 {strides = array<i32>} : memref<1x128xf32, #tpu.memory_space<vmem>>, vector<1x128xf32>,
    } else {
    }
    %c0 = arith.constant 0 : index
    %c0_1 = arith.constant 0 : index
    %c0_2 = arith.constant 0 : index
    %c0_3 = arith.constant 0 : index
    %3 = vector.load %arg1[%c0, %c0_1, %c0_2, %c0_3] : memref<1x36x16x128xbf16, #tpu.memory_space<vmem>>, vector<1x8x8x128xbf16>
    %4 = vector.shape_cast %3 : vector<1x8x8x128xbf16> to vector<8x8x128xbf16>
    %c0_4 = arith.constant 0 : index
    %c9 = arith.constant 9 : index
    %c0_5 = arith.constant 0 : index
    %c0_6 = arith.constant 0 : index
    %5 = vector.load %arg1[%c0_4, %c9, %c0_5, %c0_6] : memref<1x36x16x128xbf16, #tpu.memory_space<vmem>>, vector<1x8x8x128xbf16>
    %6 = vector.shape_cast %5 : vector<1x8x8x128xbf16> to vector<8x8x128xbf16>
    %c0_7 = arith.constant 0 : index
    %c0_8 = arith.constant 0 : index
    %c1 = arith.constant 1 : index
    %c0_9 = arith.constant 0 : index
    %7 = vector.load %arg1[%c0_7, %c0_8, %c1, %c0_9] : memref<1x36x16x128xbf16, #tpu.memory_space<vmem>>, vector<1x8x8x128xbf16>
    %8 = vector.shape_cast %7 : vector<1x8x8x128xbf16> to vector<8x8x128xbf16>
    %c0_10 = arith.constant 0 : index
    %c18 = arith.constant 18 : index
    %c0_11 = arith.constant 0 : index
    %c0_12 = arith.constant 0 : index
    %9 = vector.load %arg1[%c0_10, %c18, %c0_11, %c0_12] : memref<1x36x16x128xbf16, #tpu.memory_space<vmem>>, vector<1x8x8x128xbf16>
    %10 = vector.shape_cast %9 : vector<1x8x8x128xbf16> to vector<8x8x128xbf16>
    %c0_13 = arith.constant 0 : index
    %c27 = arith.constant 27 : index
    %c0_14 = arith.constant 0 : index
    %c0_15 = arith.constant 0 : index
    %11 = vector.load %arg1[%c0_13, %c27, %c0_14, %c0_15] : memref<1x36x16x128xbf16, #tpu.memory_space<vmem>>, vector<1x8x8x128xbf16>
    %12 = vector.shape_cast %11 : vector<1x8x8x128xbf16> to vector<8x8x128xbf16>
    %c0_16 = arith.constant 0 : index
    %c18_17 = arith.constant 18 : index
    %c1_18 = arith.constant 1 : index
    %c0_19 = arith.constant 0 : index
    %13 = vector.load %arg1[%c0_16, %c18_17, %c1_18, %c0_19] : memref<1x36x16x128xbf16, #tpu.memory_space<vmem>>, vector<1x8x8x128xbf16>
    %14 = vector.shape_cast %13 : vector<1x8x8x128xbf16> to vector<8x8x128xbf16>
    %c0_20 = arith.constant 0 : index
    %c1_21 = arith.constant 1 : index
    %c0_22 = arith.constant 0 : index
    %c0_23 = arith.constant 0 : index
    %15 = vector.load %arg1[%c0_20, %c1_21, %c0_22, %c0_23] : memref<1x36x16x128xbf16, #tpu.memory_space<vmem>>, vector<1x8x8x128xbf16>
    %16 = vector.shape_cast %15 : vector<1x8x8x128xbf16> to vector<8x8x128xbf16>
    %c0_24 = arith.constant 0 : index
    %c10 = arith.constant 10 : index
    %c0_25 = arith.constant 0 : index
    %c0_26 = arith.constant 0 : index
    %17 = vector.load %arg1[%c0_24, %c10, %c0_25, %c0_26] : memref<1x36x16x128xbf16, #tpu.memory_space<vmem>>, vector<1x8x8x128xbf16>
    %18 = vector.shape_cast %17 : vector<1x8x8x128xbf16> to vector<8x8x128xbf16>
    %c0_27 = arith.constant 0 : index
    %c1_28 = arith.constant 1 : index
    %c1_29 = arith.constant 1 : index
    %c0_30 = arith.constant 0 : index
    %19 = vector.load %arg1[%c0_27, %c1_28, %c1_29, %c0_30] : memref<1x36x16x128xbf16, #tpu.memory_space<vmem>>, vector<1x8x8x128xbf16>
    %20 = vector.shape_cast %19 : vector<1x8x8x128xbf16> to vector<8x8x128xbf16>
    %21 = tpu.concatenate %4, %6, %8, %10, %12, %14, %16, %18, %20 in 2 : vector<8x8x128xbf16>, vector<8x8x128xbf16>, vector<8x8x128xbf16>, vector<8x8x128xbf16>, vector<8x8x128xbf16>, vector<8x8x128xbf16>, vector<8x8x128xbf16>, vector<8x8x128xbf16>, vector<8x8x128xbf16> -> vector<8x8x1152xbf16>
    %22 = vector.shape_cast %21 : vector<8x8x1152xbf16> to vector<64x1152xbf16>
    %c0_31 = arith.constant 0 : index
    %c0_32 = arith.constant 0 : index
    %23 = vector.load %arg2[%c0_31, %c0_32] : memref<1152x128xbf16, #tpu.memory_space<vmem>>, vector<1152x128xbf16>
    %cst = arith.constant dense<0.000000e+00> : vector<64x128xf32>
    %24 = tpu.matmul %22, %23, %cst {dimension_numbers = #tpu.dot_dimension_numbers<[1], [0], [0], [1], [0, 0, 1, 1], [], []>} : vector<64x1152xbf16>, vector<1152x128xbf16>, vector<64x128xf32> -> vector<64x128xf32>
    %25 = vector.shape_cast %24 : vector<64x128xf32> to vector<1x8x8x128xf32>
    %26 = arith.truncf %25 : vector<1x8x8x128xf32> to vector<1x8x8x128xbf16>
    %c0_33 = arith.constant 0 : index
    %c0_34 = arith.constant 0 : index
    %c0_35 = arith.constant 0 : index
    %c0_36 = arith.constant 0 : index
    %27 = vector.load %arg8[%c0_33, %c0_34, %c0_35, %c0_36] : memref<1x8x8x128xbf16, #tpu.memory_space<vmem>>, vector<1x8x8x128xbf16>
    tpu.vector_store %arg8[%c0_33, %c0_34, %c0_35, %c0_36], %26 {strides = array<i32>} : memref<1x8x8x128xbf16, #tpu.memory_space<vmem>>, vector<1x8x8x128xbf16>,
    %c0_37 = arith.constant 0 : index
    %c0_38 = arith.constant 0 : index
    %28 = vector.load %arg14[%c0_37, %c0_38] : memref<1x128xf32, #tpu.memory_space<vmem>>, vector<1x128xf32>
    %cst_39 = arith.constant dense<0.000000e+00> : vector<128xf32>
    %29 = vector.multi_reduction <add>, %24, %cst_39 [0] : vector<64x128xf32> to vector<128xf32>
    %30 = vector.shape_cast %29 : vector<128xf32> to vector<1x128xf32>
    %31 = arith.addf %28, %30 : vector<1x128xf32>
    %c0_40 = arith.constant 0 : index
    %c0_41 = arith.constant 0 : index
    %32 = vector.load %arg14[%c0_40, %c0_41] : memref<1x128xf32, #tpu.memory_space<vmem>>, vector<1x128xf32>
    tpu.vector_store %arg14[%c0_40, %c0_41], %31 {strides = array<i32>} : memref<1x128xf32, #tpu.memory_space<vmem>>, vector<1x128xf32>,
    %c0_42 = arith.constant 0 : index
    %c0_43 = arith.constant 0 : index
    %33 = vector.load %arg15[%c0_42, %c0_43] : memref<1x128xf32, #tpu.memory_space<vmem>>, vector<1x128xf32>
    %34 = arith.mulf %24, %24 : vector<64x128xf32>
    %cst_44 = arith.constant dense<0.000000e+00> : vector<128xf32>
    %35 = vector.multi_reduction <add>, %34, %cst_44 [0] : vector<64x128xf32> to vector<128xf32>
    %36 = vector.shape_cast %35 : vector<128xf32> to vector<1x128xf32>
    %37 = arith.addf %33, %36 : vector<1x128xf32>
    %c0_45 = arith.constant 0 : index
    %c0_46 = arith.constant 0 : index
    %38 = vector.load %arg15[%c0_45, %c0_46] : memref<1x128xf32, #tpu.memory_space<vmem>>, vector<1x128xf32>
    tpu.vector_store %arg15[%c0_45, %c0_46], %37 {strides = array<i32>} : memref<1x128xf32, #tpu.memory_space<vmem>>, vector<1x128xf32>,
    %39 = vector.extract_strided_slice %22 {offsets = [0, 512], sizes = [64, 128], strides = [1, 1]} : vector<64x1152xbf16> to vector<64x128xbf16>
    %c0_47 = arith.constant 0 : index
    %c0_48 = arith.constant 0 : index
    %40 = vector.load %arg5[%c0_47, %c0_48] : memref<128x128xbf16, #tpu.memory_space<vmem>>, vector<128x128xbf16>
    %cst_49 = arith.constant dense<0.000000e+00> : vector<64x128xf32>
    %41 = tpu.matmul %39, %40, %cst_49 {dimension_numbers = #tpu.dot_dimension_numbers<[1], [0], [0], [1], [0, 0, 1, 1], [], []>} : vector<64x128xbf16>, vector<128x128xbf16>, vector<64x128xf32> -> vector<64x128xf32>
    %42 = vector.shape_cast %41 : vector<64x128xf32> to vector<1x8x8x128xf32>
    %43 = arith.truncf %42 : vector<1x8x8x128xf32> to vector<1x8x8x128xbf16>
    %c0_50 = arith.constant 0 : index
    %c0_51 = arith.constant 0 : index
    %c0_52 = arith.constant 0 : index
    %c0_53 = arith.constant 0 : index
    %44 = vector.load %arg11[%c0_50, %c0_51, %c0_52, %c0_53] : memref<1x8x8x128xbf16, #tpu.memory_space<vmem>>, vector<1x8x8x128xbf16>
    tpu.vector_store %arg11[%c0_50, %c0_51, %c0_52, %c0_53], %43 {strides = array<i32>} : memref<1x8x8x128xbf16, #tpu.memory_space<vmem>>, vector<1x8x8x128xbf16>,
    %c0_54 = arith.constant 0 : index
    %c0_55 = arith.constant 0 : index
    %45 = vector.load %arg16[%c0_54, %c0_55] : memref<1x128xf32, #tpu.memory_space<vmem>>, vector<1x128xf32>
    %cst_56 = arith.constant dense<0.000000e+00> : vector<128xf32>
    %46 = vector.multi_reduction <add>, %41, %cst_56 [0] : vector<64x128xf32> to vector<128xf32>
    %47 = vector.shape_cast %46 : vector<128xf32> to vector<1x128xf32>
    %48 = arith.addf %45, %47 : vector<1x128xf32>
    %c0_57 = arith.constant 0 : index
    %c0_58 = arith.constant 0 : index
    %49 = vector.load %arg16[%c0_57, %c0_58] : memref<1x128xf32, #tpu.memory_space<vmem>>, vector<1x128xf32>
    tpu.vector_store %arg16[%c0_57, %c0_58], %48 {strides = array<i32>} : memref<1x128xf32, #tpu.memory_space<vmem>>, vector<1x128xf32>,
    %c0_59 = arith.constant 0 : index
    %c0_60 = arith.constant 0 : index
    %50 = vector.load %arg17[%c0_59, %c0_60] : memref<1x128xf32, #tpu.memory_space<vmem>>, vector<1x128xf32>
    %51 = arith.mulf %41, %41 : vector<64x128xf32>
    %cst_61 = arith.constant dense<0.000000e+00> : vector<128xf32>
    %52 = vector.multi_reduction <add>, %51, %cst_61 [0] : vector<64x128xf32> to vector<128xf32>
    %53 = vector.shape_cast %52 : vector<128xf32> to vector<1x128xf32>
    %54 = arith.addf %50, %53 : vector<1x128xf32>
    %c0_62 = arith.constant 0 : index
    %c0_63 = arith.constant 0 : index
    %55 = vector.load %arg17[%c0_62, %c0_63] : memref<1x128xf32, #tpu.memory_space<vmem>>, vector<1x128xf32>
    tpu.vector_store %arg17[%c0_62, %c0_63], %54 {strides = array<i32>} : memref<1x128xf32, #tpu.memory_space<vmem>>, vector<1x128xf32>,
    %c1_i32 = arith.constant 1 : i32
    %56 = arith.cmpi eq, %arg0, %c1_i32 : i32
    %57 = arith.extui %56 : i1 to i32
    %c0_i32_64 = arith.constant 0 : i32
    %58 = arith.cmpi ne, %57, %c0_i32_64 : i32
    scf.if %58 {
      %c0_65 = arith.constant 0 : index
      %c0_66 = arith.constant 0 : index
      %59 = vector.load %arg14[%c0_65, %c0_66] : memref<1x128xf32, #tpu.memory_space<vmem>>, vector<1x128xf32>
      %cst_67 = arith.constant 1.280000e+02 : f32
      %60 = vector.broadcast %cst_67 : f32 to vector<1x128xf32>
      %61 = arith.divf %59, %60 : vector<1x128xf32>
      %c0_68 = arith.constant 0 : index
      %c0_69 = arith.constant 0 : index
      %62 = vector.load %arg15[%c0_68, %c0_69] : memref<1x128xf32, #tpu.memory_space<vmem>>, vector<1x128xf32>
      %cst_70 = arith.constant 1.280000e+02 : f32
      %63 = vector.broadcast %cst_70 : f32 to vector<1x128xf32>
      %64 = arith.divf %62, %63 : vector<1x128xf32>
      %65 = arith.mulf %61, %61 : vector<1x128xf32>
      %66 = arith.subf %64, %65 : vector<1x128xf32>
      %cst_71 = arith.constant 9.99999974E-6 : f32
      %67 = vector.broadcast %cst_71 : f32 to vector<1x128xf32>
      %68 = arith.addf %66, %67 : vector<1x128xf32>
      %69 = math.rsqrt %68 : vector<1x128xf32>
      %c0_72 = arith.constant 0 : index
      %c0_73 = arith.constant 0 : index
      %70 = vector.load %arg3[%c0_72, %c0_73] : memref<1x128xf32, #tpu.memory_space<vmem>>, vector<1x128xf32>
      %71 = arith.mulf %69, %70 : vector<1x128xf32>
      %c0_74 = arith.constant 0 : index
      %c0_75 = arith.constant 0 : index
      %72 = vector.load %arg9[%c0_74, %c0_75] : memref<1x128xf32, #tpu.memory_space<vmem>>, vector<1x128xf32>
      tpu.vector_store %arg9[%c0_74, %c0_75], %71 {strides = array<i32>} : memref<1x128xf32, #tpu.memory_space<vmem>>, vector<1x128xf32>,
      %c0_76 = arith.constant 0 : index
      %c0_77 = arith.constant 0 : index
      %73 = vector.load %arg4[%c0_76, %c0_77] : memref<1x128xf32, #tpu.memory_space<vmem>>, vector<1x128xf32>
      %74 = arith.mulf %61, %71 : vector<1x128xf32>
      %75 = arith.subf %73, %74 : vector<1x128xf32>
      %c0_78 = arith.constant 0 : index
      %c0_79 = arith.constant 0 : index
      %76 = vector.load %arg10[%c0_78, %c0_79] : memref<1x128xf32, #tpu.memory_space<vmem>>, vector<1x128xf32>
      tpu.vector_store %arg10[%c0_78, %c0_79], %75 {strides = array<i32>} : memref<1x128xf32, #tpu.memory_space<vmem>>, vector<1x128xf32>,
      %c0_80 = arith.constant 0 : index
      %c0_81 = arith.constant 0 : index
      %77 = vector.load %arg16[%c0_80, %c0_81] : memref<1x128xf32, #tpu.memory_space<vmem>>, vector<1x128xf32>
      %cst_82 = arith.constant 1.280000e+02 : f32
      %78 = vector.broadcast %cst_82 : f32 to vector<1x128xf32>
      %79 = arith.divf %77, %78 : vector<1x128xf32>
      %c0_83 = arith.constant 0 : index
      %c0_84 = arith.constant 0 : index
      %80 = vector.load %arg17[%c0_83, %c0_84] : memref<1x128xf32, #tpu.memory_space<vmem>>, vector<1x128xf32>
      %cst_85 = arith.constant 1.280000e+02 : f32
      %81 = vector.broadcast %cst_85 : f32 to vector<1x128xf32>
      %82 = arith.divf %80, %81 : vector<1x128xf32>
      %83 = arith.mulf %79, %79 : vector<1x128xf32>
      %84 = arith.subf %82, %83 : vector<1x128xf32>
      %cst_86 = arith.constant 9.99999974E-6 : f32
      %85 = vector.broadcast %cst_86 : f32 to vector<1x128xf32>
      %86 = arith.addf %84, %85 : vector<1x128xf32>
      %87 = math.rsqrt %86 : vector<1x128xf32>
      %c0_87 = arith.constant 0 : index
      %c0_88 = arith.constant 0 : index
      %88 = vector.load %arg6[%c0_87, %c0_88] : memref<1x128xf32, #tpu.memory_space<vmem>>, vector<1x128xf32>
      %89 = arith.mulf %87, %88 : vector<1x128xf32>
      %c0_89 = arith.constant 0 : index
      %c0_90 = arith.constant 0 : index
      %90 = vector.load %arg12[%c0_89, %c0_90] : memref<1x128xf32, #tpu.memory_space<vmem>>, vector<1x128xf32>
      tpu.vector_store %arg12[%c0_89, %c0_90], %89 {strides = array<i32>} : memref<1x128xf32, #tpu.memory_space<vmem>>, vector<1x128xf32>,
      %c0_91 = arith.constant 0 : index
      %c0_92 = arith.constant 0 : index
      %91 = vector.load %arg7[%c0_91, %c0_92] : memref<1x128xf32, #tpu.memory_space<vmem>>, vector<1x128xf32>
      %92 = arith.mulf %79, %89 : vector<1x128xf32>
      %93 = arith.subf %91, %92 : vector<1x128xf32>
      %c0_93 = arith.constant 0 : index
      %c0_94 = arith.constant 0 : index
      %94 = vector.load %arg13[%c0_93, %c0_94] : memref<1x128xf32, #tpu.memory_space<vmem>>, vector<1x128xf32>
      tpu.vector_store %arg13[%c0_93, %c0_94], %93 {strides = array<i32>} : memref<1x128xf32, #tpu.memory_space<vmem>>, vector<1x128xf32>,
    } else {
    }
    return
  }
  func.func @transform_0(%arg0: i32) -> (i32, i32, i32, i32) {
    %c0_i32 = arith.constant 0 : i32
    %c0_i32_0 = arith.constant 0 : i32
    %c0_i32_1 = arith.constant 0 : i32
    %c0_i32_2 = arith.constant 0 : i32
    return %arg0, %c0_i32, %c0_i32_0, %c0_i32_1 : i32, i32, i32, i32
  }
  func.func @transform_1(%arg0: i32) -> (i32, i32) {
    %c0_i32 = arith.constant 0 : i32
    %c0_i32_0 = arith.constant 0 : i32
    %c0_i32_1 = arith.constant 0 : i32
    return %c0_i32, %c0_i32_0 : i32, i32
  }
  func.func @transform_2(%arg0: i32) -> (i32, i32) {
    %c0_i32 = arith.constant 0 : i32
    %c0_i32_0 = arith.constant 0 : i32
    %c0_i32_1 = arith.constant 0 : i32
    return %c0_i32, %c0_i32_0 : i32, i32
  }
  func.func @transform_3(%arg0: i32) -> (i32, i32) {
    %c0_i32 = arith.constant 0 : i32
    %c0_i32_0 = arith.constant 0 : i32
    %c0_i32_1 = arith.constant 0 : i32
    return %c0_i32, %c0_i32_0 : i32, i32
  }
  func.func @transform_4(%arg0: i32) -> (i32, i32) {
    %c0_i32 = arith.constant 0 : i32
    %c0_i32_0 = arith.constant 0 : i32
    %c0_i32_1 = arith.constant 0 : i32
    return %c0_i32, %c0_i32_0 : i32, i32
  }
  func.func @transform_5(%arg0: i32) -> (i32, i32) {
    %c0_i32 = arith.constant 0 : i32
    %c0_i32_0 = arith.constant 0 : i32
    %c0_i32_1 = arith.constant 0 : i32
    return %c0_i32, %c0_i32_0 : i32, i32
  }
  func.func @transform_6(%arg0: i32) -> (i32, i32) {
    %c0_i32 = arith.constant 0 : i32
    %c0_i32_0 = arith.constant 0 : i32
    %c0_i32_1 = arith.constant 0 : i32
    return %c0_i32, %c0_i32_0 : i32, i32
  }
  func.func @transform_7(%arg0: i32) -> (i32, i32, i32, i32) {
    %c0_i32 = arith.constant 0 : i32
    %c0_i32_0 = arith.constant 0 : i32
    %c0_i32_1 = arith.constant 0 : i32
    %c0_i32_2 = arith.constant 0 : i32
    return %arg0, %c0_i32, %c0_i32_0, %c0_i32_1 : i32, i32, i32, i32
  }
  func.func @transform_8(%arg0: i32) -> (i32, i32) {
    %c0_i32 = arith.constant 0 : i32
    %c0_i32_0 = arith.constant 0 : i32
    %c0_i32_1 = arith.constant 0 : i32
    return %c0_i32, %c0_i32_0 : i32, i32
  }
  func.func @transform_9(%arg0: i32) -> (i32, i32) {
    %c0_i32 = arith.constant 0 : i32
    %c0_i32_0 = arith.constant 0 : i32
    %c0_i32_1 = arith.constant 0 : i32
    return %c0_i32, %c0_i32_0 : i32, i32
  }
  func.func @transform_10(%arg0: i32) -> (i32, i32, i32, i32) {
    %c0_i32 = arith.constant 0 : i32
    %c0_i32_0 = arith.constant 0 : i32
    %c0_i32_1 = arith.constant 0 : i32
    %c0_i32_2 = arith.constant 0 : i32
    return %arg0, %c0_i32, %c0_i32_0, %c0_i32_1 : i32, i32, i32, i32
  }
  func.func @transform_11(%arg0: i32) -> (i32, i32) {
    %c0_i32 = arith.constant 0 : i32
    %c0_i32_0 = arith.constant 0 : i32
    %c0_i32_1 = arith.constant 0 : i32
    return %c0_i32, %c0_i32_0 : i32, i32
  }
  func.func @transform_12(%arg0: i32) -> (i32, i32) {
    %c0_i32 = arith.constant 0 : i32
    %c0_i32_0 = arith.constant 0 : i32
    %c0_i32_1 = arith.constant 0 : i32
    return %c0_i32, %c0_i32_0 : i32, i32
  }
}

module attributes {stable_mosaic.version = 11 : i64} {
  func.func @_mid_kernel(%arg0: i32, %arg1: memref<1x8x8x128xbf16, #tpu.memory_space<vmem>>, %arg2: memref<1x128xf32, #tpu.memory_space<vmem>>, %arg3: memref<1x128xf32, #tpu.memory_space<vmem>>, %arg4: memref<1152x128xbf16, #tpu.memory_space<vmem>>, %arg5: memref<1x128xf32, #tpu.memory_space<vmem>>, %arg6: memref<1x128xf32, #tpu.memory_space<vmem>>, %arg7: memref<1x8x8x128xbf16, #tpu.memory_space<vmem>>, %arg8: memref<1x128xf32, #tpu.memory_space<vmem>>, %arg9: memref<1x128xf32, #tpu.memory_space<vmem>>, %arg10: memref<10x16x128xbf16, #tpu.memory_space<vmem>>, %arg11: memref<1x128xf32, #tpu.memory_space<vmem>>, %arg12: memref<1x128xf32, #tpu.memory_space<vmem>>) attributes {dimension_semantics = [#tpu.dimension_semantics<arbitrary>], iteration_bounds = array<i64: 2>, scalar_prefetch = 0 : i64, scratch_operands = 3 : i64, tpu.core_type = #tpu.core_type<tc>, window_params = [{transform_indices = @transform_0, window_bounds = array<i64: 1, 8, 8, 128>}, {pipeline_mode = #tpu.pipeline_mode<synchronous>, transform_indices = @transform_1, window_bounds = array<i64: 1, 128>}, {pipeline_mode = #tpu.pipeline_mode<synchronous>, transform_indices = @transform_2, window_bounds = array<i64: 1, 128>}, {pipeline_mode = #tpu.pipeline_mode<synchronous>, transform_indices = @transform_3, window_bounds = array<i64: 1152, 128>}, {pipeline_mode = #tpu.pipeline_mode<synchronous>, transform_indices = @transform_4, window_bounds = array<i64: 1, 128>}, {pipeline_mode = #tpu.pipeline_mode<synchronous>, transform_indices = @transform_5, window_bounds = array<i64: 1, 128>}, {transform_indices = @transform_6, window_bounds = array<i64: 1, 8, 8, 128>}, {pipeline_mode = #tpu.pipeline_mode<synchronous>, transform_indices = @transform_7, window_bounds = array<i64: 1, 128>}, {pipeline_mode = #tpu.pipeline_mode<synchronous>, transform_indices = @transform_8, window_bounds = array<i64: 1, 128>}]} {
    %c0_i32 = arith.constant 0 : i32
    %0 = arith.cmpi eq, %arg0, %c0_i32 : i32
    %1 = arith.extui %0 : i1 to i32
    %c0_i32_0 = arith.constant 0 : i32
    %2 = arith.cmpi ne, %1, %c0_i32_0 : i32
    scf.if %2 {
      %cst_54 = arith.constant 0.000000e+00 : bf16
      %48 = vector.broadcast %cst_54 : bf16 to vector<10x16x128xbf16>
      %c0_55 = arith.constant 0 : index
      %c0_56 = arith.constant 0 : index
      %c0_57 = arith.constant 0 : index
      %49 = vector.load %arg10[%c0_55, %c0_56, %c0_57] : memref<10x16x128xbf16, #tpu.memory_space<vmem>>, vector<10x16x128xbf16>
      tpu.vector_store %arg10[%c0_55, %c0_56, %c0_57], %48 {strides = array<i32>} : memref<10x16x128xbf16, #tpu.memory_space<vmem>>, vector<10x16x128xbf16>,
      %cst_58 = arith.constant 0.000000e+00 : f32
      %50 = vector.broadcast %cst_58 : f32 to vector<1x128xf32>
      %c0_59 = arith.constant 0 : index
      %c0_60 = arith.constant 0 : index
      %51 = vector.load %arg11[%c0_59, %c0_60] : memref<1x128xf32, #tpu.memory_space<vmem>>, vector<1x128xf32>
      tpu.vector_store %arg11[%c0_59, %c0_60], %50 {strides = array<i32>} : memref<1x128xf32, #tpu.memory_space<vmem>>, vector<1x128xf32>,
      %cst_61 = arith.constant 0.000000e+00 : f32
      %52 = vector.broadcast %cst_61 : f32 to vector<1x128xf32>
      %c0_62 = arith.constant 0 : index
      %c0_63 = arith.constant 0 : index
      %53 = vector.load %arg12[%c0_62, %c0_63] : memref<1x128xf32, #tpu.memory_space<vmem>>, vector<1x128xf32>
      tpu.vector_store %arg12[%c0_62, %c0_63], %52 {strides = array<i32>} : memref<1x128xf32, #tpu.memory_space<vmem>>, vector<1x128xf32>,
    } else {
    }
    %c0 = arith.constant 0 : index
    %c0_1 = arith.constant 0 : index
    %c0_2 = arith.constant 0 : index
    %c0_3 = arith.constant 0 : index
    %3 = vector.load %arg1[%c0, %c0_1, %c0_2, %c0_3] : memref<1x8x8x128xbf16, #tpu.memory_space<vmem>>, vector<1x8x8x128xbf16>
    %4 = vector.shape_cast %3 : vector<1x8x8x128xbf16> to vector<8x8x128xbf16>
    %5 = arith.extf %4 : vector<8x8x128xbf16> to vector<8x8x128xf32>
    %c0_4 = arith.constant 0 : index
    %c0_5 = arith.constant 0 : index
    %6 = vector.load %arg2[%c0_4, %c0_5] : memref<1x128xf32, #tpu.memory_space<vmem>>, vector<1x128xf32>
    %7 = vector.shape_cast %6 : vector<1x128xf32> to vector<1x1x128xf32>
    %8 = vector.broadcast %7 : vector<1x1x128xf32> to vector<8x8x128xf32>
    %9 = arith.mulf %5, %8 : vector<8x8x128xf32>
    %c0_6 = arith.constant 0 : index
    %c0_7 = arith.constant 0 : index
    %10 = vector.load %arg3[%c0_6, %c0_7] : memref<1x128xf32, #tpu.memory_space<vmem>>, vector<1x128xf32>
    %11 = vector.shape_cast %10 : vector<1x128xf32> to vector<1x1x128xf32>
    %12 = vector.broadcast %11 : vector<1x1x128xf32> to vector<8x8x128xf32>
    %13 = arith.addf %9, %12 : vector<8x8x128xf32>
    %cst = arith.constant 0.000000e+00 : f32
    %14 = vector.broadcast %cst : f32 to vector<8x8x128xf32>
    %15 = arith.maximumf %13, %14 : vector<8x8x128xf32>
    %16 = arith.truncf %15 : vector<8x8x128xf32> to vector<8x8x128xbf16>
    %c1 = arith.constant 1 : index
    %c1_8 = arith.constant 1 : index
    %c0_9 = arith.constant 0 : index
    %17 = vector.load %arg10[%c1, %c1_8, %c0_9] : memref<10x16x128xbf16, #tpu.memory_space<vmem>>, vector<8x8x128xbf16>
    tpu.vector_store %arg10[%c1, %c1_8, %c0_9], %16 {strides = array<i32>} : memref<10x16x128xbf16, #tpu.memory_space<vmem>>, vector<8x8x128xbf16>,
    %c0_10 = arith.constant 0 : index
    %c0_11 = arith.constant 0 : index
    %c0_12 = arith.constant 0 : index
    %18 = vector.load %arg10[%c0_10, %c0_11, %c0_12] : memref<10x16x128xbf16, #tpu.memory_space<vmem>>, vector<8x8x128xbf16>
    %c0_13 = arith.constant 0 : index
    %c1_14 = arith.constant 1 : index
    %c0_15 = arith.constant 0 : index
    %19 = vector.load %arg10[%c0_13, %c1_14, %c0_15] : memref<10x16x128xbf16, #tpu.memory_space<vmem>>, vector<8x8x128xbf16>
    %c0_16 = arith.constant 0 : index
    %c2 = arith.constant 2 : index
    %c0_17 = arith.constant 0 : index
    %20 = vector.load %arg10[%c0_16, %c2, %c0_17] : memref<10x16x128xbf16, #tpu.memory_space<vmem>>, vector<8x8x128xbf16>
    %c1_18 = arith.constant 1 : index
    %c0_19 = arith.constant 0 : index
    %c0_20 = arith.constant 0 : index
    %21 = vector.load %arg10[%c1_18, %c0_19, %c0_20] : memref<10x16x128xbf16, #tpu.memory_space<vmem>>, vector<8x8x128xbf16>
    %c1_21 = arith.constant 1 : index
    %c1_22 = arith.constant 1 : index
    %c0_23 = arith.constant 0 : index
    %22 = vector.load %arg10[%c1_21, %c1_22, %c0_23] : memref<10x16x128xbf16, #tpu.memory_space<vmem>>, vector<8x8x128xbf16>
    %c1_24 = arith.constant 1 : index
    %c2_25 = arith.constant 2 : index
    %c0_26 = arith.constant 0 : index
    %23 = vector.load %arg10[%c1_24, %c2_25, %c0_26] : memref<10x16x128xbf16, #tpu.memory_space<vmem>>, vector<8x8x128xbf16>
    %c2_27 = arith.constant 2 : index
    %c0_28 = arith.constant 0 : index
    %c0_29 = arith.constant 0 : index
    %24 = vector.load %arg10[%c2_27, %c0_28, %c0_29] : memref<10x16x128xbf16, #tpu.memory_space<vmem>>, vector<8x8x128xbf16>
    %c2_30 = arith.constant 2 : index
    %c1_31 = arith.constant 1 : index
    %c0_32 = arith.constant 0 : index
    %25 = vector.load %arg10[%c2_30, %c1_31, %c0_32] : memref<10x16x128xbf16, #tpu.memory_space<vmem>>, vector<8x8x128xbf16>
    %c2_33 = arith.constant 2 : index
    %c2_34 = arith.constant 2 : index
    %c0_35 = arith.constant 0 : index
    %26 = vector.load %arg10[%c2_33, %c2_34, %c0_35] : memref<10x16x128xbf16, #tpu.memory_space<vmem>>, vector<8x8x128xbf16>
    %27 = tpu.concatenate %18, %19, %20, %21, %22, %23, %24, %25, %26 in 2 : vector<8x8x128xbf16>, vector<8x8x128xbf16>, vector<8x8x128xbf16>, vector<8x8x128xbf16>, vector<8x8x128xbf16>, vector<8x8x128xbf16>, vector<8x8x128xbf16>, vector<8x8x128xbf16>, vector<8x8x128xbf16> -> vector<8x8x1152xbf16>
    %28 = vector.shape_cast %27 : vector<8x8x1152xbf16> to vector<64x1152xbf16>
    %c0_36 = arith.constant 0 : index
    %c0_37 = arith.constant 0 : index
    %29 = vector.load %arg4[%c0_36, %c0_37] : memref<1152x128xbf16, #tpu.memory_space<vmem>>, vector<1152x128xbf16>
    %cst_38 = arith.constant dense<0.000000e+00> : vector<64x128xf32>
    %30 = tpu.matmul %28, %29, %cst_38 {dimension_numbers = #tpu.dot_dimension_numbers<[1], [0], [0], [1], [0, 0, 1, 1], [], []>} : vector<64x1152xbf16>, vector<1152x128xbf16>, vector<64x128xf32> -> vector<64x128xf32>
    %31 = vector.shape_cast %30 : vector<64x128xf32> to vector<1x8x8x128xf32>
    %32 = arith.truncf %31 : vector<1x8x8x128xf32> to vector<1x8x8x128xbf16>
    %c0_39 = arith.constant 0 : index
    %c0_40 = arith.constant 0 : index
    %c0_41 = arith.constant 0 : index
    %c0_42 = arith.constant 0 : index
    %33 = vector.load %arg7[%c0_39, %c0_40, %c0_41, %c0_42] : memref<1x8x8x128xbf16, #tpu.memory_space<vmem>>, vector<1x8x8x128xbf16>
    tpu.vector_store %arg7[%c0_39, %c0_40, %c0_41, %c0_42], %32 {strides = array<i32>} : memref<1x8x8x128xbf16, #tpu.memory_space<vmem>>, vector<1x8x8x128xbf16>,
    %c0_43 = arith.constant 0 : index
    %c0_44 = arith.constant 0 : index
    %34 = vector.load %arg11[%c0_43, %c0_44] : memref<1x128xf32, #tpu.memory_space<vmem>>, vector<1x128xf32>
    %cst_45 = arith.constant dense<0.000000e+00> : vector<128xf32>
    %35 = vector.multi_reduction <add>, %30, %cst_45 [0] : vector<64x128xf32> to vector<128xf32>
    %36 = vector.shape_cast %35 : vector<128xf32> to vector<1x128xf32>
    %37 = arith.addf %34, %36 : vector<1x128xf32>
    %c0_46 = arith.constant 0 : index
    %c0_47 = arith.constant 0 : index
    %38 = vector.load %arg11[%c0_46, %c0_47] : memref<1x128xf32, #tpu.memory_space<vmem>>, vector<1x128xf32>
    tpu.vector_store %arg11[%c0_46, %c0_47], %37 {strides = array<i32>} : memref<1x128xf32, #tpu.memory_space<vmem>>, vector<1x128xf32>,
    %c0_48 = arith.constant 0 : index
    %c0_49 = arith.constant 0 : index
    %39 = vector.load %arg12[%c0_48, %c0_49] : memref<1x128xf32, #tpu.memory_space<vmem>>, vector<1x128xf32>
    %40 = arith.mulf %30, %30 : vector<64x128xf32>
    %cst_50 = arith.constant dense<0.000000e+00> : vector<128xf32>
    %41 = vector.multi_reduction <add>, %40, %cst_50 [0] : vector<64x128xf32> to vector<128xf32>
    %42 = vector.shape_cast %41 : vector<128xf32> to vector<1x128xf32>
    %43 = arith.addf %39, %42 : vector<1x128xf32>
    %c0_51 = arith.constant 0 : index
    %c0_52 = arith.constant 0 : index
    %44 = vector.load %arg12[%c0_51, %c0_52] : memref<1x128xf32, #tpu.memory_space<vmem>>, vector<1x128xf32>
    tpu.vector_store %arg12[%c0_51, %c0_52], %43 {strides = array<i32>} : memref<1x128xf32, #tpu.memory_space<vmem>>, vector<1x128xf32>,
    %c1_i32 = arith.constant 1 : i32
    %45 = arith.cmpi eq, %arg0, %c1_i32 : i32
    %46 = arith.extui %45 : i1 to i32
    %c0_i32_53 = arith.constant 0 : i32
    %47 = arith.cmpi ne, %46, %c0_i32_53 : i32
    scf.if %47 {
      %c0_54 = arith.constant 0 : index
      %c0_55 = arith.constant 0 : index
      %48 = vector.load %arg11[%c0_54, %c0_55] : memref<1x128xf32, #tpu.memory_space<vmem>>, vector<1x128xf32>
      %cst_56 = arith.constant 1.280000e+02 : f32
      %49 = vector.broadcast %cst_56 : f32 to vector<1x128xf32>
      %50 = arith.divf %48, %49 : vector<1x128xf32>
      %c0_57 = arith.constant 0 : index
      %c0_58 = arith.constant 0 : index
      %51 = vector.load %arg12[%c0_57, %c0_58] : memref<1x128xf32, #tpu.memory_space<vmem>>, vector<1x128xf32>
      %cst_59 = arith.constant 1.280000e+02 : f32
      %52 = vector.broadcast %cst_59 : f32 to vector<1x128xf32>
      %53 = arith.divf %51, %52 : vector<1x128xf32>
      %54 = arith.mulf %50, %50 : vector<1x128xf32>
      %55 = arith.subf %53, %54 : vector<1x128xf32>
      %cst_60 = arith.constant 9.99999974E-6 : f32
      %56 = vector.broadcast %cst_60 : f32 to vector<1x128xf32>
      %57 = arith.addf %55, %56 : vector<1x128xf32>
      %58 = math.rsqrt %57 : vector<1x128xf32>
      %c0_61 = arith.constant 0 : index
      %c0_62 = arith.constant 0 : index
      %59 = vector.load %arg5[%c0_61, %c0_62] : memref<1x128xf32, #tpu.memory_space<vmem>>, vector<1x128xf32>
      %60 = arith.mulf %58, %59 : vector<1x128xf32>
      %c0_63 = arith.constant 0 : index
      %c0_64 = arith.constant 0 : index
      %61 = vector.load %arg8[%c0_63, %c0_64] : memref<1x128xf32, #tpu.memory_space<vmem>>, vector<1x128xf32>
      tpu.vector_store %arg8[%c0_63, %c0_64], %60 {strides = array<i32>} : memref<1x128xf32, #tpu.memory_space<vmem>>, vector<1x128xf32>,
      %c0_65 = arith.constant 0 : index
      %c0_66 = arith.constant 0 : index
      %62 = vector.load %arg6[%c0_65, %c0_66] : memref<1x128xf32, #tpu.memory_space<vmem>>, vector<1x128xf32>
      %63 = arith.mulf %50, %60 : vector<1x128xf32>
      %64 = arith.subf %62, %63 : vector<1x128xf32>
      %c0_67 = arith.constant 0 : index
      %c0_68 = arith.constant 0 : index
      %65 = vector.load %arg9[%c0_67, %c0_68] : memref<1x128xf32, #tpu.memory_space<vmem>>, vector<1x128xf32>
      tpu.vector_store %arg9[%c0_67, %c0_68], %64 {strides = array<i32>} : memref<1x128xf32, #tpu.memory_space<vmem>>, vector<1x128xf32>,
    } else {
    }
    return
  }
  func.func @transform_0(%arg0: i32) -> (i32, i32, i32, i32) {
    %c0_i32 = arith.constant 0 : i32
    %c0_i32_0 = arith.constant 0 : i32
    %c0_i32_1 = arith.constant 0 : i32
    %c0_i32_2 = arith.constant 0 : i32
    return %arg0, %c0_i32, %c0_i32_0, %c0_i32_1 : i32, i32, i32, i32
  }
  func.func @transform_1(%arg0: i32) -> (i32, i32) {
    %c0_i32 = arith.constant 0 : i32
    %c0_i32_0 = arith.constant 0 : i32
    %c0_i32_1 = arith.constant 0 : i32
    return %c0_i32, %c0_i32_0 : i32, i32
  }
  func.func @transform_2(%arg0: i32) -> (i32, i32) {
    %c0_i32 = arith.constant 0 : i32
    %c0_i32_0 = arith.constant 0 : i32
    %c0_i32_1 = arith.constant 0 : i32
    return %c0_i32, %c0_i32_0 : i32, i32
  }
  func.func @transform_3(%arg0: i32) -> (i32, i32) {
    %c0_i32 = arith.constant 0 : i32
    %c0_i32_0 = arith.constant 0 : i32
    %c0_i32_1 = arith.constant 0 : i32
    return %c0_i32, %c0_i32_0 : i32, i32
  }
  func.func @transform_4(%arg0: i32) -> (i32, i32) {
    %c0_i32 = arith.constant 0 : i32
    %c0_i32_0 = arith.constant 0 : i32
    %c0_i32_1 = arith.constant 0 : i32
    return %c0_i32, %c0_i32_0 : i32, i32
  }
  func.func @transform_5(%arg0: i32) -> (i32, i32) {
    %c0_i32 = arith.constant 0 : i32
    %c0_i32_0 = arith.constant 0 : i32
    %c0_i32_1 = arith.constant 0 : i32
    return %c0_i32, %c0_i32_0 : i32, i32
  }
  func.func @transform_6(%arg0: i32) -> (i32, i32, i32, i32) {
    %c0_i32 = arith.constant 0 : i32
    %c0_i32_0 = arith.constant 0 : i32
    %c0_i32_1 = arith.constant 0 : i32
    %c0_i32_2 = arith.constant 0 : i32
    return %arg0, %c0_i32, %c0_i32_0, %c0_i32_1 : i32, i32, i32, i32
  }
  func.func @transform_7(%arg0: i32) -> (i32, i32) {
    %c0_i32 = arith.constant 0 : i32
    %c0_i32_0 = arith.constant 0 : i32
    %c0_i32_1 = arith.constant 0 : i32
    return %c0_i32, %c0_i32_0 : i32, i32
  }
  func.func @transform_8(%arg0: i32) -> (i32, i32) {
    %c0_i32 = arith.constant 0 : i32
    %c0_i32_0 = arith.constant 0 : i32
    %c0_i32_1 = arith.constant 0 : i32
    return %c0_i32, %c0_i32_0 : i32, i32
  }
}

module attributes {stable_mosaic.version = 11 : i64} {
  func.func @_combine_kernel(%arg0: i32, %arg1: memref<128x128xbf16, #tpu.memory_space<vmem>>, %arg2: memref<1x128xf32, #tpu.memory_space<vmem>>, %arg3: memref<1x128xf32, #tpu.memory_space<vmem>>, %arg4: memref<128x128xbf16, #tpu.memory_space<vmem>>, %arg5: memref<1x128xf32, #tpu.memory_space<vmem>>, %arg6: memref<1x128xf32, #tpu.memory_space<vmem>>, %arg7: memref<128x128xf32, #tpu.memory_space<vmem>>) attributes {dimension_semantics = [#tpu.dimension_semantics<parallel>], iteration_bounds = array<i64: 1>, scalar_prefetch = 0 : i64, scratch_operands = 0 : i64, tpu.core_type = #tpu.core_type<tc>, window_params = [{transform_indices = @transform_0, window_bounds = array<i64: 128, 128>}, {pipeline_mode = #tpu.pipeline_mode<synchronous>, transform_indices = @transform_1, window_bounds = array<i64: 1, 128>}, {pipeline_mode = #tpu.pipeline_mode<synchronous>, transform_indices = @transform_2, window_bounds = array<i64: 1, 128>}, {transform_indices = @transform_3, window_bounds = array<i64: 128, 128>}, {pipeline_mode = #tpu.pipeline_mode<synchronous>, transform_indices = @transform_4, window_bounds = array<i64: 1, 128>}, {pipeline_mode = #tpu.pipeline_mode<synchronous>, transform_indices = @transform_5, window_bounds = array<i64: 1, 128>}, {transform_indices = @transform_6, window_bounds = array<i64: 128, 128>}]} {
    %c0 = arith.constant 0 : index
    %c0_0 = arith.constant 0 : index
    %0 = vector.load %arg1[%c0, %c0_0] : memref<128x128xbf16, #tpu.memory_space<vmem>>, vector<128x128xbf16>
    %1 = arith.extf %0 : vector<128x128xbf16> to vector<128x128xf32>
    %c0_1 = arith.constant 0 : index
    %c0_2 = arith.constant 0 : index
    %2 = vector.load %arg2[%c0_1, %c0_2] : memref<1x128xf32, #tpu.memory_space<vmem>>, vector<1x128xf32>
    %3 = vector.broadcast %2 : vector<1x128xf32> to vector<128x128xf32>
    %4 = arith.mulf %1, %3 : vector<128x128xf32>
    %c0_3 = arith.constant 0 : index
    %c0_4 = arith.constant 0 : index
    %5 = vector.load %arg3[%c0_3, %c0_4] : memref<1x128xf32, #tpu.memory_space<vmem>>, vector<1x128xf32>
    %6 = vector.broadcast %5 : vector<1x128xf32> to vector<128x128xf32>
    %7 = arith.addf %4, %6 : vector<128x128xf32>
    %c0_5 = arith.constant 0 : index
    %c0_6 = arith.constant 0 : index
    %8 = vector.load %arg4[%c0_5, %c0_6] : memref<128x128xbf16, #tpu.memory_space<vmem>>, vector<128x128xbf16>
    %9 = arith.extf %8 : vector<128x128xbf16> to vector<128x128xf32>
    %c0_7 = arith.constant 0 : index
    %c0_8 = arith.constant 0 : index
    %10 = vector.load %arg5[%c0_7, %c0_8] : memref<1x128xf32, #tpu.memory_space<vmem>>, vector<1x128xf32>
    %11 = vector.broadcast %10 : vector<1x128xf32> to vector<128x128xf32>
    %12 = arith.mulf %9, %11 : vector<128x128xf32>
    %c0_9 = arith.constant 0 : index
    %c0_10 = arith.constant 0 : index
    %13 = vector.load %arg6[%c0_9, %c0_10] : memref<1x128xf32, #tpu.memory_space<vmem>>, vector<1x128xf32>
    %14 = vector.broadcast %13 : vector<1x128xf32> to vector<128x128xf32>
    %15 = arith.addf %12, %14 : vector<128x128xf32>
    %16 = arith.addf %7, %15 : vector<128x128xf32>
    %cst = arith.constant 0.000000e+00 : f32
    %17 = vector.broadcast %cst : f32 to vector<128x128xf32>
    %18 = arith.maximumf %16, %17 : vector<128x128xf32>
    %c0_11 = arith.constant 0 : index
    %c0_12 = arith.constant 0 : index
    %19 = vector.load %arg7[%c0_11, %c0_12] : memref<128x128xf32, #tpu.memory_space<vmem>>, vector<128x128xf32>
    tpu.vector_store %arg7[%c0_11, %c0_12], %18 {strides = array<i32>} : memref<128x128xf32, #tpu.memory_space<vmem>>, vector<128x128xf32>,
    return
  }
  func.func @transform_0(%arg0: i32) -> (i32, i32) {
    %c0_i32 = arith.constant 0 : i32
    %c0_i32_0 = arith.constant 0 : i32
    return %arg0, %c0_i32 : i32, i32
  }
  func.func @transform_1(%arg0: i32) -> (i32, i32) {
    %c0_i32 = arith.constant 0 : i32
    %c0_i32_0 = arith.constant 0 : i32
    %c0_i32_1 = arith.constant 0 : i32
    return %c0_i32, %c0_i32_0 : i32, i32
  }
  func.func @transform_2(%arg0: i32) -> (i32, i32) {
    %c0_i32 = arith.constant 0 : i32
    %c0_i32_0 = arith.constant 0 : i32
    %c0_i32_1 = arith.constant 0 : i32
    return %c0_i32, %c0_i32_0 : i32, i32
  }
  func.func @transform_3(%arg0: i32) -> (i32, i32) {
    %c0_i32 = arith.constant 0 : i32
    %c0_i32_0 = arith.constant 0 : i32
    return %arg0, %c0_i32 : i32, i32
  }
  func.func @transform_4(%arg0: i32) -> (i32, i32) {
    %c0_i32 = arith.constant 0 : i32
    %c0_i32_0 = arith.constant 0 : i32
    %c0_i32_1 = arith.constant 0 : i32
    return %c0_i32, %c0_i32_0 : i32, i32
  }
  func.func @transform_5(%arg0: i32) -> (i32, i32) {
    %c0_i32 = arith.constant 0 : i32
    %c0_i32_0 = arith.constant 0 : i32
    %c0_i32_1 = arith.constant 0 : i32
    return %c0_i32, %c0_i32_0 : i32, i32
  }
  func.func @transform_6(%arg0: i32) -> (i32, i32) {
    %c0_i32 = arith.constant 0 : i32
    %c0_i32_0 = arith.constant 0 : i32
    return %arg0, %c0_i32 : i32, i32
  }
}

</mosaic_0001>

<bundles_post_ra>
// kernel: basic_block_forward.5
= control target key start
LH: loop header
LB: loop body
LE: loop exit
PB: predicated region body
PF: predicated region fallthrough
CT: control target
= control target key end

     0   :  { %s528_s0 = inlined_call_operand.vmem [shape: bf16[128,128], index: 0, kind: input, shape index: {}]   ;;  %s529_s1 = inlined_call_operand.vmem [shape: f32[1,128], index: 1, kind: input, shape index: {}]   ;;  %s530_s2 = inlined_call_operand.vmem [shape: f32[1,128], index: 2, kind: input, shape index: {}]   ;;  %s531_s3 = inlined_call_operand.vmem [shape: bf16[128,128], index: 3, kind: input, shape index: {}]   ;;  %s532_s4 = inlined_call_operand.vmem [shape: f32[1,128], index: 4, kind: input, shape index: {}]   ;;  %s533_s5 = inlined_call_operand.vmem [shape: f32[1,128], index: 5, kind: input, shape index: {}]   ;;  %s534_s6 = inlined_call_operand.vmem [shape: f32[128,128], index: 6, kind: output, shape index: {}]  }
   0x1   :  { %v236_v0 = vld [vmem:[%s528_s0] sm:$0xff]   ;;  %v299_v9 = vld [vmem:[%s528_s0 + $0x8] sm:$0xff]   ;;  %v300_v20 = vld [vmem:[%s528_s0 + $0x10] sm:$0xff]  }
   0x2   :  { %v354_v1 = vld [vmem:[%s529_s1] ss:$0 sm:$0xff]  ;;  %v237_v2 = vunpack.c.l.bf16 %v236_v0  ;;  %v238_v5 = vunpack.c.h.bf16 %v236_v0  ;;  %v306_v10 = vld [vmem:[%s531_s3 + $0x8] sm:$0xff]   ;;  %v241_v14 = vunpack.c.l.bf16 %v299_v9  ;;  %v242_v18 = vunpack.c.h.bf16 %v299_v9  ;;  %v307_v21 = vld [vmem:[%s531_s3 + $0x10] sm:$0xff]  }
   0x3   :  { %v268_v3 = vld [vmem:[%s531_s3] sm:$0xff]   ;;  %v273_v15 = vunpack.c.l.bf16 %v306_v10  ;;  %v274_v19 = vunpack.c.h.bf16 %v306_v10  ;;  %v245_v32 = vunpack.c.l.bf16 %v300_v20  ;;  %v277_v33 = vunpack.c.l.bf16 %v307_v21  ;;  %v301_v42 = vld [vmem:[%s528_s0 + $0x18] sm:$0xff]  }
   0x4   :  { %v362_v4 = vld [vmem:[%s532_s4] ss:$0 sm:$0xff]  ;;  %v269_v7 = vunpack.c.l.bf16 %v268_v3  ;;  %v270_v8 = vunpack.c.h.bf16 %v268_v3  ;;  %v62_v11 = vmul.f32 %v237_v2, %v354_v1  ;;  %v63_v13 = vmul.f32 %v238_v5, %v354_v1  ;;  %v308_v43 = vld [vmem:[%s531_s3 + $0x18] sm:$0xff]  }
   0x5   :  { %v367_v6 = vld [vmem:[%s530_s2] ss:$0 sm:$0xff]  ;;  %v64_v24 = vmul.f32 %v241_v14, %v354_v1  ;;  %v142_v25 = vmul.f32 %v273_v15, %v362_v4  ;;  %v65_v28 = vmul.f32 %v242_v18, %v354_v1  ;;  %v143_v29 = vmul.f32 %v274_v19, %v362_v4  ;;  %v303_v14 = vld [vmem:[%s528_s0 + $0x28] sm:$0xff]  }
   0x6   :  { %v379_v12 = vld [vmem:[%s533_s5] ss:$0 sm:$0xff]  ;;  %v140_v16 = vmul.f32 %v269_v7, %v362_v4  ;;  %v141_v17 = vmul.f32 %v270_v8, %v362_v4  ;;  %v85_v22 = vadd.f32 %v367_v6, %v62_v11  ;;  %v86_v23 = vadd.f32 %v367_v6, %v63_v13  ;;  %v310_v19 = vld [vmem:[%s531_s3 + $0x28] sm:$0xff]  }
   0x7   :  { %v87_v30 = vadd.f32 %v367_v6, %v64_v24  ;;  %v165_v31 = vadd.f32 %v379_v12, %v142_v25  ;;  %v88_v36 = vadd.f32 %v367_v6, %v65_v28  ;;  %v166_v37 = vadd.f32 %v379_v12, %v143_v29  ;;  %v302_v52 = vld [vmem:[%s528_s0 + $0x20] sm:$0xff]  }
   0x8   :  { %v163_v26 = vadd.f32 %v379_v12, %v140_v16  ;;  %v164_v27 = vadd.f32 %v379_v12, %v141_v17  ;;  %v66_v39 = vmul.f32 %v245_v32, %v354_v1  ;;  %v144_v40 = vmul.f32 %v277_v33, %v362_v4  ;;  %v309_v57 = vld [vmem:[%s531_s3 + $0x20] sm:$0xff]   ;;  %v304_v32 = vld [vmem:[%s528_s0 + $0x30] sm:$0xff]  }
   0x9   :  { %v181_v38 = vadd.f32 %v165_v31, %v87_v30  ;;  %v246_v41 = vunpack.c.h.bf16 %v300_v20  ;;  %v182_v46 = vadd.f32 %v166_v37, %v88_v36  ;;  %v278_v47 = vunpack.c.h.bf16 %v307_v21  ;;  %v311_v33 = vld [vmem:[%s531_s3 + $0x30] sm:$0xff]  }
   0xa   :  { %v179_v34 = vadd.f32 %v163_v26, %v85_v22  ;;  %v180_v35 = vadd.f32 %v164_v27, %v86_v23  ;;  %v89_v49 = vadd.f32 %v367_v6, %v66_v39  ;;  %v167_v50 = vadd.f32 %v379_v12, %v144_v40 }
   0xb   :  { %v197_v48 = vmax.f32 %v181_v38, 0.0  ;;  %v67_v51 = vmul.f32 %v246_v41, %v354_v1  ;;  %v198_v53 = vmax.f32 %v182_v46, 0.0  ;;  %v145_v54 = vmul.f32 %v278_v47, %v362_v4  ;;  %v305_v46 = vld [vmem:[%s528_s0 + $0x38] sm:$0xff]  }
   0xc   :  { %v195_v44 = vmax.f32 %v179_v34, 0.0  ;;  %v196_v45 = vmax.f32 %v180_v35, 0.0  ;;  %v249_v55 = vunpack.c.l.bf16 %v301_v42  ;;  %v281_v56 = vunpack.c.l.bf16 %v308_v43 }
   0xd   :  { %213 = vst [vmem:[%s534_s6 + $0x10] sm:$0xff] %v197_v48  ;;  %v183_v58 = vadd.f32 %v167_v50, %v89_v49  ;;  %v90_v59 = vadd.f32 %v367_v6, %v67_v51  ;;  %v250_v60 = vunpack.c.h.bf16 %v301_v42  ;;  %v282_v61 = vunpack.c.h.bf16 %v308_v43  ;;  %214 = vst [vmem:[%s534_s6 + $0x18] sm:$0xff] %v198_v53 }
   0xe   :  { %211 = vst [vmem:[%s534_s6] sm:$0xff] %v195_v44  ;;  %212 = vst [vmem:[%s534_s6 + $0x8] sm:$0xff] %v196_v45  ;;  %v168_v62 = vadd.f32 %v379_v12, %v145_v54  ;;  %v68_v63 = vmul.f32 %v249_v55, %v354_v1  ;;  %v146_v0 = vmul.f32 %v281_v56, %v362_v4  ;;  %v253_v2 = vunpack.c.l.bf16 %v302_v52  ;;  %v312_v55 = vld [vmem:[%s531_s3 + $0x38] sm:$0xff]  }
   0xf   :  { %v199_v3 = vmax.f32 %v183_v58, 0.0  ;;  %v69_v5 = vmul.f32 %v250_v60, %v354_v1  ;;  %v147_v7 = vmul.f32 %v282_v61, %v362_v4  ;;  %v285_v8 = vunpack.c.l.bf16 %v309_v57 }
  0x10   :  { %v184_v9 = vadd.f32 %v168_v62, %v90_v59  ;;  %v91_v10 = vadd.f32 %v367_v6, %v68_v63  ;;  %v169_v11 = vadd.f32 %v379_v12, %v146_v0  ;;  %v70_v13 = vmul.f32 %v253_v2, %v354_v1 }
  0x11   :  { %215 = vst [vmem:[%s534_s6 + $0x20] sm:$0xff] %v199_v3  ;;  %v92_v15 = vadd.f32 %v367_v6, %v69_v5  ;;  %v170_v16 = vadd.f32 %v379_v12, %v147_v7  ;;  %v148_v17 = vmul.f32 %v285_v8, %v362_v4  ;;  %v254_v18 = vunpack.c.h.bf16 %v302_v52 }
  0x12   :  { %v200_v20 = vmax.f32 %v184_v9, 0.0  ;;  %v185_v21 = vadd.f32 %v169_v11, %v91_v10  ;;  %v93_v22 = vadd.f32 %v367_v6, %v70_v13  ;;  %v286_v23 = vunpack.c.h.bf16 %v309_v57 }
  0x13   :  { %v186_v24 = vadd.f32 %v170_v16, %v92_v15  ;;  %v171_v25 = vadd.f32 %v379_v12, %v148_v17  ;;  %v71_v26 = vmul.f32 %v254_v18, %v354_v1  ;;  %v257_v27 = vunpack.c.l.bf16 %v303_v14 }
  0x14   :  { %216 = vst [vmem:[%s534_s6 + $0x28] sm:$0xff] %v200_v20  ;;  %v201_v28 = vmax.f32 %v185_v21, 0.0  ;;  %v149_v29 = vmul.f32 %v286_v23, %v362_v4  ;;  %v289_v30 = vunpack.c.l.bf16 %v310_v19  ;;  %v258_v31 = vunpack.c.h.bf16 %v303_v14 }
  0x15   :  { %v202_v34 = vmax.f32 %v186_v24, 0.0  ;;  %v187_v35 = vadd.f32 %v171_v25, %v93_v22  ;;  %v94_v36 = vadd.f32 %v367_v6, %v71_v26  ;;  %v72_v37 = vmul.f32 %v257_v27, %v354_v1 }
  0x16   :  { %217 = vst [vmem:[%s534_s6 + $0x30] sm:$0xff] %v201_v28  ;;  %v172_v38 = vadd.f32 %v379_v12, %v149_v29  ;;  %v150_v39 = vmul.f32 %v289_v30, %v362_v4  ;;  %v73_v40 = vmul.f32 %v258_v31, %v354_v1  ;;  %v290_v41 = vunpack.c.h.bf16 %v310_v19 }
  0x17   :  { %218 = vst [vmem:[%s534_s6 + $0x38] sm:$0xff] %v202_v34  ;;  %v203_v42 = vmax.f32 %v187_v35, 0.0  ;;  %v95_v43 = vadd.f32 %v367_v6, %v72_v37  ;;  %v261_v44 = vunpack.c.l.bf16 %v304_v32  ;;  %v293_v45 = vunpack.c.l.bf16 %v311_v33 }
  0x18   :  { %v188_v47 = vadd.f32 %v172_v38, %v94_v36  ;;  %v173_v48 = vadd.f32 %v379_v12, %v150_v39  ;;  %v96_v49 = vadd.f32 %v367_v6, %v73_v40  ;;  %v151_v50 = vmul.f32 %v290_v41, %v362_v4 }
  0x19   :  { %219 = vst [vmem:[%s534_s6 + $0x40] sm:$0xff] %v203_v42  ;;  %v74_v51 = vmul.f32 %v261_v44, %v354_v1  ;;  %v152_v52 = vmul.f32 %v293_v45, %v362_v4  ;;  %v262_v53 = vunpack.c.h.bf16 %v304_v32  ;;  %v294_v54 = vunpack.c.h.bf16 %v311_v33 }
  0x1a   :  { %v204_v56 = vmax.f32 %v188_v47, 0.0  ;;  %v189_v57 = vadd.f32 %v173_v48, %v95_v43  ;;  %v174_v58 = vadd.f32 %v379_v12, %v151_v50  ;;  %v265_v59 = vunpack.c.l.bf16 %v305_v46 }
  0x1b   :  { %v97_v60 = vadd.f32 %v367_v6, %v74_v51  ;;  %v175_v61 = vadd.f32 %v379_v12, %v152_v52  ;;  %v75_v62 = vmul.f32 %v262_v53, %v354_v1  ;;  %v153_v63 = vmul.f32 %v294_v54, %v362_v4 }
  0x1c   :  { %220 = vst [vmem:[%s534_s6 + $0x48] sm:$0xff] %v204_v56  ;;  %v205_v0 = vmax.f32 %v189_v57, 0.0  ;;  %v190_v2 = vadd.f32 %v174_v58, %v96_v49  ;;  %v76_v3 = vmul.f32 %v265_v59, %v354_v1  ;;  %v297_v5 = vunpack.c.l.bf16 %v312_v55 }
  0x1d   :  { %v191_v7 = vadd.f32 %v175_v61, %v97_v60  ;;  %v98_v8 = vadd.f32 %v367_v6, %v75_v62  ;;  %v176_v9 = vadd.f32 %v379_v12, %v153_v63  ;;  %v266_v10 = vunpack.c.h.bf16 %v305_v46 }
  0x1e   :  { %221 = vst [vmem:[%s534_s6 + $0x50] sm:$0xff] %v205_v0  ;;  %v206_v11 = vmax.f32 %v190_v2, 0.0  ;;  %v99_v13 = vadd.f32 %v367_v6, %v76_v3  ;;  %v154_v14 = vmul.f32 %v297_v5, %v362_v4  ;;  %v298_v15 = vunpack.c.h.bf16 %v312_v55 }
  0x1f   :  { %v207_v16 = vmax.f32 %v191_v7, 0.0  ;;  %v192_v17 = vadd.f32 %v176_v9, %v98_v8  ;;  %v77_v18 = vmul.f32 %v266_v10, %v354_v1 }
  0x20   :  { %222 = vst [vmem:[%s534_s6 + $0x58] sm:$0xff] %v206_v11  ;;  %v177_v19 = vadd.f32 %v379_v12, %v154_v14  ;;  %v155_v20 = vmul.f32 %v298_v15, %v362_v4 }
  0x21   :  { %223 = vst [vmem:[%s534_s6 + $0x60] sm:$0xff] %v207_v16  ;;  %v208_v21 = vmax.f32 %v192_v17, 0.0  ;;  %v100_v22 = vadd.f32 %v367_v6, %v77_v18 }
  0x22   :  { %v193_v23 = vadd.f32 %v177_v19, %v99_v13  ;;  %v178_v24 = vadd.f32 %v379_v12, %v155_v20 }
  0x23   :  { %224 = vst [vmem:[%s534_s6 + $0x68] sm:$0xff] %v208_v21 }
  0x24   :  { %v209_v1 = vmax.f32 %v193_v23, 0.0  ;;  %v194_v25 = vadd.f32 %v178_v24, %v100_v22 }
  0x26   :  { %225 = vst [vmem:[%s534_s6 + $0x70] sm:$0xff] %v209_v1  ;;  %v210_v4 = vmax.f32 %v194_v25, 0.0 }
  0x28   :  { %226 = vst [vmem:[%s534_s6 + $0x78] sm:$0xff] %v210_v4 }

// kernel: basic_block_forward.4
= control target key start
LH: loop header
LB: loop body
LE: loop exit
PB: predicated region body
PF: predicated region fallthrough
CT: control target
= control target key end

     0   :  { %s2503_s27 = smov 0   ;;  %s2832_s0 = inlined_call_operand.vmem [shape: bf16[2,8,8,128], index: 0, kind: input, shape index: {}]   ;;  %s2833_s1 = inlined_call_operand.vmem [shape: f32[1,128], index: 1, kind: input, shape index: {}]   ;;  %s2834_s2 = inlined_call_operand.vmem [shape: f32[1,128], index: 2, kind: input, shape index: {}]   ;;  %s2835_s3 = inlined_call_operand.vmem [shape: bf16[1152,128], index: 3, kind: input, shape index: {}]   ;;  %s2836_s4 = inlined_call_operand.vmem [shape: f32[1,128], index: 4, kind: input, shape index: {}]   ;;  %s2837_s5 = inlined_call_operand.vmem [shape: f32[1,128], index: 5, kind: input, shape index: {}]   ;;  %s2838_s6 = inlined_call_operand.vmem [shape: bf16[2,8,8,128], index: 6, kind: output, shape index: {0}]   ;;  %s2839_s7 = inlined_call_operand.vmem [shape: f32[1,128], index: 7, kind: output, shape index: {1}]   ;;  %s2840_s8 = inlined_call_operand.vmem [shape: f32[1,128], index: 8, kind: output, shape index: {2}]  }
   0x1 LB: > { %s2509_s28 = sadd.s32 4294967295, %s2454_s27   ;;  %p1977_p0 = scmp.ge.s32.totalorder %s2454_s27, 1  ;;  %s2454_s27 = sphi %s2503_s27, %s19_s27  }
   0x2   : > { %p257_p1 = scmp.lt.s32.totalorder %s2454_s27, 3 }
   0x4   : > { %p258_p2 = pnand %p1977_p0, %p257_p1 }
   0x5   : > { %p291_p3 = scmp.lt.s32.totalorder (!%p258_p2), %s2509_s28, 1  ;;  %p1982_p4 = scmp.ne.s32.totalorder (!%p258_p2), %s2509_s28, 0 }
   0x6   : > { %261 = sbr.rel (%p258_p2) target bundleno = 411 (0x19b), region = 44 }
   0xd   : > { %s292_s29 = scalar_select %p291_p3, %s2509_s28, 1 }
   0xe   : > { %305 = sbr.rel (%p1982_p4) target bundleno = 21 (0x15), region = 48  ;;  %v2456_v0 = vmov (!%p1982_p4), 0   ;;  %v2457_v1 = vmov (!%p1982_p4), 0.0  }
   0xf   : > { %s2096_s30 = sshll.u32 %s292_s29, 5  ;;  %306 = vst [vmem:[#allocation2] sm:$0xff] (!%p1982_p4), %v2456_v0  ;;  %307 = vst [vmem:[#allocation2 + $0x8] sm:$0xff] (!%p1982_p4), %v2456_v0 }
  0x10   : > { %s2518_s11 = scalar_lea.vmem %s2832_s0, %s2096_s30  ;;  %s2523_s14 = scalar_lea.vmem %s2838_s6, %s2096_s30  ;;  %308 = vst [vmem:[#allocation2 + $0x10] sm:$0xff] (!%p1982_p4), %v2456_v0  ;;  %309 = vst [vmem:[#allocation2 + $0x18] sm:$0xff] (!%p1982_p4), %v2456_v0 }
  0x11   : > { %310 = vst [vmem:[#allocation2 + $0x20] sm:$0xff] (!%p1982_p4), %v2456_v0  ;;  %311 = vst [vmem:[#allocation2 + $0x28] sm:$0xff] (!%p1982_p4), %v2456_v0 }
  0x12   : > { %312 = vst [vmem:[#allocation2 + $0x30] sm:$0xff] (!%p1982_p4), %v2456_v0  ;;  %313 = vst [vmem:[#allocation2 + $0x38] sm:$0xff] (!%p1982_p4), %v2456_v0 }
  0x13   : > { %314 = vst [vmem:[#allocation2 + $0x40] sm:$0xff] (!%p1982_p4), %v2456_v0  ;;  %315 = vst [vmem:[#allocation2 + $0x48] sm:$0xff] (!%p1982_p4), %v2456_v0 }
  0x14   : > { %316 = vst [vmem:[#allocation3] sm:$0x1] (!%p1982_p4), %v2457_v1  ;;  %317 = vst [vmem:[#allocation4] sm:$0x1] (!%p1982_p4), %v2457_v1 }
  0x15 PF: > { %v2362_v2 = vld [vmem:[%s2835_s3 + $0x40] sm:$0xff]   ;;  %v2366_v6 = vld [vmem:[%s2835_s3 + $0x48] sm:$0xff]   ;;  %v2370_v10 = vld [vmem:[%s2835_s3 + $0x50] sm:$0xff]   ;;  %vm445_vm0 = vcmask 1044480   ;;  %vm446_vm1 = vsmask.f32 4354 }
  0x16   : > { %v2363_v3 = vld [vmem:[%s2835_s3 + $0xc0] sm:$0xff]   ;;  %2140 = vmatprep.subr.bf16.mxu0 %v2362_v2  ;;  %v2367_v7 = vld [vmem:[%s2835_s3 + $0xc8] sm:$0xff]   ;;  %v2371_v11 = vld [vmem:[%s2835_s3 + $0xd0] sm:$0xff]   ;;  %p2093_p5 = scmp.ne.s32.totalorder %s2509_s28, 1 }
  0x17   : > { %v2364_v4 = vld [vmem:[%s2835_s3] sm:$0xff]   ;;  %2180 = vmatprep.subr.bf16.mxu1 %v2363_v3  ;;  %v2368_v8 = vld [vmem:[%s2835_s3 + $0x8] sm:$0xff]   ;;  %v2372_v12 = vld [vmem:[%s2835_s3 + $0x10] sm:$0xff]  }
  0x18   : > { %v2365_v5 = vld [vmem:[%s2835_s3 + $0x80] sm:$0xff]   ;;  %2141 = vmatpush3.bf16.msra.mxu0 %v2364_v4  ;;  %v2369_v9 = vld [vmem:[%s2835_s3 + $0x88] sm:$0xff]   ;;  %v2373_v13 = vld [vmem:[%s2835_s3 + $0x90] sm:$0xff]  }
  0x19   : > { %2181 = vmatpush3.bf16.msra.mxu1 %v2365_v5  ;;  %2142 = vmatprep.subr.bf16.mxu0 %v2366_v6  ;;  %v2374_v14 = vld [vmem:[%s2835_s3 + $0x58] sm:$0xff]   ;;  %v2378_v18 = vld [vmem:[%s2835_s3 + $0x60] sm:$0xff]   ;;  %v2382_v22 = vld [vmem:[%s2835_s3 + $0x68] sm:$0xff]  }
  0x1a   : > { %2182 = vmatprep.subr.bf16.mxu1 %v2367_v7  ;;  %v2375_v15 = vld [vmem:[%s2835_s3 + $0xd8] sm:$0xff]   ;;  %v2379_v19 = vld [vmem:[%s2835_s3 + $0xe0] sm:$0xff]   ;;  %v2383_v23 = vld [vmem:[%s2835_s3 + $0xe8] sm:$0xff]  }
  0x1b   : > { %v2376_v16 = vld [vmem:[%s2835_s3 + $0x18] sm:$0xff]   ;;  %v2380_v20 = vld [vmem:[%s2835_s3 + $0x20] sm:$0xff]   ;;  %v2384_v24 = vld [vmem:[%s2835_s3 + $0x28] sm:$0xff]  }
  0x1c   : > { %2143 = vmatpush3.bf16.msra.mxu0 %v2368_v8  ;;  %v2377_v17 = vld [vmem:[%s2835_s3 + $0x98] sm:$0xff]   ;;  %v2381_v21 = vld [vmem:[%s2835_s3 + $0xa0] sm:$0xff]   ;;  %v2385_v25 = vld [vmem:[%s2835_s3 + $0xa8] sm:$0xff]  }
  0x1d   : > { %2183 = vmatpush3.bf16.msra.mxu1 %v2369_v9  ;;  %2144 = vmatprep.subr.bf16.mxu0 %v2370_v10  ;;  %v2386_v26 = vld [vmem:[%s2835_s3 + $0x70] sm:$0xff]   ;;  %v2390_v30 = vld [vmem:[%s2835_s3 + $0x78] sm:$0xff]   ;;  %v2099_v34 = vld [vmem:[%s2518_s11] sm:$0xff]  }
  0x1e   : > { %2184 = vmatprep.subr.bf16.mxu1 %v2371_v11  ;;  %v2387_v27 = vld [vmem:[%s2835_s3 + $0xf0] sm:$0xff]   ;;  %v2391_v31 = vld [vmem:[%s2835_s3 + $0xf8] sm:$0xff]   ;;  %v2626_v35 = vld [vmem:[%s2833_s1] ss:$0 sm:$0xff]  ;;  %v2100_v36 = vunpack.c.l.bf16 %v2099_v34  ;;  %v2101_v37 = vunpack.c.h.bf16 %v2099_v34 }
  0x1f   : > { %v2388_v28 = vld [vmem:[%s2835_s3 + $0x30] sm:$0xff]   ;;  %v2392_v32 = vld [vmem:[%s2835_s3 + $0x38] sm:$0xff]   ;;  %v2631_v38 = vld [vmem:[%s2834_s2] ss:$0 sm:$0xff] }
  0x20   : > { %2145 = vmatpush3.bf16.msra.mxu0 %v2372_v12  ;;  %v2389_v29 = vld [vmem:[%s2835_s3 + $0xb0] sm:$0xff]   ;;  %v2393_v33 = vld [vmem:[%s2835_s3 + $0xb8] sm:$0xff]   ;;  %v341_v39 = vmul.f32 %v2100_v36, %v2626_v35  ;;  %v342_v40 = vmul.f32 %v2101_v37, %v2626_v35  ;;  %v2396_v41 = vld [vmem:[%s2835_s3 + $0x140] sm:$0xff]  }
  0x21   : > { %2185 = vmatpush3.bf16.msra.mxu1 %v2373_v13  ;;  %2146 = vmatprep.subr.bf16.mxu0 %v2374_v14  ;;  %v2397_v42 = vld [vmem:[%s2835_s3 + $0x1c0] sm:$0xff]   ;;  %v2134_v53 = vld [vmem:[%s2518_s11 + $0x8] sm:$0xff]   ;;  %vm2644_vm2 = vmand %vm445_vm0, %vm446_vm1 }
  0x22   : > { %2186 = vmatprep.subr.bf16.mxu1 %v2375_v15  ;;  %v356_v43 = vadd.f32 %v2631_v38, %v341_v39  ;;  %v357_v44 = vadd.f32 %v2631_v38, %v342_v40  ;;  %v448_v54 = vld [vmem:[#allocation2 + $0x8] sm:$0x1f]  ;;  %v480_v55 = vld [vmem:[#allocation2] sm:$0x1f]  ;;  %v2104_v56 = vunpack.c.l.bf16 %v2134_v53  ;;  %v2105_v57 = vunpack.c.h.bf16 %v2134_v53  ;;  %v451_v61 = vld [vmem:[#allocation2 + $0x10] sm:$0x1f] }
  0x23   : > { %v548_v5 = vshll.u32 %v480_v55, 16  ;;  %v488_v7 = vld [vmem:[#allocation2] sm:$0x1e]  ;;  %v546_v10 = vshrl.u32 %v480_v55, 16  ;;  %v2135_v13 = vld [vmem:[%s2518_s11 + $0x10] sm:$0xff]   ;;  %v2400_v55 = vld [vmem:[%s2835_s3 + $0x148] sm:$0xff]  }
  0x24   : > { %2147 = vmatpush3.bf16.msra.mxu0 %v2376_v16  ;;  %v364_v45 = vmax.f32 %v356_v43, 0.0  ;;  %v365_v46 = vmax.f32 %v357_v44, 0.0  ;;  %v343_v62 = vmul.f32 %v2104_v56, %v2626_v35  ;;  %v344_v63 = vmul.f32 %v2105_v57, %v2626_v35  ;;  %v2399_v43 = vld [vmem:[%s2835_s3 + $0x180] sm:$0xff]   ;;  %v2403_v56 = vld [vmem:[%s2835_s3 + $0x188] sm:$0xff]   ;;  %v2429_v59 = vld [vmem:[%s2835_s3 + $0x1b0] sm:$0xff]  }
  0x25   : > { %2187 = vmatpush3.bf16.msra.mxu1 %v2377_v17  ;;  %2148 = vmatprep.subr.bf16.mxu0 %v2378_v18  ;;  %v550_v14 = vrot.slane %v548_v5, 1  ;;  %v609_v15 = vrot.slane %v488_v7, 1  ;;  %v2108_v16 = vunpack.c.l.bf16 %v2135_v13  ;;  %v2109_v17 = vunpack.c.h.bf16 %v2135_v13  ;;  %v460_v5 = vld [vmem:[#allocation2 + $0x28] sm:$0x1f]  ;;  %v2136_v7 = vld [vmem:[%s2518_s11 + $0x18] sm:$0xff]  }
  0x26   : > { %2188 = vmatprep.subr.bf16.mxu1 %v2379_v19  ;;  %v372_v47 = vpack.c.bf16 %v364_v45, %v364_v45  ;;  %v373_v48 = vpack.c.bf16 %v365_v46, %v365_v46  ;;  %v358_v2 = vadd.f32 %v2631_v38, %v343_v62  ;;  %v359_v3 = vadd.f32 %v2631_v38, %v344_v63  ;;  %v2401_v45 = vld [vmem:[%s2835_s3 + $0x1c8] sm:$0xff]   ;;  %v2407_v63 = vld [vmem:[%s2835_s3 + $0x1d0] sm:$0xff]  }
  0x27   : > { %v551_v40 = vor.u32 %v550_v14, %v546_v10  ;;  %v2112_v13 = vunpack.c.l.bf16 %v2136_v7  ;;  %v2113_v14 = vunpack.c.h.bf16 %v2136_v7 }
  0x28   : > { %2149 = vmatpush3.bf16.msra.mxu0 %v2380_v20  ;;  %v381_v49 = vshrl.u32 %v372_v47, 16  ;;  %v384_v50 = vshll.u32 %v372_v47, 16  ;;  %v388_v51 = vshrl.u32 %v373_v48, 16  ;;  %v391_v52 = vshll.u32 %v373_v48, 16 }
  0x29   : > { %2189 = vmatpush3.bf16.msra.mxu1 %v2381_v21  ;;  %2150 = vmatprep.subr.bf16.mxu0 %v2382_v22  ;;  %v366_v8 = vmax.f32 %v358_v2, 0.0  ;;  %v367_v9 = vmax.f32 %v359_v3, 0.0  ;;  %v454_v22 = vld [vmem:[#allocation2 + $0x18] sm:$0x1f] }
  0x2a   : > { %2190 = vmatprep.subr.bf16.mxu1 %v2383_v23  ;;  %v383_v58 = vrot.slane %v381_v49, 7  ;;  %v390_v60 = vrot.slane %v388_v51, 7  ;;  %v345_v23 = vmul.f32 %v2108_v16, %v2626_v35 }
  0x2b   : > { %v374_v11 = vpack.c.bf16 %v366_v8, %v366_v8  ;;  %v375_v12 = vpack.c.bf16 %v367_v9, %v367_v9  ;;  %v2406_v8 = vld [vmem:[%s2835_s3 + $0x150] sm:$0xff]  }
  0x2c   : > { %2151 = vmatpush3.bf16.msra.mxu0 %v2384_v24  ;;  %v386_v0 = vor.u32 %v384_v50, %v383_v58  ;;  %v393_v1 = vor.u32 %v391_v52, %v390_v60  ;;  %v346_v24 = vmul.f32 %v2109_v17, %v2626_v35  ;;  %v2409_v9 = vld [vmem:[%s2835_s3 + $0x190] sm:$0xff]  }
  0x2d   : > { %2191 = vmatpush3.bf16.msra.mxu1 %v2385_v25  ;;  %2152 = vmatprep.subr.bf16.mxu0 %v2386_v26  ;;  %v395_v18 = vshrl.u32 %v374_v11, 16  ;;  %v398_v19 = vshll.u32 %v374_v11, 16  ;;  %v402_v20 = vshrl.u32 %v375_v12, 16  ;;  %v405_v21 = vshll.u32 %v375_v12, 16  ;;  %v463_v12 = vld [vmem:[#allocation2 + $0x30] sm:$0x1f] }
  0x2e   : > { %2192 = vmatprep.subr.bf16.mxu1 %v2387_v27  ;;  %v449_v4 = vsel %vm2644_vm2, %v386_v0, %v448_v54  ;;  %v452_v6 = vsel %vm2644_vm2, %v393_v1, %v451_v61  ;;  %v457_v27 = vld [vmem:[#allocation2 + $0x20] sm:$0x1f] }
  0x2f   : > { %450 = vst [vmem:[#allocation2 + $0x8] sm:$0x1f] %v449_v4  ;;  %453 = vst [vmem:[#allocation2 + $0x10] sm:$0x1f] %v452_v6  ;;  %v397_v25 = vrot.slane %v395_v18, 7  ;;  %v404_v26 = vrot.slane %v402_v20, 7 }
  0x30   : > { %2153 = vmatpush3.bf16.msra.mxu0 %v2388_v28  ;;  %v2398_v54 = vld [vmem:[%s2835_s3 + $0x100] sm:$0xff]   ;;  %v2402_v4 = vld [vmem:[%s2835_s3 + $0x108] sm:$0xff]  }
  0x31   : > { %2193 = vmatpush3.bf16.msra.mxu1 %v2389_v29  ;;  %2154 = vmatprep.subr.bf16.mxu0 %v2390_v30  ;;  %v360_v29 = vadd.f32 %v2631_v38, %v345_v23  ;;  %v361_v30 = vadd.f32 %v2631_v38, %v346_v24  ;;  %v400_v34 = vor.u32 %v398_v19, %v397_v25 }
  0x32   : > { %2194 = vmatprep.subr.bf16.mxu1 %v2391_v31  ;;  %v407_v36 = vor.u32 %v405_v21, %v404_v26  ;;  %v347_v24 = vmul.f32 %v2112_v13, %v2626_v35  ;;  %v348_v25 = vmul.f32 %v2113_v14, %v2626_v35  ;;  %v2413_v35 = vld [vmem:[%s2835_s3 + $0x198] sm:$0xff]   ;;  %v2426_v14 = vld [vmem:[%s2835_s3 + $0x170] sm:$0xff]  }
  0x33   : > { %v455_v44 = vsel %vm2644_vm2, %v400_v34, %v454_v22  ;;  %v368_v49 = vmax.f32 %v360_v29, 0.0  ;;  %v369_v50 = vmax.f32 %v361_v30, 0.0  ;;  %v2411_v22 = vld [vmem:[%s2835_s3 + $0x1d8] sm:$0xff]   ;;  %v2408_v29 = vld [vmem:[%s2835_s3 + $0x110] sm:$0xff]  }
  0x34   : > { %2155 = vmatpush3.bf16.msra.mxu0 %v2392_v32  ;;  %456 = vst [vmem:[#allocation2 + $0x18] sm:$0x1f] %v455_v44  ;;  %v458_v47 = vsel %vm2644_vm2, %v407_v36, %v457_v27  ;;  %v362_v34 = vadd.f32 %v2631_v38, %v347_v24  ;;  %v363_v36 = vadd.f32 %v2631_v38, %v348_v25 }
  0x35   : > { %2195 = vmatpush3.bf16.msra.mxu1 %v2393_v33  ;;  %2220 = vmatprep.subr.bf16.mxu0 %v2396_v41  ;;  %459 = vst [vmem:[#allocation2 + $0x20] sm:$0x1f] %v458_v47  ;;  %v376_v60 = vpack.c.bf16 %v368_v49, %v368_v49  ;;  %v377_v61 = vpack.c.bf16 %v369_v50, %v369_v50  ;;  %v2416_v47 = vld [vmem:[%s2835_s3 + $0x160] sm:$0xff]  }
  0x36   : > { %2260 = vmatprep.subr.bf16.mxu1 %v2397_v42  ;;  %v481_v28 = vld [vmem:[#allocation2 + $0x8] sm:$0x1f]  ;;  %v2661_v39 = vld [vmem:[#allocation2 + $0x10] sm:$0x1f] }
  0x37   : > { %v553_v31 = vshrl.u32 %v481_v28, 16  ;;  %v555_v32 = vshll.u32 %v481_v28, 16  ;;  %v2394_v33 = vld [vmem:[#allocation2 + $0x8] ss:$8 sps:$4 sm:$0xff]   ;;  %v562_v46 = vshll.u32 %v2661_v39, 16  ;;  %v560_v57 = vshrl.u32 %v2661_v39, 16 }
  0x38   : > { %v489_v37 = vld [vmem:[#allocation2 + $0x8] sm:$0x1e]  ;;  %1602 = vmatprep.mubr.bf16.mxu1 %v2394_v33  ;;  %v2674_v48 = vld [vmem:[#allocation2 + $0x10] sm:$0x1e]  ;;  %v409_v1 = vshrl.u32 %v376_v60, 16  ;;  %v412_v2 = vshll.u32 %v376_v60, 16 }
  0x39   : > { %v557_v41 = vrot.slane %v555_v32, 1  ;;  %v610_v42 = vrot.slane %v489_v37, 1  ;;  %v2395_v52 = vld [vmem:[#allocation2] ss:$8 sps:$4 sm:$0xff]   ;;  %v611_v58 = vrot.slane %v2674_v48, 1  ;;  %v564_v0 = vrot.slane %v562_v46, 1 }
  0x3a   : > { %v416_v3 = vshrl.u32 %v377_v61, 16  ;;  %v419_v6 = vshll.u32 %v377_v61, 16  ;;  %v411_v10 = vrot.slane %v409_v1, 7  ;;  %v2410_v32 = vld [vmem:[%s2835_s3 + $0x158] sm:$0xff]   ;;  %v371_v46 = vmax.f32 %v363_v36, 0.0  ;;  %v2419_v48 = vld [vmem:[%s2835_s3 + $0x1a0] sm:$0xff]  }
  0x3b   : > { %v558_v51 = vor.u32 %v557_v41, %v553_v31  ;;  %v1987_v53 = vcombine.low %v609_v15, %v610_v42  ;;  %v483_v15 = vld [vmem:[#allocation2 + $0x18] sm:$0x1f]  ;;  %v565_v26 = vor.u32 %v564_v0, %v560_v57  ;;  %v2417_v42 = vld [vmem:[%s2835_s3 + $0x1e0] sm:$0xff]   ;;  %v2420_v61 = vld [vmem:[%s2835_s3 + $0x168] sm:$0xff]  }
  0x3c   : > { %v418_v11 = vrot.slane %v416_v3, 7  ;;  %v567_v16 = vshrl.u32 %v483_v15, 16  ;;  %v569_v17 = vshll.u32 %v483_v15, 16  ;;  %v2404_v18 = vld [vmem:[#allocation2 + $0x18] ss:$8 sps:$4 sm:$0xff]   ;;  %v414_v19 = vor.u32 %v412_v2, %v411_v10  ;;  %v2423_v10 = vld [vmem:[%s2835_s3 + $0x1a8] sm:$0xff]  }
  0x3d   : > { %v1986_v62 = vcombine.low %v551_v40, %v558_v51  ;;  %1603 = vmatmul.mubr.bf16.vlgmr.msra.gmra.mrb[0].mxu1 %v1987_v53  ;;  %v491_v21 = vld [vmem:[#allocation2 + $0x18] sm:$0x1e]  ;;  %v484_v23 = vld [vmem:[#allocation2 + $0x20] sm:$0x1f]  ;;  %v379_v50 = vpack.c.bf16 %v371_v46, %v371_v46  ;;  %v2421_v53 = vld [vmem:[%s2835_s3 + $0x1e8] sm:$0xff]  }
  0x3e   : > { %2261 = vmatpush3.bf16.msra.mxu1 %v2399_v43  ;;  %v421_v20 = vor.u32 %v419_v6, %v418_v11  ;;  %v571_v27 = vrot.slane %v569_v17, 1  ;;  %1610 = vmatprep.mubr.bf16.mxu1 %v2404_v18  ;;  %v612_v28 = vrot.slane %v491_v21, 1  ;;  %v461_v30 = vsel %vm2644_vm2, %v414_v19, %v460_v5  ;;  %v2405_v31 = vld [vmem:[#allocation2 + $0x10] ss:$8 sps:$4 sm:$0xff]   ;;  %v492_v44 = vld [vmem:[#allocation2 + $0x20] sm:$0x1e] }
  0x3f   : > { %1537 = vmatprep.mubr.bf16.mxu0 %v1986_v62  ;;  %2262 = vmatprep.subr.bf16.mxu1 %v2401_v45  ;;  %462 = vst [vmem:[#allocation2 + $0x28] sm:$0x1f] %v461_v30  ;;  %v574_v40 = vshrl.u32 %v484_v23, 16  ;;  %v576_v41 = vshll.u32 %v484_v23, 16  ;;  %v2412_v43 = vld [vmem:[%s2835_s3 + $0x118] sm:$0xff]   ;;  %v370_v45 = vmax.f32 %v362_v34, 0.0 }
  0x40   : > { %1538 = vmatmul.mubr.bf16.vlgmr.msra.gmra.mrb[0].mxu0 %v2395_v52  ;;  %v464_v33 = vsel %vm2644_vm2, %v421_v20, %v463_v12  ;;  %v572_v37 = vor.u32 %v571_v27, %v567_v16  ;;  %v1996_v39 = vcombine.low %v611_v58, %v612_v28  ;;  %v613_v52 = vrot.slane %v492_v44, 1  ;;  %v466_v3 = vld [vmem:[#allocation2 + $0x38] sm:$0x1f]  ;;  %v2427_v23 = vld [vmem:[%s2835_s3 + $0x1f0] sm:$0xff]   ;;  %v504_v34 = vld [vmem:[#allocation2 + $0x8] sm:$0x1f] }
  0x41   : > { %2221 = vmatpush3.bf16.msra.mxu0 %v2398_v54  ;;  %465 = vst [vmem:[#allocation2 + $0x30] sm:$0x1f] %v464_v33  ;;  %v378_v49 = vpack.c.bf16 %v370_v45, %v370_v45  ;;  %v578_v51 = vrot.slane %v576_v41, 1  ;;  %v2418_v54 = vld [vmem:[%s2835_s3 + $0x120] sm:$0xff]   ;;  %v430_v57 = vshrl.u32 %v379_v50, 16  ;;  %v433_v58 = vshll.u32 %v379_v50, 16 }
  0x42   : > { %2222 = vmatprep.subr.bf16.mxu0 %v2400_v55  ;;  %2263 = vmatpush3.bf16.msra.mxu1 %v2403_v56  ;;  %v1995_v38 = vcombine.low %v565_v26, %v572_v37  ;;  %v529_v24 = vld [vmem:[#allocation2 + $0x10] sm:$0x1f]  ;;  %v530_v28 = vld [vmem:[#allocation2 + $0x18] sm:$0x1f]  ;;  %v2781_v45 = vld [vmem:[%s2835_s3 + $0x200] sm:$0xff]   ;;  %v620_v46 = vshll.u32 %v504_v34, 16 }
  0x43   : > { %2264 = vmatprep.subr.bf16.mxu1 %v2407_v63  ;;  %v423_v55 = vshrl.u32 %v378_v49, 16  ;;  %v426_v56 = vshll.u32 %v378_v49, 16  ;;  %v579_v5 = vor.u32 %v578_v51, %v574_v40  ;;  %v2428_v27 = vld [vmem:[%s2835_s3 + $0x130] sm:$0xff]   ;;  %v2431_v30 = vld [vmem:[%s2835_s3 + $0x1f8] sm:$0xff]   ;;  %v699_v33 = vshll.u32 %v530_v28, 16 }
  0x44   : > { %1545 = vmatprep.mubr.bf16.mxu0 %v1995_v38  ;;  %v505_v36 = vld [vmem:[#allocation2 + $0x10] sm:$0x1f]  ;;  %v2433_v40 = vld [vmem:[%s2835_s3 + $0x1b8] sm:$0xff]  }
  0x45   : > { %2223 = vmatpush3.bf16.msra.mxu0 %v2402_v4  ;;  %1611 = vmatmul.mubr.bf16.gmra.mrb[4].mxu1 %v1996_v39  ;;  %v425_v2 = vrot.slane %v423_v55, 7  ;;  %v432_v4 = vrot.slane %v430_v57, 7  ;;  %v2432_v39 = vld [vmem:[%s2835_s3 + $0x138] sm:$0xff]   ;;  %v513_v44 = vld [vmem:[#allocation2 + $0x10] sm:$0x1e]  ;;  %v627_v38 = vshll.u32 %v505_v36, 16 }
  0x46   : > { %2224 = vmatprep.subr.bf16.mxu0 %v2406_v8  ;;  %2265 = vmatpush3.bf16.msra.mxu1 %v2409_v9  ;;  %v485_v60 = vld [vmem:[#allocation2 + $0x28] sm:$0x1f]  ;;  %v469_v9 = vld [vmem:[#allocation2 + $0x40] sm:$0x1f] }
  0x47   : > { %2266 = vmatprep.subr.bf16.mxu1 %v2411_v22  ;;  %v581_v62 = vshrl.u32 %v485_v60, 16  ;;  %v583_v63 = vshll.u32 %v485_v60, 16  ;;  %v493_v1 = vld [vmem:[#allocation2 + $0x28] sm:$0x1e]  ;;  %v428_v11 = vor.u32 %v426_v56, %v425_v2  ;;  %v435_v13 = vor.u32 %v433_v58, %v432_v4 }
  0x48   : > { %1546 = vmatmul.mubr.bf16.gmra.mrb[4].mxu0 %v2405_v31  ;;  %v2414_v0 = vld [vmem:[#allocation2 + $0x28] ss:$8 sps:$4 sm:$0xff]   ;;  %v614_v7 = vrot.slane %v493_v1, 1  ;;  %v690_v31 = vshrl.u32 %v529_v24, 16  ;;  %v682_v56 = vrot.slane %v513_v44, 1  ;;  %v618_v60 = vshrl.u32 %v504_v34, 16 }
  0x49   : > { %2225 = vmatpush3.bf16.msra.mxu0 %v2408_v29  ;;  %v585_v6 = vrot.slane %v583_v63, 1  ;;  %1618 = vmatprep.mubr.bf16.mxu1 %v2414_v0  ;;  %v2422_v8 = vld [vmem:[%s2835_s3 + $0x128] sm:$0xff]   ;;  %v486_v12 = vld [vmem:[#allocation2 + $0x30] sm:$0x1f]  ;;  %v467_v19 = vsel %vm2644_vm2, %v428_v11, %v466_v3  ;;  %v470_v20 = vsel %vm2644_vm2, %v435_v13, %v469_v9  ;;  %v2430_v29 = vld [vmem:[%s2835_s3 + $0x178] sm:$0xff]   ;;  %v622_v63 = vrot.slane %v620_v46, 1 }
  0x4a   : > { %2226 = vmatprep.subr.bf16.mxu0 %v2410_v32  ;;  %2267 = vmatpush3.bf16.msra.mxu1 %v2413_v35  ;;  %v2005_v16 = vcombine.low %v613_v52, %v614_v7  ;;  %v2750_v17 = vld [vmem:[#allocation2 + $0x30] sm:$0x1e]  ;;  %v2415_v18 = vld [vmem:[#allocation2 + $0x20] ss:$8 sps:$4 sm:$0xff]   ;;  %468 = vst [vmem:[#allocation2 + $0x38] sm:$0x1f] %v467_v19 }
  0x4b   : > { %2268 = vmatprep.subr.bf16.mxu1 %v2417_v42  ;;  %v586_v15 = vor.u32 %v585_v6, %v581_v62  ;;  %v590_v22 = vshll.u32 %v486_v12, 16  ;;  %471 = vst [vmem:[#allocation2 + $0x40] sm:$0x1f] %v470_v20  ;;  %v588_v25 = vshrl.u32 %v486_v12, 16  ;;  %v615_v26 = vrot.slane %v2750_v17, 1 }
  0x4c   : > { %v692_v32 = vshll.u32 %v529_v24, 16  ;;  %v697_v35 = vshrl.u32 %v530_v28, 16  ;;  %v701_v42 = vrot.slane %v699_v33, 1  ;;  %v629_v0 = vrot.slane %v627_v38, 1  ;;  %v531_v1 = vld [vmem:[#allocation2 + $0x20] sm:$0x1f] }
  0x4d   : > { %2227 = vmatpush3.bf16.msra.mxu0 %v2412_v43  ;;  %v2004_v21 = vcombine.low %v579_v5, %v586_v15  ;;  %1619 = vmatmul.mubr.bf16.gmra.mrb[8].mxu1 %v2005_v16  ;;  %v592_v37 = vrot.slane %v590_v22, 1  ;;  %v512_v43 = vld [vmem:[#allocation2 + $0x8] sm:$0x1e]  ;;  %v704_v6 = vshrl.u32 %v531_v1, 16  ;;  %v706_v7 = vshll.u32 %v531_v1, 16 }
  0x4e   : > { %2228 = vmatprep.subr.bf16.mxu0 %v2416_v47  ;;  %2269 = vmatpush3.bf16.msra.mxu1 %v2419_v48  ;;  %v694_v41 = vrot.slane %v692_v32, 1  ;;  %v702_v49 = vor.u32 %v701_v42, %v697_v35  ;;  %v681_v55 = vrot.slane %v512_v43, 1  ;;  %v532_v2 = vld [vmem:[#allocation2 + $0x28] sm:$0x1f]  ;;  %v506_v11 = vld [vmem:[#allocation2 + $0x18] sm:$0x1f] }
  0x4f   : > { %2270 = vmatprep.subr.bf16.mxu1 %v2421_v53  ;;  %1553 = vmatprep.mubr.bf16.mxu0 %v2004_v21  ;;  %v593_v53 = vor.u32 %v592_v37, %v588_v25  ;;  %v711_v9 = vshrl.u32 %v532_v2, 16  ;;  %v507_v15 = vld [vmem:[#allocation2 + $0x20] sm:$0x1f]  ;;  %v634_v22 = vshll.u32 %v506_v11, 16  ;;  %v2434_v24 = vld [vmem:[#allocation2 + $0x10] ss:$8 sps:$4 sm:$0xff]  }
  0x50   : > { %1554 = vmatmul.mubr.bf16.gmra.mrb[8].mxu0 %v2415_v18  ;;  %v695_v48 = vor.u32 %v694_v41, %v690_v31  ;;  %v1990_v13 = vcombine.low %v681_v55, %v682_v56  ;;  %v515_v16 = vld [vmem:[#allocation2 + $0x20] sm:$0x1e]  ;;  %v623_v18 = vor.u32 %v622_v63, %v618_v60  ;;  %v2436_v25 = vld [vmem:[%s2835_s3 + $0x208] sm:$0xff]   ;;  %v509_v37 = vld [vmem:[#allocation2 + $0x30] sm:$0x1f] }
  0x51   : > { %2229 = vmatpush3.bf16.msra.mxu0 %v2418_v54  ;;  %v487_v47 = vld [vmem:[#allocation2 + $0x38] sm:$0x1f]  ;;  %v2788_v32 = vld [vmem:[#allocation2 + $0x28] sm:$0x1f]  ;;  %v517_v44 = vld [vmem:[#allocation2 + $0x30] sm:$0x1e] }
  0x52   : > { %2230 = vmatprep.subr.bf16.mxu0 %v2420_v61  ;;  %2271 = vmatpush3.bf16.msra.mxu1 %v2423_v10  ;;  %v595_v50 = vshrl.u32 %v487_v47, 16  ;;  %v597_v51 = vshll.u32 %v487_v47, 16  ;;  %v2424_v52 = vld [vmem:[#allocation2 + $0x38] ss:$8 sps:$4 sm:$0xff]   ;;  %v625_v61 = vshrl.u32 %v505_v36, 16  ;;  %v1992_v62 = vcombine.low %v695_v48, %v702_v49  ;;  %v2438_v49 = vld [vmem:[%s2835_s3 + $0x210] sm:$0xff]  }
  0x53   : > { %2272 = vmatprep.subr.bf16.mxu1 %v2427_v23  ;;  %v495_v54 = vld [vmem:[#allocation2 + $0x38] sm:$0x1e]  ;;  %1626 = vmatprep.mubr.bf16.mxu1 %v2424_v52  ;;  %v713_v10 = vshll.u32 %v532_v2, 16  ;;  %v641_v23 = vshll.u32 %v507_v15, 16  ;;  %v516_v43 = vld [vmem:[#allocation2 + $0x28] sm:$0x1e] }
  0x54   : > { %v599_v57 = vrot.slane %v597_v51, 1  ;;  %v616_v58 = vrot.slane %v495_v54, 1  ;;  %v2425_v4 = vld [vmem:[#allocation2 + $0x30] ss:$8 sps:$4 sm:$0xff]   ;;  %v630_v20 = vor.u32 %v629_v0, %v625_v61  ;;  %v648_v47 = vshll.u32 %v2788_v32, 16 }
  0x55   : > { %2231 = vmatpush3.bf16.msra.mxu0 %v2422_v8  ;;  %v514_v8 = vld [vmem:[#allocation2 + $0x18] sm:$0x1e]  ;;  %v715_v17 = vrot.slane %v713_v10, 1  ;;  %v643_v41 = vrot.slane %v641_v23, 1  ;;  %v655_v48 = vshll.u32 %v509_v37, 16  ;;  %v685_v56 = vrot.slane %v516_v43, 1 }
  0x56   : > { %2232 = vmatprep.subr.bf16.mxu0 %v2426_v14  ;;  %2273 = vmatpush3.bf16.msra.mxu1 %v2429_v59  ;;  %v600_v3 = vor.u32 %v599_v57, %v595_v50  ;;  %v2014_v5 = vcombine.low %v615_v26, %v616_v58  ;;  %v708_v14 = vrot.slane %v706_v7, 1  ;;  %v683_v26 = vrot.slane %v514_v8, 1  ;;  %v533_v59 = vld [vmem:[#allocation2 + $0x30] sm:$0x1f]  ;;  %v534_v31 = vld [vmem:[#allocation2 + $0x38] sm:$0x1f] }
  0x57   : > { %2274 = vmatprep.subr.bf16.mxu1 %v2431_v30  ;;  %v716_v21 = vor.u32 %v715_v17, %v711_v9  ;;  %v639_v30 = vshrl.u32 %v507_v15, 16  ;;  %v718_v35 = vshrl.u32 %v533_v59, 16  ;;  %v720_v33 = vshll.u32 %v533_v59, 16  ;;  %v2437_v54 = vld [vmem:[#allocation2 + $0x20] ss:$8 sps:$4 sm:$0xff]  }
  0x58   : > { %v2013_v12 = vcombine.low %v593_v53, %v600_v3  ;;  %1627 = vmatmul.mubr.bf16.gmra.mrb[12].mxu1 %v2014_v5  ;;  %v709_v19 = vor.u32 %v708_v14, %v704_v6  ;;  %v725_v34 = vshrl.u32 %v534_v31, 16  ;;  %v727_v36 = vshll.u32 %v534_v31, 16  ;;  %v535_v55 = vld [vmem:[#allocation2 + $0x40] sm:$0x1f]  ;;  %v536_v61 = vld [vmem:[#allocation2 + $0x48] sm:$0x1f] }
  0x59   : > { %2233 = vmatpush3.bf16.msra.mxu0 %v2428_v27  ;;  %1732 = vmatprep.mubr.bf16.mxu1 %v1992_v62  ;;  %v684_v27 = vrot.slane %v515_v16, 1  ;;  %v722_v46 = vrot.slane %v720_v33, 1  ;;  %v644_v53 = vor.u32 %v643_v41, %v639_v30  ;;  %v686_v57 = vrot.slane %v517_v44, 1  ;;  %v2439_v62 = vld [vmem:[%s2835_s3 + $0x218] sm:$0xff]   ;;  %v2442_v23 = vld [vmem:[%s2835_s3 + $0x228] sm:$0xff]   ;;  %v2444_v33 = vld [vmem:[%s2835_s3 + $0x230] sm:$0xff]  }
  0x5a   : > { %2234 = vmatprep.subr.bf16.mxu0 %v2430_v29  ;;  %2275 = vmatpush3.bf16.msra.mxu1 %v2433_v40  ;;  %v2001_v28 = vcombine.low %v709_v19, %v716_v21  ;;  %v632_v29 = vshrl.u32 %v506_v11, 16  ;;  %v636_v40 = vrot.slane %v634_v22, 1  ;;  %v729_v38 = vrot.slane %v727_v36, 1  ;;  %v518_v6 = vld [vmem:[#allocation2 + $0x38] sm:$0x1e] }
  0x5b   : > { %2336 = vmatprep.subr.bf16.mxu1 %v2781_v45  ;;  %1561 = vmatprep.mubr.bf16.mxu0 %v2013_v12  ;;  %v1999_v42 = vcombine.low %v683_v26, %v684_v27  ;;  %v723_v50 = vor.u32 %v722_v46, %v718_v35  ;;  %v646_v58 = vshrl.u32 %v2788_v32, 16  ;;  %v653_v60 = vshrl.u32 %v509_v37, 16  ;;  %v510_v9 = vld [vmem:[#allocation2 + $0x38] sm:$0x1f]  ;;  %v511_v11 = vld [vmem:[#allocation2 + $0x40] sm:$0x1f] }
  0x5c   : > { %1562 = vmatmul.mubr.bf16.gmra.mrb[12].mxu0 %v2425_v4  ;;  %v730_v51 = vor.u32 %v729_v38, %v725_v34  ;;  %v637_v52 = vor.u32 %v636_v40, %v632_v29  ;;  %v650_v63 = vrot.slane %v648_v47, 1  ;;  %v657_v0 = vrot.slane %v655_v48, 1  ;;  %v519_v12 = vld [vmem:[#allocation2 + $0x40] sm:$0x1e]  ;;  %v541_v29 = vld [vmem:[#allocation2 + $0x30] sm:$0x1e] }
  0x5d   : > { %2235 = vmatpush3.bf16.msra.mxu0 %v2432_v39  ;;  %1667 = vmatprep.mubr.bf16.mxu0 %v1990_v13  ;;  %v1989_v39 = vcombine.low %v623_v18, %v630_v20  ;;  %v734_v1 = vshll.u32 %v535_v55, 16  ;;  %v741_v2 = vshll.u32 %v536_v61, 16  ;;  %v739_v4 = vshrl.u32 %v536_v61, 16  ;;  %v2441_v13 = vld [vmem:[%s2835_s3 + $0x220] sm:$0xff]   ;;  %v2440_v20 = vld [vmem:[#allocation2 + $0x30] ss:$8 sps:$4 sm:$0xff]  }
  0x5e   : > { %2312 = vmatprep.subr.bf16.mxu0 %v2781_v45  ;;  %v2010_v3 = vcombine.low %v723_v50, %v730_v51  ;;  %v1998_v5 = vcombine.low %v637_v52, %v644_v53  ;;  %v2008_v10 = vcombine.low %v685_v56, %v686_v57  ;;  %v651_v16 = vor.u32 %v650_v63, %v646_v58  ;;  %v542_v30 = vld [vmem:[#allocation2 + $0x38] sm:$0x1e]  ;;  %v537_v32 = vld [vmem:[#allocation2 + $0x10] sm:$0x1e]  ;;  %v2443_v40 = vld [vmem:[#allocation2 + $0x40] ss:$8 sps:$4 sm:$0xff]  }
  0x5f   : > { %v736_v7 = vrot.slane %v734_v1, 1  ;;  %v743_v8 = vrot.slane %v741_v2, 1  ;;  %v658_v17 = vor.u32 %v657_v0, %v653_v60  ;;  %v662_v18 = vshll.u32 %v510_v9, 16  ;;  %v538_v35 = vld [vmem:[#allocation2 + $0x18] sm:$0x1e] }
  0x60   : > { %1733 = vmatmul.mubr.bf16.vlgmr.msra.gmra.mrb[16].mxu1 %v2434_v24  ;;  %v669_v19 = vshll.u32 %v511_v11, 16  ;;  %v687_v21 = vrot.slane %v518_v6, 1  ;;  %v688_v22 = vrot.slane %v519_v12, 1  ;;  %v667_v26 = vshrl.u32 %v511_v11, 16  ;;  %v543_v43 = vld [vmem:[#allocation2 + $0x40] sm:$0x1e] }
  0x61   : > { %2344 = vmatpush3.bf16.msra.mxu1 %v2781_v45  ;;  %1740 = vmatprep.mubr.bf16.mxu1 %v2001_v28  ;;  %v744_v15 = vor.u32 %v743_v8, %v739_v4  ;;  %v2007_v27 = vcombine.low %v651_v16, %v658_v17  ;;  %v664_v59 = vrot.slane %v662_v18, 1  ;;  %v757_v34 = vrot.slane %v541_v29, 1  ;;  %v544_v44 = vld [vmem:[#allocation2 + $0x48] sm:$0x1e]  ;;  %v2445_v46 = vld [vmem:[%s2835_s3 + $0x238] sm:$0xff]  }
  0x62   : > { %2337 = vmatprep.subr.bf16.mxu1 %v2436_v25  ;;  %v671_v28 = vrot.slane %v669_v19, 1  ;;  %v2017_v31 = vcombine.low %v687_v21, %v688_v22  ;;  %v758_v36 = vrot.slane %v542_v30, 1  ;;  %v753_v41 = vrot.slane %v537_v32, 1  ;;  %v540_v50 = vld [vmem:[#allocation2 + $0x28] sm:$0x1e] }
  0x63   : > { %v759_v51 = vrot.slane %v543_v43, 1  ;;  %v760_v52 = vrot.slane %v544_v44, 1 }
  0x64   : > { %1668 = vmatmul.mubr.bf16.vlgmr.msra.gmra.mrb[16].mxu0 %v1989_v39  ;;  %v672_v39 = vor.u32 %v671_v28, %v667_v26  ;;  %v2011_v38 = vcombine.low %v757_v34, %v758_v36 }
  0x65   : > { %2313 = vmatpush3.bf16.msra.mxu0 %v2781_v45  ;;  %1675 = vmatprep.mubr.bf16.mxu0 %v1999_v42  ;;  %v732_v45 = vshrl.u32 %v535_v55, 16  ;;  %v754_v42 = vrot.slane %v538_v35, 1  ;;  %v2020_v55 = vcombine.low %v759_v51, %v760_v52 }
  0x66   : > { %2314 = vmatprep.subr.bf16.mxu0 %v2436_v25  ;;  %2345 = vmatpush3.bf16.msra.mxu1 %v2436_v25 }
  0x67   : > { %2338 = vmatprep.subr.bf16.mxu1 %v2438_v49  ;;  %v737_v14 = vor.u32 %v736_v7, %v732_v45  ;;  %v1993_v48 = vcombine.low %v753_v41, %v754_v42 }
  0x68   : > { %1741 = vmatmul.mubr.bf16.gmra.mrb[20].mxu1 %v2437_v54  ;;  %v756_v54 = vrot.slane %v540_v50, 1 }
  0x69   : > { %2315 = vmatpush3.bf16.msra.mxu0 %v2436_v25  ;;  %1748 = vmatprep.mubr.bf16.mxu1 %v2010_v3  ;;  %v2019_v24 = vcombine.low %v737_v14, %v744_v15  ;;  %v660_v25 = vshrl.u32 %v510_v9, 16 }
  0x6a   : > { %2316 = vmatprep.subr.bf16.mxu0 %v2438_v49  ;;  %2346 = vmatpush3.bf16.msra.mxu1 %v2438_v49 }
  0x6b   : > { %2339 = vmatprep.subr.bf16.mxu1 %v2439_v62  ;;  %v665_v37 = vor.u32 %v664_v59, %v660_v25 }
  0x6c   : > { %1676 = vmatmul.mubr.bf16.gmra.mrb[20].mxu0 %v1998_v5 }
  0x6d   : > { %2317 = vmatpush3.bf16.msra.mxu0 %v2438_v49  ;;  %1683 = vmatprep.mubr.bf16.mxu0 %v2008_v10  ;;  %v2016_v47 = vcombine.low %v665_v37, %v672_v39  ;;  %v539_v49 = vld [vmem:[#allocation2 + $0x20] sm:$0x1e] }
  0x6e   : > { %2318 = vmatprep.subr.bf16.mxu0 %v2439_v62  ;;  %2347 = vmatpush3.bf16.msra.mxu1 %v2439_v62  ;;  %v755_v53 = vrot.slane %v539_v49, 1 }
  0x6f   : > { %2340 = vmatprep.subr.bf16.mxu1 %v2441_v13 }
  0x70   : > { %1749 = vmatmul.mubr.bf16.gmra.mrb[24].mxu1 %v2440_v20  ;;  %v2002_v56 = vcombine.low %v755_v53, %v756_v54 }
  0x71   : > { %2319 = vmatpush3.bf16.msra.mxu0 %v2439_v62  ;;  %1756 = vmatprep.mubr.bf16.mxu1 %v2019_v24 }
  0x72   : > { %2320 = vmatprep.subr.bf16.mxu0 %v2441_v13  ;;  %2348 = vmatpush3.bf16.msra.mxu1 %v2441_v13 }
  0x73   : > { %2341 = vmatprep.subr.bf16.mxu1 %v2442_v23 }
  0x74   : > { %1684 = vmatmul.mubr.bf16.gmra.mrb[24].mxu0 %v2007_v27 }
  0x75   : > { %2321 = vmatpush3.bf16.msra.mxu0 %v2441_v13  ;;  %1691 = vmatprep.mubr.bf16.mxu0 %v2017_v31 }
  0x76   : > { %2322 = vmatprep.subr.bf16.mxu0 %v2442_v23  ;;  %2349 = vmatpush3.bf16.msra.mxu1 %v2442_v23 }
  0x77   : > { %2342 = vmatprep.subr.bf16.mxu1 %v2444_v33 }
  0x78   : > { %1757 = vmatmul.mubr.bf16.gmra.mrb[28].mxu1 %v2443_v40 }
  0x79   : > { %2323 = vmatpush3.bf16.msra.mxu0 %v2442_v23  ;;  %2332 = vmatprep.mubr.bf16.mxu1 %v2011_v38 }
  0x7a   : > { %2324 = vmatprep.subr.bf16.mxu0 %v2444_v33  ;;  %2350 = vmatpush3.bf16.msra.mxu1 %v2444_v33 }
  0x7b   : > { %2343 = vmatprep.subr.bf16.mxu1 %v2445_v46 }
  0x7c   : > { %1692 = vmatmul.mubr.bf16.gmra.mrb[28].mxu0 %v2016_v47 }
  0x7d   : > { %2325 = vmatpush3.bf16.msra.mxu0 %v2444_v33  ;;  %2328 = vmatprep.mubr.bf16.mxu0 %v1993_v48 }
  0x7e   : > { %2326 = vmatprep.subr.bf16.mxu0 %v2445_v46  ;;  %2351 = vmatpush3.bf16.msra.mxu1 %v2445_v46 }
  0x81   : > { %2327 = vmatpush3.bf16.msra.mxu0 %v2445_v46  ;;  %2333 = vmatmul.mubr.bf16.vlgmr.msra.gmra.mrb[32].mxu1 %v2020_v55 }
  0x84   : > { %2329 = vmatmul.mubr.bf16.vlgmr.msra.gmra.mrb[32].mxu0 %v2002_v56 }
 0x110   : > { %v2196_v57 = vpop.f32.mrb[0].mxu1 }
 0x111   : > { %v2197_v58 = vpop.f32.mrb[1].mxu1 }
 0x112   : > { %v2198_v60 = vadd.f32 %v2197_v58, %v2196_v57  ;;  %v2199_v61 = vpop.f32.mrb[2].mxu1 }
 0x113   : > { %v2156_v62 = vpop.f32.mrb[0].mxu0  ;;  %v2200_v63 = vpop.f32.mrb[3].mxu1 }
 0x114   : > { %v2157_v0 = vpop.f32.mrb[1].mxu0  ;;  %v2201_v1 = vadd.f32 %v2200_v63, %v2199_v61 }
 0x115   : > { %v2158_v2 = vadd.f32 %v2157_v0, %v2156_v62  ;;  %v2159_v3 = vpop.f32.mrb[2].mxu0 }
 0x116   : > { %v2160_v45 = vpop.f32.mrb[3].mxu0 }
 0x117   : > { %v1605_v4 = vadd.f32 %v2198_v60, %v2158_v2  ;;  %v2161_v5 = vadd.f32 %v2160_v45, %v2159_v3 }
 0x118   : > { %v2202_v7 = vpop.f32.mrb[4].mxu1 }
 0x119   : > { %v1608_v6 = vadd.f32 %v2201_v1, %v2161_v5  ;;  %v2203_v8 = vpop.f32.mrb[5].mxu1 }
 0x11a   : > { %v2204_v9 = vadd.f32 %v2203_v8, %v2202_v7  ;;  %v2205_v10 = vpop.f32.mrb[6].mxu1 }
 0x11b   : > { %v2162_v11 = vpop.f32.mrb[4].mxu0  ;;  %v2206_v12 = vpop.f32.mrb[7].mxu1 }
 0x11c   : > { %v2163_v13 = vpop.f32.mrb[5].mxu0  ;;  %v2207_v14 = vadd.f32 %v2206_v12, %v2205_v10 }
 0x11d   : > { %v2164_v15 = vadd.f32 %v2163_v13, %v2162_v11  ;;  %v2165_v16 = vpop.f32.mrb[6].mxu0 }
 0x11e   : > { %v2166_v17 = vpop.f32.mrb[7].mxu0 }
 0x11f   : > { %v1613_v18 = vadd.f32 %v2204_v9, %v2164_v15  ;;  %v2167_v19 = vadd.f32 %v2166_v17, %v2165_v16 }
 0x120   : > { %v2208_v21 = vpop.f32.mrb[8].mxu1 }
 0x121   : > { %v1616_v20 = vadd.f32 %v2207_v14, %v2167_v19  ;;  %v2209_v22 = vpop.f32.mrb[9].mxu1 }
 0x122   : > { %v2210_v23 = vadd.f32 %v2209_v22, %v2208_v21  ;;  %v2211_v24 = vpop.f32.mrb[10].mxu1 }
 0x123   : > { %v2168_v25 = vpop.f32.mrb[8].mxu0  ;;  %v2212_v26 = vpop.f32.mrb[11].mxu1 }
 0x124   : > { %v2169_v27 = vpop.f32.mrb[9].mxu0  ;;  %v2213_v59 = vadd.f32 %v2212_v26, %v2211_v24 }
 0x125   : > { %v2170_v28 = vadd.f32 %v2169_v27, %v2168_v25  ;;  %v2171_v29 = vpop.f32.mrb[10].mxu0 }
 0x126   : > { %v2172_v30 = vpop.f32.mrb[11].mxu0 }
 0x127   : > { %v1621_v31 = vadd.f32 %v2210_v23, %v2170_v28  ;;  %v2173_v32 = vadd.f32 %v2172_v30, %v2171_v29 }
 0x129   : > { %v1624_v35 = vadd.f32 %v2213_v59, %v2173_v32 }
 0x12b   : > { %v2214_v33 = vpop.f32.mrb[12].mxu1 }
 0x12c   : > { %v2215_v34 = vpop.f32.mrb[13].mxu1 }
 0x12d   : > { %v2216_v36 = vadd.f32 %v2215_v34, %v2214_v33  ;;  %v2217_v37 = vpop.f32.mrb[14].mxu1 }
 0x12e   : > { %v2218_v40 = vpop.f32.mrb[15].mxu1 }
 0x12f   : > { %v2174_v39 = vpop.f32.mrb[12].mxu0  ;;  %v2219_v42 = vadd.f32 %v2218_v40, %v2217_v37 }
 0x130   : > { %v2175_v41 = vpop.f32.mrb[13].mxu0 }
 0x131   : > { %v2176_v43 = vadd.f32 %v2175_v41, %v2174_v39  ;;  %v2177_v44 = vpop.f32.mrb[14].mxu0 }
 0x132   : > { %v2178_v46 = vpop.f32.mrb[15].mxu0 }
 0x133   : > { %v1629_v38 = vadd.f32 %v2216_v36, %v2176_v43  ;;  %v2179_v47 = vadd.f32 %v2178_v46, %v2177_v44  ;;  %v2276_v48 = vpop.f32.mrb[16].mxu1 }
 0x134   : > { %v2277_v50 = vpop.f32.mrb[17].mxu1 }
 0x135   : > { %v1632_v49 = vadd.f32 %v2219_v42, %v2179_v47  ;;  %v2278_v51 = vadd.f32 %v2277_v50, %v2276_v48  ;;  %v2279_v52 = vpop.f32.mrb[18].mxu1 }
 0x136   : > { %v2280_v54 = vpop.f32.mrb[19].mxu1 }
 0x137   : > { %v2236_v53 = vpop.f32.mrb[16].mxu0  ;;  %v2281_v56 = vadd.f32 %v2280_v54, %v2279_v52 }
 0x138   : > { %v2237_v55 = vpop.f32.mrb[17].mxu0 }
 0x139   : > { %v2238_v57 = vadd.f32 %v2237_v55, %v2236_v53  ;;  %v2239_v58 = vpop.f32.mrb[18].mxu0 }
 0x13a   : > { %v2240_v60 = vpop.f32.mrb[19].mxu0 }
 0x13b   : > { %v1670_v61 = vadd.f32 %v2238_v57, %v1605_v4  ;;  %v2241_v62 = vadd.f32 %v2240_v60, %v2239_v58  ;;  %v2282_v63 = vpop.f32.mrb[20].mxu1 }
 0x13c   : > { %v2283_v1 = vpop.f32.mrb[21].mxu1 }
 0x13d   : > { %v1673_v0 = vadd.f32 %v2241_v62, %v1608_v6  ;;  %v1735_v2 = vadd.f32 %v2278_v51, %v1670_v61  ;;  %v2284_v3 = vadd.f32 %v2283_v1, %v2282_v63  ;;  %v2285_v45 = vpop.f32.mrb[22].mxu1 }
 0x13e   : > { %v2286_v7 = vpop.f32.mrb[23].mxu1 }
 0x13f   : > { %v2242_v5 = vpop.f32.mrb[20].mxu0  ;;  %v1738_v8 = vadd.f32 %v2281_v56, %v1673_v0  ;;  %v2287_v10 = vadd.f32 %v2286_v7, %v2285_v45 }
 0x140   : > { %v2243_v9 = vpop.f32.mrb[21].mxu0 }
 0x141   : > { %v2244_v11 = vadd.f32 %v2243_v9, %v2242_v5  ;;  %v2245_v12 = vpop.f32.mrb[22].mxu0 }
 0x142   : > { %v2246_v13 = vpop.f32.mrb[23].mxu0 }
 0x143   : > { %v1678_v14 = vadd.f32 %v2244_v11, %v1613_v18  ;;  %v2247_v15 = vadd.f32 %v2246_v13, %v2245_v12  ;;  %v2288_v16 = vpop.f32.mrb[24].mxu1 }
 0x144   : > { %v2289_v4 = vpop.f32.mrb[25].mxu1 }
 0x145   : > { %v1681_v17 = vadd.f32 %v2247_v15, %v1616_v20  ;;  %v1743_v19 = vadd.f32 %v2284_v3, %v1678_v14  ;;  %v2290_v21 = vadd.f32 %v2289_v4, %v2288_v16  ;;  %v2291_v6 = vpop.f32.mrb[26].mxu1 }
 0x146   : > { %v2292_v23 = vpop.f32.mrb[27].mxu1 }
 0x147   : > { %v2248_v22 = vpop.f32.mrb[24].mxu0  ;;  %v1746_v24 = vadd.f32 %v2287_v10, %v1681_v17  ;;  %v2293_v26 = vadd.f32 %v2292_v23, %v2291_v6 }
 0x148   : > { %v2249_v25 = vpop.f32.mrb[25].mxu0 }
 0x149   : > { %v2250_v27 = vadd.f32 %v2249_v25, %v2248_v22  ;;  %v2251_v59 = vpop.f32.mrb[26].mxu0 }
 0x14a   : > { %v2252_v28 = vpop.f32.mrb[27].mxu0 }
 0x14b   : > { %v1686_v29 = vadd.f32 %v2250_v27, %v1621_v31  ;;  %v2253_v30 = vadd.f32 %v2252_v28, %v2251_v59  ;;  %v2294_v32 = vpop.f32.mrb[28].mxu1 }
 0x14c   : > { %v2295_v18 = vpop.f32.mrb[29].mxu1 }
 0x14d   : > { %v1689_v33 = vadd.f32 %v2253_v30, %v1624_v35  ;;  %v1751_v34 = vadd.f32 %v2290_v21, %v1686_v29  ;;  %v2296_v36 = vadd.f32 %v2295_v18, %v2294_v32  ;;  %v2297_v20 = vpop.f32.mrb[30].mxu1 }
 0x14e   : > { %v2298_v39 = vpop.f32.mrb[31].mxu1 }
 0x14f   : > { %v2254_v37 = vpop.f32.mrb[28].mxu0  ;;  %v1754_v40 = vadd.f32 %v2293_v26, %v1689_v33  ;;  %v2299_v42 = vadd.f32 %v2298_v39, %v2297_v20 }
 0x150   : > { %v2255_v41 = vpop.f32.mrb[29].mxu0 }
 0x151   : > { %v2256_v43 = vadd.f32 %v2255_v41, %v2254_v37  ;;  %v2257_v44 = vpop.f32.mrb[30].mxu0  ;;  %v1846_v37 = vld [vmem:[#allocation3] sm:$0x1]  ;;  %v1862_v41 = vld [vmem:[#allocation4] sm:$0x1] }
 0x152   : > { %v2258_v46 = vpop.f32.mrb[31].mxu0 }
 0x153   : > { %v1694_v47 = vadd.f32 %v2256_v43, %v1629_v38  ;;  %v2259_v48 = vadd.f32 %v2258_v46, %v2257_v44 }
 0x154   : > { %v2334_v50 = vpop.f32.mrb[32].mxu1 }
 0x155   : > { %v1697_v51 = vadd.f32 %v2259_v48, %v1632_v49  ;;  %v1759_v31 = vadd.f32 %v2296_v36, %v1694_v47  ;;  %v1815_v52 = vpop.f32.mrb[33].mxu1 }
 0x156   : > { %v1816_v53 = vadd.f32 %v1815_v52, %v1751_v34  ;;  %v2335_v35 = vpop.f32.mrb[34].mxu1 }
 0x157   : > { %v2330_v54 = vpop.f32.mrb[32].mxu0  ;;  %v1824_v55 = vadd.f32 %v2334_v50, %v1759_v31  ;;  %v1762_v56 = vadd.f32 %v2299_v42, %v1697_v51  ;;  %v1818_v57 = vpop.f32.mrb[35].mxu1 }
 0x158   : > { %v1808_v58 = vadd.f32 %v2330_v54, %v1743_v19  ;;  %v1799_v60 = vpop.f32.mrb[33].mxu0  ;;  %v1819_v61 = vadd.f32 %v1818_v57, %v1754_v40  ;;  %v1867_v17 = vmul.f32 %v1816_v53, %v1816_v53 }
 0x159   : > { %v1800_v62 = vadd.f32 %v1799_v60, %v1735_v2  ;;  %v2331_v63 = vpop.f32.mrb[34].mxu0  ;;  %v1827_v38 = vadd.f32 %v2335_v35, %v1762_v56  ;;  %v1869_v22 = vmul.f32 %v1824_v55, %v1824_v55 }
 0x15a   : > { %v1811_v0 = vadd.f32 %v2331_v63, %v1746_v24  ;;  %v1802_v49 = vpop.f32.mrb[35].mxu0  ;;  %v2127_v1 = vpack.c.bf16 %v1819_v61, %v1816_v53  ;;  %v1865_v12 = vmul.f32 %v1808_v58, %v1808_v58 }
 0x15b   : > { %v2132_v3 = vpack.c.bf16 %v1827_v38, %v1824_v55  ;;  %v1803_v45 = vadd.f32 %v1802_v49, %v1738_v8  ;;  %v1863_v7 = vmul.f32 %v1800_v62, %v1800_v62  ;;  %v1868_v8 = vmul.f32 %v1819_v61, %v1819_v61 }
 0x15c   : > { %v2122_v5 = vpack.c.bf16 %v1811_v0, %v1808_v58  ;;  %2138 = vst [vmem:[%s2523_s14 + $0x10] sm:$0xff] %v2127_v1   ;;  %v1866_v14 = vmul.f32 %v1811_v0, %v1811_v0  ;;  %v1870_v25 = vmul.f32 %v1827_v38, %v1827_v38 }
 0x15d   : > { %2139 = vst [vmem:[%s2523_s14 + $0x18] sm:$0xff] %v2132_v3   ;;  %v2117_v9 = vpack.c.bf16 %v1803_v45, %v1800_v62  ;;  %v1847_v10 = vadd.f32 %v1803_v45, %v1800_v62  ;;  %v1864_v11 = vmul.f32 %v1803_v45, %v1803_v45 }
 0x15e   : > { %2137 = vst [vmem:[%s2523_s14 + $0x8] sm:$0xff] %v2122_v5  }
 0x15f   : > { %2118 = vst [vmem:[%s2523_s14] sm:$0xff] %v2117_v9   ;;  %v1848_v13 = vadd.f32 %v1847_v10, %v1808_v58  ;;  %v1871_v2 = vadd.f32 %v1864_v11, %v1863_v7 }
 0x161   : > { %v1872_v15 = vadd.f32 %v1871_v2, %v1865_v12  ;;  %v1849_v16 = vadd.f32 %v1848_v13, %v1811_v0 }
 0x163   : > { %v1850_v4 = vadd.f32 %v1849_v16, %v1816_v53  ;;  %v1873_v19 = vadd.f32 %v1872_v15, %v1866_v14  ;;  %v1899_v53 = vld [vmem:[%s2836_s4] sm:$0x1] (!%p2093_p5) }
 0x165   : > { %v1851_v21 = vadd.f32 %v1850_v4, %v1819_v61  ;;  %v1874_v6 = vadd.f32 %v1873_v19, %v1867_v17 }
 0x167   : > { %v1852_v23 = vadd.f32 %v1851_v21, %v1824_v55  ;;  %v1875_v24 = vadd.f32 %v1874_v6, %v1868_v8  ;;  %v1902_v55 = vld [vmem:[%s2837_s5] sm:$0x1] (!%p2093_p5) }
 0x169   : > { %v1853_v26 = vadd.f32 %v1852_v23, %v1827_v38  ;;  %v1876_v27 = vadd.f32 %v1875_v24, %v1869_v22 }
 0x16b   : > { %v1854_v59 = vrot.slane %v1853_v26, 4  ;;  %v1877_v28 = vadd.f32 %v1876_v27, %v1870_v25 }
 0x16d   : > { %v1855_v29 = vadd.f32 %v1854_v59, %v1853_v26  ;;  %v1878_v30 = vrot.slane %v1877_v28, 4 }
 0x16f   : > { %v1856_v32 = vrot.slane %v1855_v29, 2  ;;  %v1879_v33 = vadd.f32 %v1878_v30, %v1877_v28 }
 0x171   : > { %v1857_v18 = vadd.f32 %v1856_v32, %v1855_v29  ;;  %v1880_v34 = vrot.slane %v1879_v33, 2 }
 0x173   : > { %v1858_v36 = vrot.slane %v1857_v18, 1  ;;  %v1881_v20 = vadd.f32 %v1880_v34, %v1879_v33 }
 0x175   : > { %v1859_v39 = vadd.f32 %v1858_v36, %v1857_v18  ;;  %v1882_v40 = vrot.slane %v1881_v20, 1  ;;  %1889 = sbr.rel (%p2093_p5) target bundleno = 411 (0x19b), region = 52 }
 0x177   : > { %v1860_v42 = vadd.f32 %v1859_v39, %v1846_v37  ;;  %v1883_v43 = vadd.f32 %v1882_v40, %v1881_v20 }
 0x179   : > { %1861 = vst [vmem:[#allocation3] sm:$0x1] %v1860_v42  ;;  %v1884_v44 = vadd.f32 %v1883_v43, %v1862_v41 }
 0x17b   : > { %1885 = vst [vmem:[#allocation4] sm:$0x1] %v1884_v44 }
 0x180   : > { %v1890_v46 = vld [vmem:[#allocation3] sm:$0x1] }
 0x181   : > { %v1892_v48 = vmul.f32 0.0078125, %v1890_v46 }
 0x182   : > { %v1893_v47 = vld [vmem:[#allocation4] sm:$0x1] }
 0x183   : > { %v1894_v50 = vmul.f32 0.0078125, %v1893_v47  ;;  %v1895_v51 = vmul.f32 %v1892_v48, %v1892_v48 }
 0x185   : > { %v1896_v31 = vsub.f32 %v1894_v50, %v1895_v51 }
 0x187   : > { %v1897_v52 = vadd.f32 1e-05, %v1896_v31 }
 0x189   : > { %2446 = vrsqrt.f32 %v1897_v52 }
 0x193   : > { %v2447_v35 = vpop.eup %2446 }
 0x194   : > { %v1900_v54 = vmul.f32 %v2447_v35, %v1899_v53 }
 0x196   : > { %1901 = vst [vmem:[%s2839_s7] sm:$0x1] %v1900_v54  ;;  %v1903_v56 = vmul.f32 %v1900_v54, %v1892_v48 }
 0x198   : > { %v1904_v57 = vsub.f32 %v1902_v55, %v1903_v56 }
 0x19a   : > { %1905 = vst [vmem:[%s2840_s8] sm:$0x1] %v1904_v57 }
 0x19b PF: > { %s19_s27 = sadd.s32 1, %s2454_s27  }
 0x19c   : > { %p16_p6 = scmp.ge.s32.totalorder %s19_s27, 4  }
 0x19e   :  { %18 = sbr.rel (!%p16_p6) target bundleno = 1 (0x1), region = 100 }

// kernel: basic_block_forward.3
= control target key start
LH: loop header
LB: loop body
LE: loop exit
PB: predicated region body
PF: predicated region fallthrough
CT: control target
= control target key end

     0   :  { %s2928_s21 = smov 0   ;;  %s3372_s0 = inlined_call_operand.vmem [shape: bf16[2,36,16,128], index: 0, kind: input, shape index: {}]   ;;  %s3373_s1 = inlined_call_operand.vmem [shape: bf16[1152,128], index: 1, kind: input, shape index: {}]   ;;  %s3374_s2 = inlined_call_operand.vmem [shape: f32[1,128], index: 2, kind: input, shape index: {}]   ;;  %s3375_s3 = inlined_call_operand.vmem [shape: f32[1,128], index: 3, kind: input, shape index: {}]   ;;  %s3376_s4 = inlined_call_operand.vmem [shape: bf16[128,128], index: 4, kind: input, shape index: {}]   ;;  %s3377_s5 = inlined_call_operand.vmem [shape: f32[1,128], index: 5, kind: input, shape index: {}]   ;;  %s3378_s6 = inlined_call_operand.vmem [shape: f32[1,128], index: 6, kind: input, shape index: {}]   ;;  %s3379_s7 = inlined_call_operand.vmem [shape: bf16[2,8,8,128], index: 7, kind: output, shape index: {0}]   ;;  %s3380_s8 = inlined_call_operand.vmem [shape: f32[1,128], index: 8, kind: output, shape index: {1}]   ;;  %s3381_s9 = inlined_call_operand.vmem [shape: f32[1,128], index: 9, kind: output, shape index: {2}]   ;;  %s3382_s10 = inlined_call_operand.vmem [shape: bf16[2,8,8,128], index: 10, kind: output, shape index: {3}]   ;;  %s3383_s11 = inlined_call_operand.vmem [shape: f32[1,128], index: 11, kind: output, shape index: {4}]   ;;  %s3384_s12 = inlined_call_operand.vmem [shape: f32[1,128], index: 12, kind: output, shape index: {5}]  }
   0x1 LB: > { %s2934_s22 = sadd.s32 4294967295, %s2860_s21   ;;  %p2226_p0 = scmp.ge.s32.totalorder %s2860_s21, 1  ;;  %s2860_s21 = sphi %s2928_s21, %s23_s21  }
   0x2   : > { %p353_p1 = scmp.lt.s32.totalorder %s2860_s21, 3 }
   0x4   : > { %p354_p2 = pnand %p2226_p0, %p353_p1 }
   0x5   : > { %p400_p3 = scmp.lt.s32.totalorder (!%p354_p2), %s2934_s22, 1  ;;  %p2232_p4 = scmp.ne.s32.totalorder (!%p354_p2), %s2934_s22, 0 }
   0x6   : > { %357 = sbr.rel (%p354_p2) target bundleno = 400 (0x190), region = 48 }
   0xd   : > { %s401_s23 = scalar_select %p400_p3, %s2934_s22, 1 }
   0xe   : > { %419 = sbr.rel (%p2232_p4) target bundleno = 21 (0x15), region = 52  ;;  %v2862_v0 = vmov (!%p2232_p4), 0.0  }
   0xf   : > { %s2712_s24 = smul.u32 288, %s401_s23  ;;  %s2432_s25 = sshll.u32 %s401_s23, 5  ;;  %420 = vst [vmem:[#allocation2] sm:$0x1] (!%p2232_p4), %v2862_v0  ;;  %421 = vst [vmem:[#allocation3] sm:$0x1] (!%p2232_p4), %v2862_v0 }
  0x10   : > { %s2943_s28 = scalar_lea.vmem %s3379_s7, %s2432_s25  ;;  %s2948_s13 = scalar_lea.vmem %s3382_s10, %s2432_s25  ;;  %422 = vst [vmem:[#allocation4] sm:$0x1] (!%p2232_p4), %v2862_v0  ;;  %423 = vst [vmem:[#allocation5] sm:$0x1] (!%p2232_p4), %v2862_v0 }
  0x11   : > { %s2953_s16 = scalar_lea.vmem %s3372_s0, %s2712_s24 }
  0x15 PF: > { %v2722_v1 = vld [vmem:[%s3373_s1 + $0x40] sm:$0xff]   ;;  %v2726_v5 = vld [vmem:[%s3373_s1 + $0x48] sm:$0xff]   ;;  %v2730_v9 = vld [vmem:[%s3373_s1 + $0x50] sm:$0xff]   ;;  %p2429_p5 = scmp.ne.s32.totalorder %s2934_s22, 1 }
  0x16   : > { %v2723_v2 = vld [vmem:[%s3373_s1 + $0xc0] sm:$0xff]   ;;  %2480 = vmatprep.subr.bf16.mxu0 %v2722_v1  ;;  %v2727_v6 = vld [vmem:[%s3373_s1 + $0xc8] sm:$0xff]   ;;  %v2731_v10 = vld [vmem:[%s3373_s1 + $0xd0] sm:$0xff]  }
  0x17   : > { %v2724_v3 = vld [vmem:[%s3373_s1] sm:$0xff]   ;;  %2520 = vmatprep.subr.bf16.mxu1 %v2723_v2  ;;  %v2728_v7 = vld [vmem:[%s3373_s1 + $0x8] sm:$0xff]   ;;  %v2732_v11 = vld [vmem:[%s3373_s1 + $0x10] sm:$0xff]  }
  0x18   : > { %v2725_v4 = vld [vmem:[%s3373_s1 + $0x80] sm:$0xff]   ;;  %2481 = vmatpush3.bf16.msra.mxu0 %v2724_v3  ;;  %v2729_v8 = vld [vmem:[%s3373_s1 + $0x88] sm:$0xff]   ;;  %v2733_v12 = vld [vmem:[%s3373_s1 + $0x90] sm:$0xff]  }
  0x19   : > { %2521 = vmatpush3.bf16.msra.mxu1 %v2725_v4  ;;  %2482 = vmatprep.subr.bf16.mxu0 %v2726_v5  ;;  %v2734_v13 = vld [vmem:[%s3373_s1 + $0x58] sm:$0xff]   ;;  %v2738_v17 = vld [vmem:[%s3373_s1 + $0x60] sm:$0xff]   ;;  %v2742_v21 = vld [vmem:[%s3373_s1 + $0x68] sm:$0xff]  }
  0x1a   : > { %2522 = vmatprep.subr.bf16.mxu1 %v2727_v6  ;;  %v2735_v14 = vld [vmem:[%s3373_s1 + $0xd8] sm:$0xff]   ;;  %v2739_v18 = vld [vmem:[%s3373_s1 + $0xe0] sm:$0xff]   ;;  %v2743_v22 = vld [vmem:[%s3373_s1 + $0xe8] sm:$0xff]  }
  0x1b   : > { %v2736_v15 = vld [vmem:[%s3373_s1 + $0x18] sm:$0xff]   ;;  %v2740_v19 = vld [vmem:[%s3373_s1 + $0x20] sm:$0xff]   ;;  %v2744_v23 = vld [vmem:[%s3373_s1 + $0x28] sm:$0xff]  }
  0x1c   : > { %2483 = vmatpush3.bf16.msra.mxu0 %v2728_v7  ;;  %v2737_v16 = vld [vmem:[%s3373_s1 + $0x98] sm:$0xff]   ;;  %v2741_v20 = vld [vmem:[%s3373_s1 + $0xa0] sm:$0xff]   ;;  %v2745_v24 = vld [vmem:[%s3373_s1 + $0xa8] sm:$0xff]  }
  0x1d   : > { %2523 = vmatpush3.bf16.msra.mxu1 %v2729_v8  ;;  %2484 = vmatprep.subr.bf16.mxu0 %v2730_v9  ;;  %v2746_v25 = vld [vmem:[%s3373_s1 + $0x70] sm:$0xff]   ;;  %v2750_v29 = vld [vmem:[%s3373_s1 + $0x78] sm:$0xff]   ;;  %v424_v37 = vld [vmem:[%s2953_s16] sm:$0xf] }
  0x1e   : > { %2524 = vmatprep.subr.bf16.mxu1 %v2731_v10  ;;  %v2747_v26 = vld [vmem:[%s3373_s1 + $0xf0] sm:$0xff]   ;;  %v2751_v30 = vld [vmem:[%s3373_s1 + $0xf8] sm:$0xff]   ;;  %v425_v38 = vld [vmem:[%s2953_s16 + $0x8] sm:$0xf] }
  0x1f   : > { %v2748_v27 = vld [vmem:[%s3373_s1 + $0x30] sm:$0xff]   ;;  %v2752_v31 = vld [vmem:[%s3373_s1 + $0x38] sm:$0xff]   ;;  %v441_v39 = vld [vmem:[%s2953_s16 + $0x4] sm:$0x1]  ;;  %v2313_v41 = vcombine.low %v424_v37, %v425_v38 }
  0x20   : > { %2485 = vmatpush3.bf16.msra.mxu0 %v2732_v11  ;;  %v2749_v28 = vld [vmem:[%s3373_s1 + $0xb0] sm:$0xff]   ;;  %v2753_v32 = vld [vmem:[%s3373_s1 + $0xb8] sm:$0xff]   ;;  %v442_v40 = vld [vmem:[%s2953_s16 + $0xc] sm:$0x1]  ;;  %v2289_v42 = vcombine.low %v424_v37, %v441_v39 }
  0x21   : > { %2525 = vmatpush3.bf16.msra.mxu1 %v2733_v12  ;;  %2486 = vmatprep.subr.bf16.mxu0 %v2734_v13  ;;  %v2754_v33 = vld [vmem:[%s2953_s16 + $0x48] ss:$8 sps:$4 sm:$0xff]   ;;  %v2242_v35 = vld [vmem:[%s2953_s16 + $0x98] sm:$0xf]  ;;  %v2290_v43 = vcombine.low %v425_v38, %v442_v40  ;;  %v2761_v44 = vld [vmem:[%s3373_s1 + $0x140] sm:$0xff]  }
  0x22   : > { %2526 = vmatprep.subr.bf16.mxu1 %v2735_v14  ;;  %v2241_v34 = vld [vmem:[%s2953_s16 + $0x90] sm:$0xf]  ;;  %1541 = vmatprep.mubr.bf16.mxu0 %v2754_v33  ;;  %v2762_v45 = vld [vmem:[%s3373_s1 + $0x1c0] sm:$0xff]   ;;  %v544_v46 = vshll.u32 %v2289_v42, 16  ;;  %v542_v48 = vshrl.u32 %v2289_v42, 16  ;;  %v2765_v54 = vld [vmem:[%s3373_s1 + $0x148] sm:$0xff]  }
  0x23   : > { %v2316_v36 = vcombine.low %v2241_v34, %v2242_v35  ;;  %v551_v47 = vshll.u32 %v2290_v43, 16  ;;  %v549_v49 = vshrl.u32 %v2290_v43, 16  ;;  %v2763_v50 = vld [vmem:[%s3373_s1 + $0x100] sm:$0xff]   ;;  %v2257_v53 = vld [vmem:[%s2953_s16 + $0x94] sm:$0x1]  ;;  %v2767_v58 = vld [vmem:[%s3373_s1 + $0x108] sm:$0xff]  }
  0x24   : > { %2487 = vmatpush3.bf16.msra.mxu0 %v2736_v15  ;;  %v546_v51 = vrot.slane %v544_v46, 1  ;;  %v2764_v57 = vld [vmem:[%s3373_s1 + $0x180] sm:$0xff]   ;;  %v2766_v60 = vld [vmem:[%s3373_s1 + $0x1c8] sm:$0xff]   ;;  %v2258_v62 = vld [vmem:[%s2953_s16 + $0x9c] sm:$0x1]  ;;  %v3083_v63 = vcombine.low %v2241_v34, %v2257_v53 }
  0x25   : > { %2527 = vmatpush3.bf16.msra.mxu1 %v2737_v16  ;;  %2488 = vmatprep.subr.bf16.mxu0 %v2738_v17  ;;  %v553_v52 = vrot.slane %v551_v47, 1  ;;  %v2769_v61 = vld [vmem:[%s2953_s16 + $0x58] ss:$8 sps:$4 sm:$0xff]   ;;  %v2244_v1 = vld [vmem:[%s2953_s16 + $0xa8] sm:$0xf]  ;;  %v2776_v13 = vld [vmem:[%s3373_s1 + $0x150] sm:$0xff]   ;;  %v3099_v14 = vcombine.low %v2242_v35, %v2258_v62 }
  0x26   : > { %2528 = vmatprep.subr.bf16.mxu1 %v2739_v18  ;;  %1606 = vmatprep.mubr.bf16.mxu1 %v2316_v36  ;;  %v547_v55 = vor.u32 %v546_v51, %v542_v48  ;;  %v2243_v0 = vld [vmem:[%s2953_s16 + $0xa0] sm:$0xf]  ;;  %v2768_v2 = vld [vmem:[%s3373_s1 + $0x188] sm:$0xff]   ;;  %v426_v4 = vld [vmem:[%s2953_s16 + $0x10] sm:$0xf]  ;;  %v638_v10 = vshrl.u32 %v3083_v63, 16 }
  0x27   : > { %v554_v56 = vor.u32 %v553_v52, %v549_v49  ;;  %v2325_v3 = vcombine.low %v2243_v0, %v2244_v1  ;;  %v427_v5 = vld [vmem:[%s2953_s16 + $0x18] sm:$0xf]  ;;  %v2259_v6 = vld [vmem:[%s2953_s16 + $0xa4] sm:$0x1]  ;;  %v443_v7 = vld [vmem:[%s2953_s16 + $0x14] sm:$0x1] }
  0x28   : > { %2489 = vmatpush3.bf16.msra.mxu0 %v2740_v19  ;;  %v444_v8 = vld [vmem:[%s2953_s16 + $0x1c] sm:$0x1]  ;;  %v2322_v9 = vcombine.low %v426_v4, %v427_v5  ;;  %v2291_v11 = vcombine.low %v426_v4, %v443_v7  ;;  %v640_v15 = vshll.u32 %v3083_v63, 16  ;;  %v2260_v16 = vld [vmem:[%s2953_s16 + $0xac] sm:$0x1]  ;;  %v2777_v17 = vld [vmem:[%s3373_s1 + $0x1d0] sm:$0xff]  }
  0x29   : > { %2529 = vmatpush3.bf16.msra.mxu1 %v2741_v20  ;;  %2490 = vmatprep.subr.bf16.mxu0 %v2742_v21  ;;  %v2315_v59 = vcombine.low %v547_v55, %v554_v56  ;;  %v2292_v12 = vcombine.low %v427_v5, %v444_v8  ;;  %v2781_v33 = vld [vmem:[%s3373_s1 + $0x1d8] sm:$0xff]   ;;  %v2784_v39 = vld [vmem:[%s2953_s16 + $0x68] ss:$8 sps:$4 sm:$0xff]   ;;  %v2261_v47 = vld [vmem:[%s2953_s16 + $0xb4] sm:$0x1] }
  0x2a   : > { %2530 = vmatprep.subr.bf16.mxu1 %v2743_v22  ;;  %v558_v18 = vshll.u32 %v2291_v11, 16  ;;  %v556_v20 = vshrl.u32 %v2291_v11, 16  ;;  %v645_v22 = vshrl.u32 %v3099_v14, 16  ;;  %v642_v34 = vrot.slane %v640_v15, 1  ;;  %v2782_v35 = vld [vmem:[%s3373_s1 + $0x118] sm:$0xff]   ;;  %v2793_v62 = vld [vmem:[%s3373_s1 + $0x120] sm:$0xff]  }
  0x2b   : > { %v565_v19 = vshll.u32 %v2292_v12, 16  ;;  %v563_v21 = vshrl.u32 %v2292_v12, 16  ;;  %v2783_v38 = vld [vmem:[%s3373_s1 + $0x198] sm:$0xff]   ;;  %v2245_v40 = vld [vmem:[%s2953_s16 + $0xb0] sm:$0xf]  ;;  %v2795_v4 = vld [vmem:[%s3373_s1 + $0x168] sm:$0xff]  }
  0x2c   : > { %2491 = vmatpush3.bf16.msra.mxu0 %v2744_v23  ;;  %v2778_v23 = vld [vmem:[%s3373_s1 + $0x110] sm:$0xff]   ;;  %v429_v48 = vld [vmem:[%s2953_s16 + $0x28] sm:$0xf]  ;;  %v445_v49 = vld [vmem:[%s2953_s16 + $0x24] sm:$0x1] }
  0x2d   : > { %2531 = vmatpush3.bf16.msra.mxu1 %v2745_v24  ;;  %2492 = vmatprep.subr.bf16.mxu0 %v2746_v25  ;;  %v3110_v24 = vcombine.low %v2243_v0, %v2259_v6  ;;  %v560_v25 = vrot.slane %v558_v18, 1  ;;  %v2262_v56 = vld [vmem:[%s2953_s16 + $0xbc] sm:$0x1]  ;;  %v3153_v0 = vcombine.low %v2245_v40, %v2261_v47  ;;  %v2796_v8 = vld [vmem:[%s3373_s1 + $0x1e8] sm:$0xff]   ;;  %v430_v63 = vld [vmem:[%s2953_s16 + $0x30] sm:$0xf] }
  0x2e   : > { %2532 = vmatprep.subr.bf16.mxu1 %v2747_v26  ;;  %v567_v26 = vrot.slane %v565_v19, 1  ;;  %v2797_v11 = vld [vmem:[%s3373_s1 + $0x128] sm:$0xff]   ;;  %v2799_v19 = vld [vmem:[%s2953_s16 + $0x78] ss:$8 sps:$4 sm:$0xff]  }
  0x2f   : > { %v654_v36 = vshll.u32 %v3110_v24, 16  ;;  %v652_v46 = vshrl.u32 %v3110_v24, 16  ;;  %v2813_v24 = vld [vmem:[%s3373_s1 + $0x1b8] sm:$0xff]  }
  0x30   : > { %2493 = vmatpush3.bf16.msra.mxu0 %v2748_v27  ;;  %v2779_v27 = vld [vmem:[%s3373_s1 + $0x190] sm:$0xff]  }
  0x31   : > { %2533 = vmatpush3.bf16.msra.mxu1 %v2749_v28  ;;  %2494 = vmatprep.subr.bf16.mxu0 %v2750_v29  ;;  %v2780_v28 = vld [vmem:[%s3373_s1 + $0x158] sm:$0xff]   ;;  %v647_v29 = vshll.u32 %v3099_v14, 16  ;;  %v3144_v55 = vrot.slane %v654_v36, 1 }
  0x32   : > { %2534 = vmatprep.subr.bf16.mxu1 %v2751_v30  ;;  %v3119_v30 = vcombine.low %v2244_v1, %v2260_v16  ;;  %v2798_v16 = vld [vmem:[%s3373_s1 + $0x1a8] sm:$0xff]  }
  0x33   : > { %v649_v42 = vrot.slane %v647_v29, 1  ;;  %v448_v29 = vld [vmem:[%s2953_s16 + $0x3c] sm:$0x1] }
  0x34   : > { %2495 = vmatpush3.bf16.msra.mxu0 %v2752_v31  ;;  %v561_v31 = vor.u32 %v560_v25, %v556_v20  ;;  %v661_v43 = vshll.u32 %v3119_v30, 16  ;;  %v2247_v20 = vld [vmem:[%s2953_s16 + $0xc0] sm:$0xf]  ;;  %v2263_v25 = vld [vmem:[%s2953_s16 + $0xc4] sm:$0x1] }
  0x35   : > { %2535 = vmatpush3.bf16.msra.mxu1 %v2753_v32  ;;  %2560 = vmatprep.subr.bf16.mxu0 %v2761_v44  ;;  %v568_v32 = vor.u32 %v567_v26, %v563_v21  ;;  %v650_v18 = vor.u32 %v649_v42, %v645_v22  ;;  %v666_v26 = vshrl.u32 %v3153_v0, 16  ;;  %v2809_v42 = vld [vmem:[%s3373_s1 + $0x1b0] sm:$0xff]  }
  0x36   : > { %2600 = vmatprep.subr.bf16.mxu1 %v2762_v45  ;;  %v428_v45 = vld [vmem:[%s2953_s16 + $0x20] sm:$0xf]  ;;  %v663_v12 = vrot.slane %v661_v43, 1  ;;  %v2264_v43 = vld [vmem:[%s2953_s16 + $0xcc] sm:$0x1] }
  0x37   : > { %1542 = vmatmul.mubr.bf16.vlgmr.msra.gmra.mrb[0].mxu0 %v2313_v41  ;;  %v2324_v37 = vcombine.low %v561_v31, %v568_v32  ;;  %v2246_v41 = vld [vmem:[%s2953_s16 + $0xb8] sm:$0xf]  ;;  %v2293_v51 = vcombine.low %v428_v45, %v445_v49  ;;  %v2331_v53 = vcombine.low %v428_v45, %v429_v48  ;;  %v2806_v32 = vld [vmem:[%s3373_s1 + $0x170] sm:$0xff]   ;;  %v657_v49 = vor.u32 %v3144_v55, %v652_v46 }
  0x38   : > { %2561 = vmatpush3.bf16.msra.mxu0 %v2763_v50  ;;  %1607 = vmatmul.mubr.bf16.vlgmr.msra.gmra.mrb[0].mxu1 %v2315_v59  ;;  %v2334_v44 = vcombine.low %v2245_v40, %v2246_v41  ;;  %v446_v50 = vld [vmem:[%s2953_s16 + $0x2c] sm:$0x1]  ;;  %v3161_v5 = vcombine.low %v2246_v41, %v2262_v56  ;;  %v2808_v41 = vld [vmem:[%s3373_s1 + $0x130] sm:$0xff]   ;;  %v2810_v45 = vld [vmem:[%s3373_s1 + $0x178] sm:$0xff]  }
  0x39   : > { %2562 = vmatprep.subr.bf16.mxu0 %v2765_v54  ;;  %2601 = vmatpush3.bf16.msra.mxu1 %v2764_v57  ;;  %v2294_v52 = vcombine.low %v429_v48, %v446_v50  ;;  %v2791_v54 = vld [vmem:[%s3373_s1 + $0x160] sm:$0xff]   ;;  %v572_v57 = vshll.u32 %v2293_v51, 16  ;;  %v570_v59 = vshrl.u32 %v2293_v51, 16  ;;  %v2811_v48 = vld [vmem:[%s3373_s1 + $0x1f8] sm:$0xff]  }
  0x3a   : > { %1549 = vmatprep.mubr.bf16.mxu0 %v2769_v61  ;;  %2602 = vmatprep.subr.bf16.mxu1 %v2766_v60  ;;  %v2792_v61 = vld [vmem:[%s3373_s1 + $0x1e0] sm:$0xff]   ;;  %v675_v21 = vshll.u32 %v3161_v5, 16 }
  0x3b   : > { %1614 = vmatprep.mubr.bf16.mxu1 %v2325_v3  ;;  %v577_v60 = vshrl.u32 %v2294_v52, 16  ;;  %v574_v1 = vrot.slane %v572_v57, 1  ;;  %v2794_v3 = vld [vmem:[%s3373_s1 + $0x1a0] sm:$0xff]   ;;  %v2814_v57 = vld [vmem:[%s2953_s16 + $0x50] ss:$8 sps:$4 sm:$0xff]  }
  0x3c   : > { %2563 = vmatpush3.bf16.msra.mxu0 %v2767_v58  ;;  %v579_v58 = vshll.u32 %v2294_v52, 16  ;;  %v677_v56 = vrot.slane %v675_v21, 1  ;;  %v2284_v21 = vld [vmem:[%s2953_s16 + $0x24] sm:$0x1] }
  0x3d   : > { %2603 = vmatpush3.bf16.msra.mxu1 %v2768_v2  ;;  %2564 = vmatprep.subr.bf16.mxu0 %v2776_v13  ;;  %v575_v6 = vor.u32 %v574_v1, %v570_v59  ;;  %v668_v13 = vshll.u32 %v3153_v0, 16  ;;  %v3222_v59 = vld [vmem:[%s2953_s16 + $0xd8] ss:$8 sps:$4 sm:$0xff]   ;;  %v3250_v0 = vld [vmem:[%s2953_s16 + $0xe8] ss:$8 sps:$4 sm:$0xff]  }
  0x3e   : > { %2604 = vmatprep.subr.bf16.mxu1 %v2777_v17  ;;  %v581_v2 = vrot.slane %v579_v58, 1  ;;  %v643_v17 = vor.u32 %v642_v34, %v638_v10  ;;  %v447_v10 = vld [vmem:[%s2953_s16 + $0x34] sm:$0x1] }
  0x3f   : > { %1550 = vmatmul.mubr.bf16.gmra.mrb[4].mxu0 %v2322_v9  ;;  %v659_v9 = vshrl.u32 %v3119_v30, 16  ;;  %v2295_v14 = vcombine.low %v430_v63, %v447_v10  ;;  %v670_v34 = vrot.slane %v668_v13, 1  ;;  %v2267_v13 = vld [vmem:[%s2953_s16 + $0x18] sm:$0xf] }
  0x40   : > { %2565 = vmatpush3.bf16.msra.mxu0 %v2778_v23  ;;  %1615 = vmatmul.mubr.bf16.gmra.mrb[4].mxu1 %v2324_v37  ;;  %v582_v7 = vor.u32 %v581_v2, %v577_v60  ;;  %v2248_v23 = vld [vmem:[%s2953_s16 + $0xc8] sm:$0xf]  ;;  %v2318_v22 = vcombine.low %v643_v17, %v650_v18  ;;  %v2818_v2 = vld [vmem:[%s3376_s4] sm:$0xff]   ;;  %v2283_v17 = vld [vmem:[%s2953_s16 + $0x1c] sm:$0x1] }
  0x41   : > { %2605 = vmatpush3.bf16.msra.mxu1 %v2779_v27  ;;  %2566 = vmatprep.subr.bf16.mxu0 %v2780_v28  ;;  %v2343_v27 = vcombine.low %v2247_v20, %v2248_v23  ;;  %v431_v28 = vld [vmem:[%s2953_s16 + $0x38] sm:$0xf]  ;;  %v586_v36 = vshll.u32 %v2295_v14, 16  ;;  %v584_v37 = vshrl.u32 %v2295_v14, 16  ;;  %v664_v50 = vor.u32 %v663_v12, %v659_v9  ;;  %v3225_v60 = vld [vmem:[%s2953_s16 + $0x8] sm:$0xf] }
  0x42   : > { %2606 = vmatprep.subr.bf16.mxu1 %v2781_v33  ;;  %1557 = vmatprep.mubr.bf16.mxu0 %v2784_v39  ;;  %v2333_v15 = vcombine.low %v575_v6, %v582_v7  ;;  %v2340_v30 = vcombine.low %v430_v63, %v431_v28  ;;  %v2296_v31 = vcombine.low %v431_v28, %v448_v29  ;;  %v2807_v33 = vld [vmem:[%s3373_s1 + $0x1f0] sm:$0xff]   ;;  %v2820_v12 = vld [vmem:[%s3376_s4 + $0x8] sm:$0xff]   ;;  %v2829_v14 = vld [vmem:[%s3376_s4 + $0x18] sm:$0xff]  }
  0x43   : > { %1622 = vmatprep.mubr.bf16.mxu1 %v2334_v44  ;;  %v588_v44 = vrot.slane %v586_v36, 1  ;;  %v2304_v46 = vcombine.low %v2248_v23, %v2264_v43  ;;  %v2327_v58 = vcombine.low %v657_v49, %v664_v50  ;;  %v2827_v23 = vld [vmem:[%s3376_s4 + $0x10] sm:$0xff]   ;;  %v2271_v50 = vld [vmem:[%s2953_s16 + $0x38] sm:$0xf] }
  0x44   : > { %2567 = vmatpush3.bf16.msra.mxu0 %v2782_v35  ;;  %v673_v35 = vshrl.u32 %v3161_v5, 16  ;;  %v593_v39 = vshll.u32 %v2296_v31, 16  ;;  %v591_v40 = vshrl.u32 %v2296_v31, 16  ;;  %v3278_v31 = vld [vmem:[%s2953_s16 + $0xf8] ss:$8 sps:$4 sm:$0xff]  }
  0x45   : > { %2607 = vmatpush3.bf16.msra.mxu1 %v2783_v38  ;;  %2568 = vmatprep.subr.bf16.mxu0 %v2791_v54  ;;  %v3195_v38 = vcombine.low %v2247_v20, %v2263_v25  ;;  %v589_v51 = vor.u32 %v588_v44, %v584_v37  ;;  %v2812_v54 = vld [vmem:[%s3373_s1 + $0x138] sm:$0xff]   ;;  %v689_v1 = vshll.u32 %v2304_v46, 16  ;;  %v687_v9 = vshrl.u32 %v2304_v46, 16  ;;  %v2826_v20 = vld [vmem:[%s3373_s1 + $0x210] sm:$0xff]  }
  0x46   : > { %2608 = vmatprep.subr.bf16.mxu1 %v2792_v61  ;;  %v595_v47 = vrot.slane %v593_v39, 1  ;;  %v3228_v61 = vld [vmem:[%s2953_s16 + $0x10] sm:$0xf]  ;;  %v678_v5 = vor.u32 %v677_v56, %v673_v35  ;;  %v2828_v25 = vld [vmem:[%s3373_s1 + $0x218] sm:$0xff]   ;;  %v2286_v35 = vld [vmem:[%s2953_s16 + $0x34] sm:$0x1] }
  0x47   : > { %1558 = vmatmul.mubr.bf16.gmra.mrb[8].mxu0 %v2331_v53  ;;  %v682_v52 = vshll.u32 %v3195_v38, 16  ;;  %v680_v6 = vshrl.u32 %v3195_v38, 16  ;;  %v2319_v7 = vcombine.low %v3225_v60, %v3228_v61  ;;  %v2270_v38 = vld [vmem:[%s2953_s16 + $0x30] sm:$0xf] }
  0x48   : > { %2569 = vmatpush3.bf16.msra.mxu0 %v2793_v62  ;;  %1623 = vmatmul.mubr.bf16.gmra.mrb[8].mxu1 %v2333_v15  ;;  %v596_v53 = vor.u32 %v595_v47, %v591_v40  ;;  %v2817_v62 = vld [vmem:[%s3373_s1 + $0x200] sm:$0xff]   ;;  %v691_v15 = vrot.slane %v689_v1, 1  ;;  %v2310_v43 = vcombine.low %v2270_v38, %v2286_v35  ;;  %v2838_v47 = vld [vmem:[%s3376_s4 + $0x28] sm:$0xff]   ;;  %v2845_v46 = vld [vmem:[%s3376_s4 + $0x30] sm:$0xff]  }
  0x49   : > { %2609 = vmatpush3.bf16.msra.mxu1 %v2794_v3  ;;  %2570 = vmatprep.subr.bf16.mxu0 %v2795_v4  ;;  %v2819_v3 = vld [vmem:[%s3373_s1 + $0x208] sm:$0xff]   ;;  %v671_v4 = vor.u32 %v670_v34, %v666_v26 }
  0x4a   : > { %2610 = vmatprep.subr.bf16.mxu1 %v2796_v8  ;;  %1565 = vmatprep.mubr.bf16.mxu0 %v2799_v19  ;;  %v2342_v55 = vcombine.low %v589_v51, %v596_v53  ;;  %v684_v8 = vrot.slane %v682_v52, 1  ;;  %v3255_v19 = vcombine.low %v2267_v13, %v2283_v17  ;;  %v2285_v34 = vld [vmem:[%s2953_s16 + $0x2c] sm:$0x1]  ;;  %v3303_v49 = vld [vmem:[%s2953_s16 + $0x108] ss:$8 sps:$4 sm:$0xff]   ;;  %v771_v53 = vshll.u32 %v2310_v43, 16 }
  0x4b   : > { %1630 = vmatprep.mubr.bf16.mxu1 %v2343_v27  ;;  %v2336_v18 = vcombine.low %v671_v4, %v678_v5  ;;  %v692_v27 = vor.u32 %v691_v15, %v687_v9  ;;  %v2272_v51 = vld [vmem:[%s2953_s16 + $0x40] sm:$0xf]  ;;  %v2287_v52 = vld [vmem:[%s2953_s16 + $0x3c] sm:$0x1]  ;;  %v2281_v1 = vld [vmem:[%s2953_s16 + $0xc] sm:$0x1] }
  0x4c   : > { %2571 = vmatpush3.bf16.msra.mxu0 %v2797_v11  ;;  %v2821_v11 = vld [vmem:[%s2953_s16 + $0x60] ss:$8 sps:$4 sm:$0xff]   ;;  %v685_v26 = vor.u32 %v684_v8, %v680_v6  ;;  %v748_v28 = vshrl.u32 %v3255_v19, 16  ;;  %v750_v10 = vshll.u32 %v3255_v19, 16  ;;  %v2305_v5 = vcombine.low %v3225_v60, %v2281_v1 }
  0x4d   : > { %2611 = vmatpush3.bf16.msra.mxu1 %v2798_v16  ;;  %2572 = vmatprep.subr.bf16.mxu0 %v2806_v32  ;;  %v2268_v16 = vld [vmem:[%s2953_s16 + $0x20] sm:$0xf]  ;;  %v773_v8 = vrot.slane %v771_v53, 1 }
  0x4e   : > { %2612 = vmatprep.subr.bf16.mxu1 %v2807_v33  ;;  %v3268_v63 = vcombine.low %v2268_v16, %v2284_v21  ;;  %v2328_v29 = vcombine.low %v2267_v13, %v2268_v16  ;;  %v2835_v32 = vld [vmem:[%s3373_s1 + $0x220] sm:$0xff]   ;;  %v2269_v33 = vld [vmem:[%s2953_s16 + $0x28] sm:$0xf]  ;;  %v2345_v36 = vcombine.low %v685_v26, %v692_v27  ;;  %v752_v39 = vrot.slane %v750_v10, 1 }
  0x4f   : > { %1566 = vmatmul.mubr.bf16.gmra.mrb[12].mxu0 %v2340_v30  ;;  %v2830_v30 = vld [vmem:[%s2953_s16 + $0x70] ss:$8 sps:$4 sm:$0xff]   ;;  %v3286_v37 = vcombine.low %v2269_v33, %v2285_v34  ;;  %v734_v13 = vshrl.u32 %v2305_v5, 16  ;;  %v736_v15 = vshll.u32 %v2305_v5, 16 }
  0x50   : > { %1671 = vmatprep.mubr.bf16.mxu0 %v2318_v22  ;;  %2573 = vmatpush3.bf16.msra.mxu0 %v2808_v41  ;;  %v755_v22 = vshrl.u32 %v3268_v63, 16  ;;  %v757_v40 = vshll.u32 %v3268_v63, 16  ;;  %v2836_v41 = vld [vmem:[%s3376_s4 + $0x20] sm:$0xff]   ;;  %v753_v9 = vor.u32 %v752_v39, %v748_v28 }
  0x51   : > { %2613 = vmatpush3.bf16.msra.mxu1 %v2809_v42  ;;  %2574 = vmatprep.subr.bf16.mxu0 %v2810_v45  ;;  %v2837_v42 = vld [vmem:[%s3373_s1 + $0x228] sm:$0xff]   ;;  %v764_v44 = vshll.u32 %v3286_v37, 16  ;;  %v2337_v45 = vcombine.low %v2269_v33, %v2270_v38 }
  0x52   : > { %2614 = vmatprep.subr.bf16.mxu1 %v2811_v48  ;;  %1631 = vmatmul.mubr.bf16.gmra.mrb[12].mxu1 %v2342_v55  ;;  %v2839_v48 = vld [vmem:[%s2953_s16 + $0x80] ss:$8 sps:$4 sm:$0xff]   ;;  %v759_v56 = vrot.slane %v757_v40, 1  ;;  %v2311_v55 = vcombine.low %v2271_v50, %v2287_v52 }
  0x53   : > { %1736 = vmatprep.mubr.bf16.mxu1 %v2814_v57  ;;  %v2846_v57 = vld [vmem:[%s3373_s1 + $0x238] sm:$0xff]   ;;  %v766_v4 = vrot.slane %v764_v44, 1 }
  0x54   : > { %2575 = vmatpush3.bf16.msra.mxu0 %v2812_v54  ;;  %v2844_v54 = vld [vmem:[%s3373_s1 + $0x230] sm:$0xff]   ;;  %v778_v60 = vshll.u32 %v2311_v55, 16  ;;  %v776_v27 = vshrl.u32 %v2311_v55, 16 }
  0x55   : > { %2615 = vmatpush3.bf16.msra.mxu1 %v2813_v24  ;;  %2664 = vmatprep.subr.bf16.mxu0 %v2817_v62  ;;  %v2288_v24 = vld [vmem:[%s2953_s16 + $0x44] sm:$0x1] }
  0x56   : > { %2688 = vmatprep.subr.bf16.mxu1 %v2818_v2  ;;  %v780_v63 = vrot.slane %v778_v60, 1 }
  0x57   : > { %1672 = vmatmul.mubr.bf16.vlgmr.msra.gmra.mrb[16].mxu0 %v3222_v59 }
  0x58   : > { %1679 = vmatprep.mubr.bf16.mxu0 %v2327_v58  ;;  %2665 = vmatpush3.bf16.msra.mxu0 %v2817_v62  ;;  %v2312_v58 = vcombine.low %v2272_v51, %v2288_v24  ;;  %v2346_v62 = vcombine.low %v2271_v50, %v2272_v51 }
  0x59   : > { %2666 = vmatprep.subr.bf16.mxu0 %v2819_v3 }
  0x5a   : > { %1737 = vmatmul.mubr.bf16.vlgmr.msra.gmra.mrb[16].mxu1 %v2319_v7  ;;  %v769_v7 = vshrl.u32 %v2310_v43, 16  ;;  %v783_v28 = vshrl.u32 %v2312_v58, 16 }
  0x5b   : > { %2689 = vmatpush3.bf16.msra.mxu1 %v2818_v2  ;;  %1744 = vmatprep.mubr.bf16.mxu1 %v2821_v11  ;;  %v2282_v2 = vld [vmem:[%s2953_s16 + $0x14] sm:$0x1]  ;;  %v760_v11 = vor.u32 %v759_v56, %v755_v22 }
  0x5c   : > { %2667 = vmatpush3.bf16.msra.mxu0 %v2819_v3  ;;  %2690 = vmatprep.subr.bf16.mxu1 %v2820_v12  ;;  %v762_v3 = vshrl.u32 %v3286_v37, 16  ;;  %v2306_v6 = vcombine.low %v3228_v61, %v2282_v2  ;;  %v738_v61 = vrot.slane %v736_v15, 1  ;;  %v774_v21 = vor.u32 %v773_v8, %v769_v7 }
  0x5d   : > { %2668 = vmatprep.subr.bf16.mxu0 %v2826_v20  ;;  %v2330_v26 = vcombine.low %v753_v9, %v760_v11 }
  0x5e   : > { %v741_v16 = vshrl.u32 %v2306_v6, 16  ;;  %v743_v17 = vshll.u32 %v2306_v6, 16  ;;  %v767_v19 = vor.u32 %v766_v4, %v762_v3 }
  0x5f   : > { %1680 = vmatmul.mubr.bf16.gmra.mrb[20].mxu0 %v3250_v0  ;;  %2691 = vmatpush3.bf16.msra.mxu1 %v2820_v12  ;;  %v2847_v12 = vld [vmem:[%s3376_s4 + $0x38] sm:$0xff]  }
  0x60   : > { %1687 = vmatprep.mubr.bf16.mxu0 %v2336_v18  ;;  %2669 = vmatpush3.bf16.msra.mxu0 %v2826_v20  ;;  %v785_v18 = vshll.u32 %v2312_v58, 16  ;;  %v745_v20 = vrot.slane %v743_v17, 1 }
  0x61   : > { %2670 = vmatprep.subr.bf16.mxu0 %v2828_v25  ;;  %2692 = vmatprep.subr.bf16.mxu1 %v2827_v23 }
  0x62   : > { %1745 = vmatmul.mubr.bf16.gmra.mrb[20].mxu1 %v2328_v29  ;;  %v787_v10 = vrot.slane %v785_v18, 1 }
  0x63   : > { %2693 = vmatpush3.bf16.msra.mxu1 %v2827_v23  ;;  %1752 = vmatprep.mubr.bf16.mxu1 %v2830_v30  ;;  %v739_v23 = vor.u32 %v738_v61, %v734_v13  ;;  %v781_v30 = vor.u32 %v780_v63, %v776_v27 }
  0x64   : > { %2671 = vmatpush3.bf16.msra.mxu0 %v2828_v25  ;;  %2694 = vmatprep.subr.bf16.mxu1 %v2829_v14  ;;  %v746_v25 = vor.u32 %v745_v20, %v741_v16  ;;  %v788_v22 = vor.u32 %v787_v10, %v783_v28 }
  0x65   : > { %2672 = vmatprep.subr.bf16.mxu0 %v2835_v32 }
  0x66   : > { %v2321_v29 = vcombine.low %v739_v23, %v746_v25 }
  0x67   : > { %1688 = vmatmul.mubr.bf16.gmra.mrb[24].mxu0 %v3278_v31  ;;  %2695 = vmatpush3.bf16.msra.mxu1 %v2829_v14  ;;  %v2339_v14 = vcombine.low %v767_v19, %v774_v21 }
  0x68   : > { %1695 = vmatprep.mubr.bf16.mxu0 %v2345_v36  ;;  %2673 = vmatpush3.bf16.msra.mxu0 %v2835_v32 }
  0x69   : > { %2674 = vmatprep.subr.bf16.mxu0 %v2837_v42  ;;  %2696 = vmatprep.subr.bf16.mxu1 %v2836_v41 }
  0x6a   : > { %1753 = vmatmul.mubr.bf16.gmra.mrb[24].mxu1 %v2337_v45 }
  0x6b   : > { %2697 = vmatpush3.bf16.msra.mxu1 %v2836_v41  ;;  %1760 = vmatprep.mubr.bf16.mxu1 %v2839_v48 }
  0x6c   : > { %2675 = vmatpush3.bf16.msra.mxu0 %v2837_v42  ;;  %2698 = vmatprep.subr.bf16.mxu1 %v2838_v47 }
  0x6d   : > { %2676 = vmatprep.subr.bf16.mxu0 %v2844_v54 }
  0x6f   : > { %1696 = vmatmul.mubr.bf16.gmra.mrb[28].mxu0 %v3303_v49  ;;  %2699 = vmatpush3.bf16.msra.mxu1 %v2838_v47 }
  0x70   : > { %2677 = vmatpush3.bf16.msra.mxu0 %v2844_v54  ;;  %2700 = vmatprep.subr.bf16.mxu1 %v2845_v46 }
  0x71   : > { %2678 = vmatprep.subr.bf16.mxu0 %v2846_v57  ;;  %2680 = vmatprep.mubr.bf16.mxu0 %v2321_v29 }
  0x72   : > { %1761 = vmatmul.mubr.bf16.gmra.mrb[28].mxu1 %v2346_v62 }
  0x73   : > { %2701 = vmatpush3.bf16.msra.mxu1 %v2845_v46  ;;  %2704 = vmatprep.mubr.bf16.mxu1 %v3222_v59  ;;  %v2348_v59 = vcombine.low %v781_v30, %v788_v22 }
  0x74   : > { %2679 = vmatpush3.bf16.msra.mxu0 %v2846_v57  ;;  %2702 = vmatprep.subr.bf16.mxu1 %v2847_v12 }
  0x77   : > { %2703 = vmatpush3.bf16.msra.mxu1 %v2847_v12  ;;  %2681 = vmatmul.mubr.bf16.vlgmr.msra.gmra.mrb[32].mxu0 %v2330_v26 }
  0x78   : > { %2684 = vmatprep.mubr.bf16.mxu0 %v2339_v14 }
  0x7a   : > { %2705 = vmatmul.mubr.bf16.vlgmr.msra.gmra.mrb[32].mxu1 %v3250_v0 }
  0x7b   : > { %2708 = vmatprep.mubr.bf16.mxu1 %v3278_v31 }
  0x7f   : > { %2685 = vmatmul.mubr.bf16.gmra.mrb[36].mxu0 %v2348_v59 }
  0x82   : > { %2709 = vmatmul.mubr.bf16.gmra.mrb[36].mxu1 %v3303_v49 }
 0x10a   : > { %v2496_v32 = vpop.f32.mrb[0].mxu0 }
 0x10b   : > { %v2497_v33 = vpop.f32.mrb[1].mxu0  ;;  %v2536_v38 = vpop.f32.mrb[0].mxu1 }
 0x10c   : > { %v2498_v34 = vadd.f32 %v2497_v33, %v2496_v32  ;;  %v2499_v35 = vpop.f32.mrb[2].mxu0  ;;  %v2537_v39 = vpop.f32.mrb[1].mxu1 }
 0x10d   : > { %v2500_v36 = vpop.f32.mrb[3].mxu0  ;;  %v2538_v40 = vadd.f32 %v2537_v39, %v2536_v38  ;;  %v2539_v41 = vpop.f32.mrb[2].mxu1 }
 0x10e   : > { %v2501_v37 = vadd.f32 %v2500_v36, %v2499_v35  ;;  %v2540_v42 = vpop.f32.mrb[3].mxu1 }
 0x10f   : > { %v1609_v43 = vadd.f32 %v2538_v40, %v2498_v34  ;;  %v2541_v0 = vadd.f32 %v2540_v42, %v2539_v41 }
 0x111   : > { %v1612_v31 = vadd.f32 %v2541_v0, %v2501_v37 }
 0x112   : > { %v2502_v44 = vpop.f32.mrb[4].mxu0 }
 0x113   : > { %v2503_v45 = vpop.f32.mrb[5].mxu0  ;;  %v2542_v51 = vpop.f32.mrb[4].mxu1 }
 0x114   : > { %v2504_v47 = vadd.f32 %v2503_v45, %v2502_v44  ;;  %v2505_v48 = vpop.f32.mrb[6].mxu0  ;;  %v2543_v52 = vpop.f32.mrb[5].mxu1 }
 0x115   : > { %v2506_v50 = vpop.f32.mrb[7].mxu0  ;;  %v2544_v53 = vadd.f32 %v2543_v52, %v2542_v51  ;;  %v2545_v54 = vpop.f32.mrb[6].mxu1 }
 0x116   : > { %v2507_v49 = vadd.f32 %v2506_v50, %v2505_v48  ;;  %v2546_v24 = vpop.f32.mrb[7].mxu1 }
 0x117   : > { %v1617_v56 = vadd.f32 %v2544_v53, %v2504_v47  ;;  %v2547_v46 = vadd.f32 %v2546_v24, %v2545_v54 }
 0x119   : > { %v1620_v58 = vadd.f32 %v2547_v46, %v2507_v49 }
 0x11a   : > { %v2508_v55 = vpop.f32.mrb[8].mxu0 }
 0x11b   : > { %v2509_v57 = vpop.f32.mrb[9].mxu0  ;;  %v2548_v4 = vpop.f32.mrb[8].mxu1 }
 0x11c   : > { %v2510_v62 = vadd.f32 %v2509_v57, %v2508_v55  ;;  %v2511_v1 = vpop.f32.mrb[10].mxu0  ;;  %v2549_v5 = vpop.f32.mrb[9].mxu1 }
 0x11d   : > { %v2512_v2 = vpop.f32.mrb[11].mxu0  ;;  %v2550_v6 = vadd.f32 %v2549_v5, %v2548_v4  ;;  %v2551_v7 = vpop.f32.mrb[10].mxu1 }
 0x11e   : > { %v2513_v3 = vadd.f32 %v2512_v2, %v2511_v1  ;;  %v2552_v8 = vpop.f32.mrb[11].mxu1 }
 0x11f   : > { %v1625_v9 = vadd.f32 %v2550_v6, %v2510_v62  ;;  %v2553_v11 = vadd.f32 %v2552_v8, %v2551_v7 }
 0x121   : > { %v1628_v15 = vadd.f32 %v2553_v11, %v2513_v3 }
 0x122   : > { %v2514_v12 = vpop.f32.mrb[12].mxu0 }
 0x123   : > { %v2515_v13 = vpop.f32.mrb[13].mxu0 }
 0x124   : > { %v2516_v16 = vadd.f32 %v2515_v13, %v2514_v12  ;;  %v2517_v17 = vpop.f32.mrb[14].mxu0 }
 0x125   : > { %v2518_v60 = vpop.f32.mrb[15].mxu0  ;;  %v2554_v61 = vpop.f32.mrb[12].mxu1 }
 0x126   : > { %v2519_v18 = vadd.f32 %v2518_v60, %v2517_v17  ;;  %v2555_v20 = vpop.f32.mrb[13].mxu1 }
 0x127   : > { %v2556_v21 = vadd.f32 %v2555_v20, %v2554_v61  ;;  %v2557_v23 = vpop.f32.mrb[14].mxu1 }
 0x128   : > { %v2558_v26 = vpop.f32.mrb[15].mxu1 }
 0x129   : > { %v1633_v28 = vadd.f32 %v2556_v21, %v2516_v16  ;;  %v2559_v10 = vadd.f32 %v2558_v26, %v2557_v23 }
 0x12a   : > { %v2576_v19 = vpop.f32.mrb[16].mxu0 }
 0x12b   : > { %v2577_v25 = vpop.f32.mrb[17].mxu0  ;;  %v1636_v22 = vadd.f32 %v2559_v10, %v2519_v18 }
 0x12c   : > { %v2578_v27 = vadd.f32 %v2577_v25, %v2576_v19  ;;  %v2579_v63 = vpop.f32.mrb[18].mxu0 }
 0x12d   : > { %v2580_v29 = vpop.f32.mrb[19].mxu0  ;;  %v2616_v32 = vpop.f32.mrb[16].mxu1 }
 0x12e   : > { %v1674_v14 = vadd.f32 %v2578_v27, %v1609_v43  ;;  %v2581_v30 = vadd.f32 %v2580_v29, %v2579_v63  ;;  %v2617_v33 = vpop.f32.mrb[17].mxu1 }
 0x12f   : > { %v2618_v34 = vadd.f32 %v2617_v33, %v2616_v32  ;;  %v2619_v35 = vpop.f32.mrb[18].mxu1 }
 0x130   : > { %v1677_v59 = vadd.f32 %v2581_v30, %v1612_v31  ;;  %v2620_v37 = vpop.f32.mrb[19].mxu1 }
 0x131   : > { %v2621_v39 = vadd.f32 %v2620_v37, %v2619_v35  ;;  %v1739_v42 = vadd.f32 %v2618_v34, %v1674_v14 }
 0x132   : > { %v2582_v36 = vpop.f32.mrb[20].mxu0 }
 0x133   : > { %v2583_v38 = vpop.f32.mrb[21].mxu0  ;;  %v1742_v47 = vadd.f32 %v2621_v39, %v1677_v59 }
 0x134   : > { %v2584_v40 = vadd.f32 %v2583_v38, %v2582_v36  ;;  %v2585_v41 = vpop.f32.mrb[22].mxu0 }
 0x135   : > { %v2586_v0 = vpop.f32.mrb[23].mxu0  ;;  %v2622_v48 = vpop.f32.mrb[20].mxu1 }
 0x136   : > { %v1682_v44 = vadd.f32 %v2584_v40, %v1617_v56  ;;  %v2587_v45 = vadd.f32 %v2586_v0, %v2585_v41  ;;  %v2623_v50 = vpop.f32.mrb[21].mxu1 }
 0x137   : > { %v2624_v49 = vadd.f32 %v2623_v50, %v2622_v48  ;;  %v2625_v31 = vpop.f32.mrb[22].mxu1 }
 0x138   : > { %v1685_v43 = vadd.f32 %v2587_v45, %v1620_v58  ;;  %v2626_v52 = vpop.f32.mrb[23].mxu1 }
 0x139   : > { %v2627_v54 = vadd.f32 %v2626_v52, %v2625_v31  ;;  %v1747_v55 = vadd.f32 %v2624_v49, %v1682_v44 }
 0x13a   : > { %v2588_v51 = vpop.f32.mrb[24].mxu0 }
 0x13b   : > { %v2589_v53 = vpop.f32.mrb[25].mxu0  ;;  %v1750_v2 = vadd.f32 %v2627_v54, %v1685_v43 }
 0x13c   : > { %v2590_v24 = vadd.f32 %v2589_v53, %v2588_v51  ;;  %v2591_v46 = vpop.f32.mrb[26].mxu0 }
 0x13d   : > { %v2592_v57 = vpop.f32.mrb[27].mxu0  ;;  %v2628_v3 = vpop.f32.mrb[24].mxu1 }
 0x13e   : > { %v1690_v62 = vadd.f32 %v2590_v24, %v1625_v9  ;;  %v2593_v1 = vadd.f32 %v2592_v57, %v2591_v46  ;;  %v2629_v4 = vpop.f32.mrb[25].mxu1 }
 0x13f   : > { %v2630_v5 = vadd.f32 %v2629_v4, %v2628_v3  ;;  %v2631_v6 = vpop.f32.mrb[26].mxu1 }
 0x140   : > { %v1693_v56 = vadd.f32 %v2593_v1, %v1628_v15  ;;  %v2632_v7 = vpop.f32.mrb[27].mxu1 }
 0x141   : > { %v2633_v11 = vadd.f32 %v2632_v7, %v2631_v6  ;;  %v1755_v16 = vadd.f32 %v2630_v5, %v1690_v62 }
 0x142   : > { %v2594_v58 = vpop.f32.mrb[28].mxu0 }
 0x143   : > { %v2595_v8 = vpop.f32.mrb[29].mxu0  ;;  %v3333_v61 = vadd.f32 %v2633_v11, %v1693_v56 }
 0x144   : > { %v2596_v12 = vadd.f32 %v2595_v8, %v2594_v58  ;;  %v2597_v13 = vpop.f32.mrb[30].mxu0 }
 0x145   : > { %v2598_v17 = vpop.f32.mrb[31].mxu0  ;;  %v2634_v9 = vpop.f32.mrb[28].mxu1 }
 0x146   : > { %v1698_v60 = vadd.f32 %v2596_v12, %v1633_v28  ;;  %v2599_v18 = vadd.f32 %v2598_v17, %v2597_v13  ;;  %v2635_v19 = vpop.f32.mrb[29].mxu1 }
 0x147   : > { %v2636_v21 = vadd.f32 %v2635_v19, %v2634_v9  ;;  %v2637_v15 = vpop.f32.mrb[30].mxu1 }
 0x148   : > { %v1701_v20 = vadd.f32 %v2599_v18, %v1636_v22  ;;  %v2638_v23 = vpop.f32.mrb[31].mxu1 }
 0x149   : > { %v2639_v25 = vadd.f32 %v2638_v23, %v2637_v15  ;;  %v1763_v26 = vadd.f32 %v2636_v21, %v1698_v60 }
 0x14a   : > { %v2682_v63 = vpop.f32.mrb[32].mxu0 }
 0x14b   : > { %v1766_v27 = vadd.f32 %v2639_v25, %v1701_v20  ;;  %v1812_v10 = vadd.f32 %v2682_v63, %v1747_v55  ;;  %v1803_v14 = vpop.f32.mrb[33].mxu0 }
 0x14c   : > { %v1804_v30 = vadd.f32 %v1803_v14, %v1739_v42  ;;  %v2683_v28 = vpop.f32.mrb[34].mxu0 }
 0x14d   : > { %v2706_v29 = vpop.f32.mrb[32].mxu1  ;;  %v1815_v32 = vadd.f32 %v2683_v28, %v1750_v2  ;;  %v1806_v34 = vpop.f32.mrb[35].mxu0  ;;  %v1869_v50 = vmul.f32 %v1812_v10, %v1812_v10 }
 0x14e   : > { %v1988_v59 = vpop.f32.mrb[33].mxu1  ;;  %v1807_v36 = vadd.f32 %v1806_v34, %v1742_v47  ;;  %v1867_v38 = vmul.f32 %v1804_v30, %v1804_v30  ;;  %v2054_v48 = vmul.f32 %v2706_v29, %v2706_v29 }
 0x14f   : > { %v2707_v33 = vpop.f32.mrb[34].mxu1  ;;  %v2052_v22 = vmul.f32 %v1988_v59, %v1988_v59  ;;  %v2442_v39 = vpack.c.bf16 %v1815_v32, %v1812_v10  ;;  %v1870_v55 = vmul.f32 %v1815_v32, %v1815_v32 }
 0x150   : > { %v2462_v35 = vpack.c.bf16 %v2707_v33, %v2706_v29  ;;  %v1991_v37 = vpop.f32.mrb[35].mxu1  ;;  %v2437_v0 = vpack.c.bf16 %v1807_v36, %v1804_v30  ;;  %v1851_v44 = vadd.f32 %v1807_v36, %v1804_v30  ;;  %v1868_v42 = vmul.f32 %v1807_v36, %v1807_v36 }
 0x151   : > { %v2457_v40 = vpack.c.bf16 %v1991_v37, %v1988_v59  ;;  %v2036_v41 = vadd.f32 %v1991_v37, %v1988_v59  ;;  %v2053_v45 = vmul.f32 %v1991_v37, %v1991_v37  ;;  %2474 = vst [vmem:[%s2943_s28 + $0x8] sm:$0xff] %v2442_v39   ;;  %v2055_v52 = vmul.f32 %v2707_v33, %v2707_v33 }
 0x152   : > { %2477 = vst [vmem:[%s2948_s13 + $0x8] sm:$0xff] %v2462_v35   ;;  %2438 = vst [vmem:[%s2943_s28] sm:$0xff] %v2437_v0   ;;  %v1852_v49 = vadd.f32 %v1851_v44, %v1812_v10  ;;  %v1875_v31 = vadd.f32 %v1868_v42, %v1867_v38  ;;  %v2686_v51 = vpop.f32.mrb[36].mxu0 }
 0x153   : > { %2458 = vst [vmem:[%s2948_s13] sm:$0xff] %v2457_v40   ;;  %v2037_v43 = vadd.f32 %v2706_v29, %v2036_v41  ;;  %v2060_v47 = vadd.f32 %v2053_v45, %v2052_v22  ;;  %v1828_v53 = vadd.f32 %v2686_v51, %v1763_v26  ;;  %v1819_v24 = vpop.f32.mrb[37].mxu0  ;;  %v1850_v51 = vld [vmem:[#allocation2] sm:$0x1] }
 0x154   : > { %v1876_v57 = vadd.f32 %v1875_v31, %v1869_v50  ;;  %v1820_v1 = vadd.f32 %v1819_v24, %v1755_v16  ;;  %v2687_v3 = vpop.f32.mrb[38].mxu0  ;;  %v1853_v56 = vadd.f32 %v1852_v49, %v1815_v32 }
 0x155   : > { %v2710_v54 = vpop.f32.mrb[36].mxu1  ;;  %v2038_v46 = vadd.f32 %v2707_v33, %v2037_v43  ;;  %v2061_v62 = vadd.f32 %v2060_v47, %v2054_v48  ;;  %v1822_v58 = vpop.f32.mrb[39].mxu0  ;;  %v1831_v12 = vadd.f32 %v2687_v3, %v1766_v27  ;;  %v1873_v63 = vmul.f32 %v1828_v53, %v1828_v53  ;;  %v2051_v3 = vld [vmem:[#allocation5] sm:$0x1] }
 0x156   : > { %v2004_v2 = vpop.f32.mrb[37].mxu1  ;;  %v1871_v7 = vmul.f32 %v1820_v1, %v1820_v1  ;;  %v1877_v8 = vadd.f32 %v1876_v57, %v1870_v55  ;;  %v1854_v17 = vadd.f32 %v1853_v56, %v1820_v1  ;;  %v1823_v18 = vadd.f32 %v1822_v58, %v3333_v61  ;;  %v1866_v55 = vld [vmem:[#allocation3] sm:$0x1] }
 0x157   : > { %v2039_v4 = vadd.f32 %v2038_v46, %v2004_v2  ;;  %v2056_v5 = vmul.f32 %v2004_v2, %v2004_v2  ;;  %v2711_v6 = vpop.f32.mrb[38].mxu1  ;;  %v2062_v11 = vadd.f32 %v2061_v62, %v2055_v52  ;;  %v2452_v20 = vpack.c.bf16 %v1831_v12, %v1828_v53  ;;  %v2035_v46 = vld [vmem:[#allocation4] sm:$0x1] }
 0x158   : > { %v2007_v13 = vpop.f32.mrb[39].mxu1  ;;  %v2472_v60 = vpack.c.bf16 %v2711_v6, %v2710_v54  ;;  %v1878_v16 = vadd.f32 %v1877_v8, %v1871_v7  ;;  %v2447_v19 = vpack.c.bf16 %v1823_v18, %v1820_v1  ;;  %v1855_v21 = vadd.f32 %v1854_v17, %v1823_v18 }
 0x159   : > { %v2063_v9 = vadd.f32 %v2062_v11, %v2056_v5  ;;  %v1872_v15 = vmul.f32 %v1823_v18, %v1823_v18  ;;  %v2467_v23 = vpack.c.bf16 %v2007_v13, %v2004_v2  ;;  %2476 = vst [vmem:[%s2943_s28 + $0x18] sm:$0xff] %v2452_v20   ;;  %v2040_v25 = vadd.f32 %v2039_v4, %v2007_v13 }
 0x15a   : > { %2479 = vst [vmem:[%s2948_s13 + $0x18] sm:$0xff] %v2472_v60   ;;  %v2057_v26 = vmul.f32 %v2007_v13, %v2007_v13  ;;  %2475 = vst [vmem:[%s2943_s28 + $0x10] sm:$0xff] %v2447_v19   ;;  %v1856_v27 = vadd.f32 %v1855_v21, %v1828_v53  ;;  %v2058_v29 = vmul.f32 %v2710_v54, %v2710_v54 }
 0x15b   : > { %v1879_v10 = vadd.f32 %v1878_v16, %v1872_v15  ;;  %2478 = vst [vmem:[%s2948_s13 + $0x10] sm:$0xff] %v2467_v23   ;;  %v2041_v14 = vadd.f32 %v2710_v54, %v2040_v25  ;;  %v1874_v30 = vmul.f32 %v1831_v12, %v1831_v12  ;;  %v2059_v32 = vmul.f32 %v2711_v6, %v2711_v6  ;;  %v2088_v15 = vld [vmem:[%s3374_s2] sm:$0x1] (!%p2429_p5) }
 0x15c   : > { %v2064_v61 = vadd.f32 %v2063_v9, %v2057_v26  ;;  %v1857_v59 = vadd.f32 %v1856_v27, %v1831_v12  ;;  %v2103_v23 = vld [vmem:[%s3377_s5] sm:$0x1] (!%p2429_p5) }
 0x15d   : > { %v1880_v28 = vadd.f32 %v1879_v10, %v1873_v63  ;;  %v2042_v33 = vadd.f32 %v2711_v6, %v2041_v14  ;;  %v2091_v27 = vld [vmem:[%s3375_s3] sm:$0x1] (!%p2429_p5) }
 0x15e   : > { %v2065_v34 = vadd.f32 %v2064_v61, %v2058_v29  ;;  %v1858_v22 = vrot.slane %v1857_v59, 4  ;;  %v2106_v14 = vld [vmem:[%s3378_s6] sm:$0x1] (!%p2429_p5) }
 0x15f   : > { %v1881_v35 = vadd.f32 %v1880_v28, %v1874_v30  ;;  %v2043_v36 = vrot.slane %v2042_v33, 4 }
 0x160   : > { %v2066_v37 = vadd.f32 %v2065_v34, %v2059_v32  ;;  %v1859_v38 = vadd.f32 %v1858_v22, %v1857_v59 }
 0x161   : > { %v1882_v39 = vrot.slane %v1881_v35, 4  ;;  %v2044_v40 = vadd.f32 %v2043_v36, %v2042_v33 }
 0x162   : > { %v2067_v41 = vrot.slane %v2066_v37, 4  ;;  %v1860_v0 = vrot.slane %v1859_v38, 2 }
 0x163   : > { %v1883_v44 = vadd.f32 %v1882_v39, %v1881_v35  ;;  %v2045_v42 = vrot.slane %v2044_v40, 2 }
 0x164   : > { %v2068_v45 = vadd.f32 %v2067_v41, %v2066_v37  ;;  %v1861_v48 = vadd.f32 %v1860_v0, %v1859_v38 }
 0x165   : > { %v1884_v43 = vrot.slane %v1883_v44, 2  ;;  %v2046_v50 = vadd.f32 %v2045_v42, %v2044_v40 }
 0x166   : > { %v2069_v49 = vrot.slane %v2068_v45, 2  ;;  %v1862_v31 = vrot.slane %v1861_v48, 1 }
 0x167   : > { %v1885_v47 = vadd.f32 %v1884_v43, %v1883_v44  ;;  %v2047_v52 = vrot.slane %v2046_v50, 1 }
 0x168   : > { %v2070_v53 = vadd.f32 %v2069_v49, %v2068_v45  ;;  %v1863_v54 = vadd.f32 %v1862_v31, %v1861_v48 }
 0x169   : > { %v1886_v24 = vrot.slane %v1885_v47, 1  ;;  %v2048_v57 = vadd.f32 %v2047_v52, %v2046_v50 }
 0x16a   : > { %v2071_v62 = vrot.slane %v2070_v53, 1  ;;  %v1864_v1 = vadd.f32 %v1863_v54, %v1850_v51  ;;  %2078 = sbr.rel (%p2429_p5) target bundleno = 400 (0x190), region = 56 }
 0x16b   : > { %v1887_v2 = vadd.f32 %v1886_v24, %v1885_v47  ;;  %v2049_v56 = vadd.f32 %v2048_v57, %v2035_v46 }
 0x16c   : > { %v2072_v4 = vadd.f32 %v2071_v62, %v2070_v53  ;;  %1865 = vst [vmem:[#allocation2] sm:$0x1] %v1864_v1 }
 0x16d   : > { %v1888_v5 = vadd.f32 %v1887_v2, %v1866_v55  ;;  %2050 = vst [vmem:[#allocation4] sm:$0x1] %v2049_v56 }
 0x16e   : > { %v2073_v6 = vadd.f32 %v2072_v4, %v2051_v3 }
 0x16f   : > { %1889 = vst [vmem:[#allocation3] sm:$0x1] %v1888_v5 }
 0x170   : > { %2074 = vst [vmem:[#allocation5] sm:$0x1] %v2073_v6 }
 0x173   : > { %v2079_v58 = vld [vmem:[#allocation2] sm:$0x1] }
 0x174   : > { %v2081_v8 = vmul.f32 0.0078125, %v2079_v58  ;;  %v2095_v12 = vld [vmem:[#allocation4] sm:$0x1] }
 0x175   : > { %v2096_v13 = vmul.f32 0.0078125, %v2095_v12 }
 0x176   : > { %v2082_v7 = vld [vmem:[#allocation3] sm:$0x1]  ;;  %v2084_v60 = vmul.f32 %v2081_v8, %v2081_v8 }
 0x177   : > { %v2083_v11 = vmul.f32 0.0078125, %v2082_v7  ;;  %v2097_v17 = vld [vmem:[#allocation5] sm:$0x1]  ;;  %v2099_v16 = vmul.f32 %v2096_v13, %v2096_v13 }
 0x178   : > { %v2098_v18 = vmul.f32 0.0078125, %v2097_v17 }
 0x179   : > { %v2085_v9 = vsub.f32 %v2083_v11, %v2084_v60 }
 0x17a   : > { %v2100_v20 = vsub.f32 %v2098_v18, %v2099_v16 }
 0x17b   : > { %v2086_v19 = vadd.f32 1e-05, %v2085_v9 }
 0x17c   : > { %v2101_v21 = vadd.f32 1e-05, %v2100_v20 }
 0x17d   : > { %2850 = vrsqrt.f32 %v2086_v19 }
 0x17e   : > { %2852 = vrsqrt.f32 %v2101_v21 }
 0x187   : > { %v2851_v25 = vpop.eup %2850 }
 0x188   : > { %v2853_v26 = vpop.eup %2852  ;;  %v2089_v63 = vmul.f32 %v2851_v25, %v2088_v15 }
 0x189   : > { %v2104_v10 = vmul.f32 %v2853_v26, %v2103_v23 }
 0x18a   : > { %2090 = vst [vmem:[%s3380_s8] sm:$0x1] %v2089_v63  ;;  %v2092_v29 = vmul.f32 %v2089_v63, %v2081_v8 }
 0x18b   : > { %2105 = vst [vmem:[%s3383_s11] sm:$0x1] %v2104_v10  ;;  %v2107_v61 = vmul.f32 %v2104_v10, %v2096_v13 }
 0x18c   : > { %v2093_v30 = vsub.f32 %v2091_v27, %v2092_v29 }
 0x18d   : > { %v2108_v59 = vsub.f32 %v2106_v14, %v2107_v61 }
 0x18e   : > { %2094 = vst [vmem:[%s3381_s9] sm:$0x1] %v2093_v30 }
 0x18f   : > { %2109 = vst [vmem:[%s3384_s12] sm:$0x1] %v2108_v59 }
 0x190 PF: > { %s23_s21 = sadd.s32 1, %s2860_s21  }
 0x191   : > { %p20_p6 = scmp.ge.s32.totalorder %s23_s21, 4  }
 0x193   :  { %22 = sbr.rel (!%p20_p6) target bundleno = 1 (0x1), region = 135 }

</bundles_post_ra>
